<compile_context>
chip_gen: v5e
topology: v5e:2x2
jax: 0.10.0
libtpu: 0.0.40
codegen_flags: <defaults>
</compile_context>

<pallas_src>
import functools

import jax
import jax.numpy as jnp
from jax.experimental import pallas as pl
from jax.experimental.pallas import tpu as pltpu

# ---------------- configuration (small shapes implied by the module) ----------------
B = 2              # batch
IN_CH = 8          # in_channels
OUT_CH = 16        # out_channels
SECOND = 4         # second_dim of the flat blocks
TEMB = 32          # temb_channels
XDIM = 32          # cross_attention_dim
ENC_SEQ = 8        # encoder_hidden_states sequence length
HEADS = 2          # attn_num_head_channels
GROUPS = 8         # resnet_groups / norm_num_groups
EPS_GN = 1e-6
EPS_LN = 1e-5

CIN = IN_CH * SECOND     # resnet in_channels_prod  = 32
COUT = OUT_CH * SECOND   # resnet out_channels_prod = 64
C = OUT_CH               # transformer inner_dim    = 16
L = SECOND               # transformer seq length   = 4
DH = C // HEADS          # attention head dim       = 8
FF = 4 * C               # feed-forward inner dim   = 64
LANES = 128
NEG_INF = -1e30


# ---------------- in-kernel math helpers (traced inside the Pallas kernel) ----------------
def _silu(x):
    return x * jax.nn.sigmoid(x)


def _gelu(x):
    # TODO(synk): PyTorch F.gelu (GEGLU gate) uses the exact erf form; tanh approximation used
    # here for guaranteed Mosaic lowering (max abs deviation ~1e-3).
    return 0.5 * x * (1.0 + jnp.tanh(0.7978845608028654 * (x + 0.044715 * x * x * x)))


def _group_norm_flat(x, gamma, beta, groups, eps):
    """GroupNorm on (rows, features) where each group is a contiguous lane range.
    Pure VPU/XLU (static lane slices + last-axis reduces); no MXU membership matmuls."""
    n, c = x.shape
    cs = c // groups
    segs = []
    for g in range(groups):
        seg = x[:, g * cs:(g + 1) * cs]
        mean = jnp.mean(seg, axis=-1, keepdims=True)
        var = jnp.mean((seg - mean) * (seg - mean), axis=-1, keepdims=True)
        segs.append((seg - mean) * jax.lax.rsqrt(var + eps))
    return jnp.concatenate(segs, axis=-1) * gamma + beta


def _layer_norm(x, gamma, beta, eps=EPS_LN):
    mean = jnp.mean(x, axis=-1, keepdims=True)
    var = jnp.mean((x - mean) * (x - mean), axis=-1, keepdims=True)
    return (x - mean) * jax.lax.rsqrt(var + eps) * gamma + beta


def _stack_heads(x, heads):
    """(rows, heads*dh) -> (heads*rows, dh): heads stacked along sublanes so all heads share
    one score matmul."""
    dh = x.shape[-1] // heads
    return jnp.concatenate([x[:, h * dh:(h + 1) * dh] for h in range(heads)], axis=0)


def _unstack_heads(x, heads):
    """(heads*rows, dh) -> (rows, heads*dh): concat per-head outputs back along lanes."""
    rows = x.shape[0] // heads
    return jnp.concatenate([x[h * rows:(h + 1) * rows, :] for h in range(heads)], axis=1)


def _attention(q, k, v, heads, scale, bias):
    """All batches and all heads through a single masked score matmul.
    bias: additive mask (0 = keep, -1e30 = cross-batch / cross-head pair)."""
    qs = _stack_heads(q, heads)
    ks = _stack_heads(k, heads)
    vs = _stack_heads(v, heads)
    s = jax.lax.dot_general(qs, ks, (((1,), (1,)), ((), ())),
                            preferred_element_type=jnp.float32) * scale + bias
    m = jnp.max(s, axis=-1, keepdims=True)
    e = jnp.exp(s - m)
    p = e * pl.reciprocal(jnp.sum(e, axis=-1, keepdims=True), approx=True)
    o = jnp.dot(p, vs, preferred_element_type=jnp.float32)
    return _unstack_heads(o, heads)


# ---------------- the fused kernel ----------------
def _fused_block_kernel(x_ref, temb_ref, enc_ref, slab_ref, out_ref, *, off):
    """resnets[0] -> attentions[0] -> downsamplers[0], fully fused.

    Feature layouts: the resnet and the residuals use the c-major flat layout (B, ch*SECOND + s);
    the transformer body uses the sequence layout (SECOND*B, C) with row = s*B + b. The layout
    changes are folded into the packed proj_in / proj_out weights, so no in-kernel relayout ops."""
    f32 = jnp.float32

    def p(name):
        r0, nr, nc = off[name]
        return slab_ref[r0:r0 + nr, 0:nc]

    x = x_ref[...]        # (B, CIN)       c-major flat hidden_states
    temb = temb_ref[...]  # (B, TEMB)
    enc = enc_ref[...]    # (B*ENC_SEQ, XDIM), rows ordered (batch, token)

    # ------------------------------ ResnetBlockFlat ------------------------------
    h = _group_norm_flat(x, p('r_gn1_g'), p('r_gn1_b'), GROUPS, EPS_GN)
    h = _silu(h)
    h = jnp.dot(h, p('r_conv1_w'), preferred_element_type=f32) + p('r_conv1_b')
    h = h + jnp.dot(_silu(temb), p('r_temb_w'), preferred_element_type=f32) + p('r_temb_b')
    h = _group_norm_flat(h, p('r_gn2_g'), p('r_gn2_b'), GROUPS, EPS_GN)
    h = _silu(h)
    h = jnp.dot(h, p('r_conv2_w'), preferred_element_type=f32) + p('r_conv2_b')
    shortcut = jnp.dot(x, p('r_short_w'), preferred_element_type=f32) + p('r_short_b')
    h_res = shortcut + h                      # (B, COUT); also the transformer outer residual

    # ----------------------- Transformer2DModel (one basic block) -----------------------
    # GroupNorm in the c-major flat layout: each group = 8 contiguous flat features
    # (= 2 channels x 4 positions), matching torch GroupNorm over (C/G, H, W); affine pre-expanded.
    hg = _group_norm_flat(h_res, p('t_gn_g'), p('t_gn_b'), GROUPS, EPS_GN)

    # proj_in (1x1 conv) + c-major -> sequence relayout, folded into the packed weight:
    # row block s of the result is spatial position s for both batch rows -> hseq row = s*B + b.
    pin_w = p('t_pin_w')                      # (SECOND*COUT, C)
    pin_b = p('t_pin_b')
    hseq = jnp.concatenate(
        [jnp.dot(hg, pin_w[s * COUT:(s + 1) * COUT, :], preferred_element_type=f32) + pin_b
         for s in range(SECOND)], axis=0)     # (SECOND*B, C)

    scale = float(DH) ** -0.5

    # --- attn1: self attention ---
    n1 = _layer_norm(hseq, p('t_ln1_g'), p('t_ln1_b'))
    a1 = _attention(jnp.dot(n1, p('t_wq1'), preferred_element_type=f32),
                    jnp.dot(n1, p('t_wk1'), preferred_element_type=f32),
                    jnp.dot(n1, p('t_wv1'), preferred_element_type=f32),
                    HEADS, scale, p('a_bias_self'))
    hseq = jnp.dot(a1, p('t_wo1'), preferred_element_type=f32) + p('t_bo1') + hseq

    # --- attn2: cross attention with encoder_hidden_states ---
    n2 = _layer_norm(hseq, p('t_ln2_g'), p('t_ln2_b'))
    a2 = _attention(jnp.dot(n2, p('t_wq2'), preferred_element_type=f32),
                    jnp.dot(enc, p('t_wk2'), preferred_element_type=f32),
                    jnp.dot(enc, p('t_wv2'), preferred_element_type=f32),
                    HEADS, scale, p('a_bias_cross'))
    hseq = jnp.dot(a2, p('t_wo2'), preferred_element_type=f32) + p('t_bo2') + hseq

    # --- feed-forward (GEGLU) ---
    n3 = _layer_norm(hseq, p('t_ln3_g'), p('t_ln3_b'))
    g = jnp.dot(n3, p('t_ff1_w'), preferred_element_type=f32) + p('t_ff1_b')   # (rows, 2*FF)
    ff_h = g[:, :FF] * _gelu(g[:, FF:])
    hseq = jnp.dot(ff_h, p('t_ff2_w'), preferred_element_type=f32) + p('t_ff2_b') + hseq

    # proj_out (1x1 conv) + sequence -> c-major relayout (folded) + outer residual
    pout_w = p('t_pout_w')                    # (SECOND*C, COUT)
    attn_out = h_res + p('t_pout_b')
    for s in range(SECOND):
        attn_out = attn_out + jnp.dot(hseq[s * B:(s + 1) * B, :],
                                      pout_w[s * C:(s + 1) * C, :],
                                      preferred_element_type=f32)
    # attn_out: (B, COUT) c-major flat == output_states[0]

    # ----------------------- LinearMultiDim downsampler -----------------------
    down = jnp.dot(attn_out, p('d_w'), preferred_element_type=f32) + p('d_b')

    # one lane-dense (B, 128) output slab: [ attention output | downsample output ]
    out_ref[...] = jnp.concatenate([attn_out, down], axis=-1)


# ---------------- wrapper: parameter packing + single pallas_call ----------------
def pack_params(params):
    """Pack every parameter (plus the static attention masks) into ONE lane-dense (rows, 128) f32
    slab, pre-folding all layout plumbing (GroupNorm affine expansion, NCHW<->sequence relayout of
    proj_in/proj_out).  Returns (slab, offsets) with offsets[name] = (row_start, n_rows, n_cols)
    for static in-kernel slicing.  Done once, wrapper-side."""
    entries = []

    def add(name, arr):
        arr = jnp.asarray(arr, jnp.float32)
        if arr.ndim == 1:
            arr = arr[None, :]
        entries.append((name, arr))

    r = params['resnet0']
    add('r_gn1_g', r['gn1_g']); add('r_gn1_b', r['gn1_b'])
    add('r_conv1_w', r['conv1_w']); add('r_conv1_b', r['conv1_b'])
    add('r_temb_w', r['temb_w']); add('r_temb_b', r['temb_b'])
    add('r_gn2_g', r['gn2_g']); add('r_gn2_b', r['gn2_b'])
    add('r_conv2_w', r['conv2_w']); add('r_conv2_b', r['conv2_b'])
    add('r_short_w', r['short_w']); add('r_short_b', r['short_b'])

    a = params['attn0']
    # GroupNorm affine: per-channel (C,) -> c-major flat (COUT,) (each channel repeated SECOND x)
    add('t_gn_g', jnp.repeat(a['gn_g'], SECOND))
    add('t_gn_b', jnp.repeat(a['gn_b'], SECOND))

    # proj_in folded with the c-major -> sequence relayout: block s maps flat feature j to
    # pin_w[j // SECOND] iff j % SECOND == s, so h_flat @ block_s == proj_in at spatial pos s.
    j = jnp.arange(COUT)
    pin_blocks = [
        (j % SECOND == s).astype(jnp.float32)[:, None] * a['pin_w'][j // SECOND, :]
        for s in range(SECOND)
    ]
    add('t_pin_w', jnp.concatenate(pin_blocks, axis=0))    # (SECOND*COUT, C)
    add('t_pin_b', a['pin_b'])

    add('t_ln1_g', a['ln1_g']); add('t_ln1_b', a['ln1_b'])
    add('t_wq1', a['wq1']); add('t_wk1', a['wk1']); add('t_wv1', a['wv1'])
    add('t_wo1', a['wo1']); add('t_bo1', a['bo1'])
    add('t_ln2_g', a['ln2_g']); add('t_ln2_b', a['ln2_b'])
    add('t_wq2', a['wq2']); add('t_wk2', a['wk2']); add('t_wv2', a['wv2'])
    add('t_wo2', a['wo2']); add('t_bo2', a['bo2'])
    add('t_ln3_g', a['ln3_g']); add('t_ln3_b', a['ln3_b'])
    add('t_ff1_w', a['ff1_w']); add('t_ff1_b', a['ff1_b'])
    add('t_ff2_w', a['ff2_w']); add('t_ff2_b', a['ff2_b'])

    # proj_out folded with the sequence -> c-major relayout: block s scatters channel co to
    # flat column co*SECOND + s.
    jc = jnp.arange(COUT)
    pout_blocks = [
        (jc % SECOND == s).astype(jnp.float32)[None, :] * a['pout_w'][:, jc // SECOND]
        for s in range(SECOND)
    ]
    add('t_pout_w', jnp.concatenate(pout_blocks, axis=0))  # (SECOND*C, COUT)
    add('t_pout_b', jnp.repeat(a['pout_b'], SECOND))       # c-major flat bias (COUT,)

    d = params['down']
    add('d_w', d['w']); add('d_b', d['b'])

    # Additive attention masks for the head/batch-stacked score matrices (0 keep, -1e30 drop).
    # Query rows are ordered (head, position, batch); self-attn keys share that ordering;
    # cross-attn keys are ordered (head, batch, token).
    qi = jnp.arange(HEADS * B * L)
    q_head, q_b = qi // (B * L), qi % B
    kj = jnp.arange(HEADS * B * ENC_SEQ)
    k_head, k_b = kj // (B * ENC_SEQ), (kj // ENC_SEQ) % B
    self_ok = (q_head[:, None] == q_head[None, :]) & (q_b[:, None] == q_b[None, :])
    cross_ok = (q_head[:, None] == k_head[None, :]) & (q_b[:, None] == k_b[None, :])
    add('a_bias_self', jnp.where(self_ok, 0.0, NEG_INF))
    add('a_bias_cross', jnp.where(cross_ok, 0.0, NEG_INF))

    # Concatenate into a single (rows, 128) slab; each entry starts on an 8-row boundary.
    offsets = {}
    padded_rows = []
    row = 0
    for name, arr in entries:
        nr, nc = arr.shape
        pad = (-nr) % 8
        block = jnp.zeros((nr + pad, LANES), jnp.float32).at[:nr, :nc].set(arr)
        padded_rows.append(block)
        offsets[name] = (row, nr, nc)
        row += nr + pad
    slab = jnp.concatenate(padded_rows, axis=0)
    return slab, offsets


def cross_attn_down_block_flat(hidden_states, temb, encoder_hidden_states, slab, offsets):
    """Forward of CrossAttnDownBlockFlat (num_layers=1, add_downsample=True), one fused kernel."""
    x_flat = hidden_states.reshape(B, CIN)                       # c-major flatten (torch .reshape)
    enc_flat = encoder_hidden_states.reshape(B * ENC_SEQ, XDIM)  # rows ordered (batch, token)

    kernel = functools.partial(_fused_block_kernel, off=offsets)
    out = pl.pallas_call(
        kernel,
        grid=(1,),
        in_specs=[
            pl.BlockSpec((B, CIN), lambda i: (0, 0)),
            pl.BlockSpec((B, TEMB), lambda i: (0, 0)),
            pl.BlockSpec((B * ENC_SEQ, XDIM), lambda i: (0, 0)),
            pl.BlockSpec(slab.shape, lambda i: (0, 0)),
        ],
        out_specs=pl.BlockSpec((B, 2 * COUT), lambda i: (0, 0)),
        out_shape=jax.ShapeDtypeStruct((B, 2 * COUT), jnp.float32),
        compiler_params=pltpu.CompilerParams(dimension_semantics=("arbitrary",)),
    )(x_flat, temb, enc_flat, slab)

    attn_out = out[:, :COUT].reshape(B, OUT_CH, SECOND, 1)   # output_states[0]
    down_out = out[:, COUT:].reshape(B, OUT_CH, SECOND, 1)   # output_states[1] == hidden_states
    return down_out, (attn_out, down_out)


# ---------------- deterministic parameter init (shapes from __init__) ----------------
def init_params(key):
    keys = iter(jax.random.split(key, 64))

    def w(*shape):
        return 0.05 * jax.random.normal(next(keys), shape, dtype=jnp.float32)

    ones = lambda n: jnp.ones((n,), jnp.float32)
    zeros = lambda n: jnp.zeros((n,), jnp.float32)

    resnet = dict(
        gn1_g=ones(CIN), gn1_b=zeros(CIN),
        conv1_w=w(CIN, COUT), conv1_b=w(COUT),
        temb_w=w(TEMB, COUT), temb_b=w(COUT),
        gn2_g=ones(COUT), gn2_b=zeros(COUT),
        conv2_w=w(COUT, COUT), conv2_b=w(COUT),
        short_w=w(CIN, COUT), short_b=w(COUT),   # use_in_shortcut since CIN != COUT
    )
    attn = dict(
        gn_g=ones(C), gn_b=zeros(C),
        pin_w=w(C, C), pin_b=w(C),
        ln1_g=ones(C), ln1_b=zeros(C),
        wq1=w(C, C), wk1=w(C, C), wv1=w(C, C), wo1=w(C, C), bo1=w(C),
        ln2_g=ones(C), ln2_b=zeros(C),
        wq2=w(C, C), wk2=w(XDIM, C), wv2=w(XDIM, C), wo2=w(C, C), bo2=w(C),
        ln3_g=ones(C), ln3_b=zeros(C),
        ff1_w=w(C, 2 * FF), ff1_b=w(2 * FF),     # GEGLU proj: [value | gate]
        ff2_w=w(FF, C), ff2_b=w(C),
        pout_w=w(C, C), pout_b=w(C),
    )
    down = dict(w=w(COUT, COUT), b=w(COUT))
    return dict(resnet0=resnet, attn0=attn, down=down)


if __name__ == "__main__":
    key = jax.random.PRNGKey(0)
    kx, kt, ke, kp = jax.random.split(key, 4)
    params = init_params(kp)
    slab, offsets = pack_params(params)   # one-time weight preprocessing

    hidden_states = jax.random.normal(kx, (B, IN_CH, SECOND, 1), jnp.float32)
    temb = jax.random.normal(kt, (B, TEMB), jnp.float32)
    encoder_hidden_states = jax.random.normal(ke, (B, ENC_SEQ, XDIM), jnp.float32)

    out, output_states = cross_attn_down_block_flat(
        hidden_states, temb, encoder_hidden_states, slab, offsets)

    out = jax.block_until_ready(out)
    output_states = tuple(jax.block_until_ready(o) for o in output_states)

    assert out.shape == (B, OUT_CH, SECOND, 1)
    assert len(output_states) == 2
    assert all(o.shape == (B, OUT_CH, SECOND, 1) for o in output_states)
    assert all(bool(jnp.all(jnp.isfinite(o))) for o in (out,) + output_states)
    print("KERNEL_OK")
</pallas_src>

<mosaic_0001>
module attributes {stable_mosaic.version = 11 : i64} {
  func.func @_fused_block_kernel(%arg0: i32, %arg1: memref<2x32xf32, #tpu.memory_space<vmem>>, %arg2: memref<2x32xf32, #tpu.memory_space<vmem>>, %arg3: memref<16x32xf32, #tpu.memory_space<vmem>>, %arg4: memref<1000x128xf32, #tpu.memory_space<vmem>>, %arg5: memref<2x128xf32, #tpu.memory_space<vmem>>) attributes {dimension_semantics = [#tpu.dimension_semantics<arbitrary>], iteration_bounds = array<i64: 1>, scalar_prefetch = 0 : i64, scratch_operands = 0 : i64, tpu.core_type = #tpu.core_type<tc>, window_params = [{pipeline_mode = #tpu.pipeline_mode<synchronous>, transform_indices = @transform_0, window_bounds = array<i64: 2, 32>}, {pipeline_mode = #tpu.pipeline_mode<synchronous>, transform_indices = @transform_1, window_bounds = array<i64: 2, 32>}, {pipeline_mode = #tpu.pipeline_mode<synchronous>, transform_indices = @transform_2, window_bounds = array<i64: 16, 32>}, {pipeline_mode = #tpu.pipeline_mode<synchronous>, transform_indices = @transform_3, window_bounds = array<i64: 1000, 128>}, {pipeline_mode = #tpu.pipeline_mode<synchronous>, transform_indices = @transform_4, window_bounds = array<i64: 2, 128>}]} {
    %c0 = arith.constant 0 : index
    %c0_0 = arith.constant 0 : index
    %0 = vector.load %arg1[%c0, %c0_0] : memref<2x32xf32, #tpu.memory_space<vmem>>, vector<2x32xf32>
    %c0_1 = arith.constant 0 : index
    %c0_2 = arith.constant 0 : index
    %1 = vector.load %arg2[%c0_1, %c0_2] : memref<2x32xf32, #tpu.memory_space<vmem>>, vector<2x32xf32>
    %c0_3 = arith.constant 0 : index
    %c0_4 = arith.constant 0 : index
    %2 = vector.load %arg3[%c0_3, %c0_4] : memref<16x32xf32, #tpu.memory_space<vmem>>, vector<16x32xf32>
    %c0_5 = arith.constant 0 : index
    %c0_6 = arith.constant 0 : index
    %3 = vector.load %arg4[%c0_5, %c0_6] : memref<1000x128xf32, #tpu.memory_space<vmem>>, vector<1x32xf32>
    %c8 = arith.constant 8 : index
    %c0_7 = arith.constant 0 : index
    %4 = vector.load %arg4[%c8, %c0_7] : memref<1000x128xf32, #tpu.memory_space<vmem>>, vector<1x32xf32>
    %5 = vector.extract_strided_slice %0 {offsets = [0, 0], sizes = [2, 4], strides = [1, 1]} : vector<2x32xf32> to vector<2x4xf32>
    %cst = arith.constant dense<0.000000e+00> : vector<2xf32>
    %6 = vector.multi_reduction <add>, %5, %cst [1] : vector<2x4xf32> to vector<2xf32>
    %7 = vector.shape_cast %6 : vector<2xf32> to vector<2x1xf32>
    %cst_8 = arith.constant 4.000000e+00 : f32
    %8 = vector.broadcast %cst_8 : f32 to vector<2x1xf32>
    %9 = arith.divf %7, %8 : vector<2x1xf32>
    %10 = vector.broadcast %9 : vector<2x1xf32> to vector<2x4xf32>
    %11 = arith.subf %5, %10 : vector<2x4xf32>
    %12 = vector.broadcast %9 : vector<2x1xf32> to vector<2x4xf32>
    %13 = arith.subf %5, %12 : vector<2x4xf32>
    %14 = arith.mulf %11, %13 : vector<2x4xf32>
    %cst_9 = arith.constant dense<0.000000e+00> : vector<2xf32>
    %15 = vector.multi_reduction <add>, %14, %cst_9 [1] : vector<2x4xf32> to vector<2xf32>
    %16 = vector.shape_cast %15 : vector<2xf32> to vector<2x1xf32>
    %cst_10 = arith.constant 4.000000e+00 : f32
    %17 = vector.broadcast %cst_10 : f32 to vector<2x1xf32>
    %18 = arith.divf %16, %17 : vector<2x1xf32>
    %19 = vector.broadcast %9 : vector<2x1xf32> to vector<2x4xf32>
    %20 = arith.subf %5, %19 : vector<2x4xf32>
    %cst_11 = arith.constant 9.99999997E-7 : f32
    %21 = vector.broadcast %cst_11 : f32 to vector<2x1xf32>
    %22 = arith.addf %18, %21 : vector<2x1xf32>
    %23 = math.rsqrt %22 : vector<2x1xf32>
    %24 = vector.broadcast %23 : vector<2x1xf32> to vector<2x4xf32>
    %25 = arith.mulf %20, %24 : vector<2x4xf32>
    %26 = vector.extract_strided_slice %0 {offsets = [0, 4], sizes = [2, 4], strides = [1, 1]} : vector<2x32xf32> to vector<2x4xf32>
    %cst_12 = arith.constant dense<0.000000e+00> : vector<2xf32>
    %27 = vector.multi_reduction <add>, %26, %cst_12 [1] : vector<2x4xf32> to vector<2xf32>
    %28 = vector.shape_cast %27 : vector<2xf32> to vector<2x1xf32>
    %cst_13 = arith.constant 4.000000e+00 : f32
    %29 = vector.broadcast %cst_13 : f32 to vector<2x1xf32>
    %30 = arith.divf %28, %29 : vector<2x1xf32>
    %31 = vector.broadcast %30 : vector<2x1xf32> to vector<2x4xf32>
    %32 = arith.subf %26, %31 : vector<2x4xf32>
    %33 = vector.broadcast %30 : vector<2x1xf32> to vector<2x4xf32>
    %34 = arith.subf %26, %33 : vector<2x4xf32>
    %35 = arith.mulf %32, %34 : vector<2x4xf32>
    %cst_14 = arith.constant dense<0.000000e+00> : vector<2xf32>
    %36 = vector.multi_reduction <add>, %35, %cst_14 [1] : vector<2x4xf32> to vector<2xf32>
    %37 = vector.shape_cast %36 : vector<2xf32> to vector<2x1xf32>
    %cst_15 = arith.constant 4.000000e+00 : f32
    %38 = vector.broadcast %cst_15 : f32 to vector<2x1xf32>
    %39 = arith.divf %37, %38 : vector<2x1xf32>
    %40 = vector.broadcast %30 : vector<2x1xf32> to vector<2x4xf32>
    %41 = arith.subf %26, %40 : vector<2x4xf32>
    %cst_16 = arith.constant 9.99999997E-7 : f32
    %42 = vector.broadcast %cst_16 : f32 to vector<2x1xf32>
    %43 = arith.addf %39, %42 : vector<2x1xf32>
    %44 = math.rsqrt %43 : vector<2x1xf32>
    %45 = vector.broadcast %44 : vector<2x1xf32> to vector<2x4xf32>
    %46 = arith.mulf %41, %45 : vector<2x4xf32>
    %47 = vector.extract_strided_slice %0 {offsets = [0, 8], sizes = [2, 4], strides = [1, 1]} : vector<2x32xf32> to vector<2x4xf32>
    %cst_17 = arith.constant dense<0.000000e+00> : vector<2xf32>
    %48 = vector.multi_reduction <add>, %47, %cst_17 [1] : vector<2x4xf32> to vector<2xf32>
    %49 = vector.shape_cast %48 : vector<2xf32> to vector<2x1xf32>
    %cst_18 = arith.constant 4.000000e+00 : f32
    %50 = vector.broadcast %cst_18 : f32 to vector<2x1xf32>
    %51 = arith.divf %49, %50 : vector<2x1xf32>
    %52 = vector.broadcast %51 : vector<2x1xf32> to vector<2x4xf32>
    %53 = arith.subf %47, %52 : vector<2x4xf32>
    %54 = vector.broadcast %51 : vector<2x1xf32> to vector<2x4xf32>
    %55 = arith.subf %47, %54 : vector<2x4xf32>
    %56 = arith.mulf %53, %55 : vector<2x4xf32>
    %cst_19 = arith.constant dense<0.000000e+00> : vector<2xf32>
    %57 = vector.multi_reduction <add>, %56, %cst_19 [1] : vector<2x4xf32> to vector<2xf32>
    %58 = vector.shape_cast %57 : vector<2xf32> to vector<2x1xf32>
    %cst_20 = arith.constant 4.000000e+00 : f32
    %59 = vector.broadcast %cst_20 : f32 to vector<2x1xf32>
    %60 = arith.divf %58, %59 : vector<2x1xf32>
    %61 = vector.broadcast %51 : vector<2x1xf32> to vector<2x4xf32>
    %62 = arith.subf %47, %61 : vector<2x4xf32>
    %cst_21 = arith.constant 9.99999997E-7 : f32
    %63 = vector.broadcast %cst_21 : f32 to vector<2x1xf32>
    %64 = arith.addf %60, %63 : vector<2x1xf32>
    %65 = math.rsqrt %64 : vector<2x1xf32>
    %66 = vector.broadcast %65 : vector<2x1xf32> to vector<2x4xf32>
    %67 = arith.mulf %62, %66 : vector<2x4xf32>
    %68 = vector.extract_strided_slice %0 {offsets = [0, 12], sizes = [2, 4], strides = [1, 1]} : vector<2x32xf32> to vector<2x4xf32>
    %cst_22 = arith.constant dense<0.000000e+00> : vector<2xf32>
    %69 = vector.multi_reduction <add>, %68, %cst_22 [1] : vector<2x4xf32> to vector<2xf32>
    %70 = vector.shape_cast %69 : vector<2xf32> to vector<2x1xf32>
    %cst_23 = arith.constant 4.000000e+00 : f32
    %71 = vector.broadcast %cst_23 : f32 to vector<2x1xf32>
    %72 = arith.divf %70, %71 : vector<2x1xf32>
    %73 = vector.broadcast %72 : vector<2x1xf32> to vector<2x4xf32>
    %74 = arith.subf %68, %73 : vector<2x4xf32>
    %75 = vector.broadcast %72 : vector<2x1xf32> to vector<2x4xf32>
    %76 = arith.subf %68, %75 : vector<2x4xf32>
    %77 = arith.mulf %74, %76 : vector<2x4xf32>
    %cst_24 = arith.constant dense<0.000000e+00> : vector<2xf32>
    %78 = vector.multi_reduction <add>, %77, %cst_24 [1] : vector<2x4xf32> to vector<2xf32>
    %79 = vector.shape_cast %78 : vector<2xf32> to vector<2x1xf32>
    %cst_25 = arith.constant 4.000000e+00 : f32
    %80 = vector.broadcast %cst_25 : f32 to vector<2x1xf32>
    %81 = arith.divf %79, %80 : vector<2x1xf32>
    %82 = vector.broadcast %72 : vector<2x1xf32> to vector<2x4xf32>
    %83 = arith.subf %68, %82 : vector<2x4xf32>
    %cst_26 = arith.constant 9.99999997E-7 : f32
    %84 = vector.broadcast %cst_26 : f32 to vector<2x1xf32>
    %85 = arith.addf %81, %84 : vector<2x1xf32>
    %86 = math.rsqrt %85 : vector<2x1xf32>
    %87 = vector.broadcast %86 : vector<2x1xf32> to vector<2x4xf32>
    %88 = arith.mulf %83, %87 : vector<2x4xf32>
    %89 = vector.extract_strided_slice %0 {offsets = [0, 16], sizes = [2, 4], strides = [1, 1]} : vector<2x32xf32> to vector<2x4xf32>
    %cst_27 = arith.constant dense<0.000000e+00> : vector<2xf32>
    %90 = vector.multi_reduction <add>, %89, %cst_27 [1] : vector<2x4xf32> to vector<2xf32>
    %91 = vector.shape_cast %90 : vector<2xf32> to vector<2x1xf32>
    %cst_28 = arith.constant 4.000000e+00 : f32
    %92 = vector.broadcast %cst_28 : f32 to vector<2x1xf32>
    %93 = arith.divf %91, %92 : vector<2x1xf32>
    %94 = vector.broadcast %93 : vector<2x1xf32> to vector<2x4xf32>
    %95 = arith.subf %89, %94 : vector<2x4xf32>
    %96 = vector.broadcast %93 : vector<2x1xf32> to vector<2x4xf32>
    %97 = arith.subf %89, %96 : vector<2x4xf32>
    %98 = arith.mulf %95, %97 : vector<2x4xf32>
    %cst_29 = arith.constant dense<0.000000e+00> : vector<2xf32>
    %99 = vector.multi_reduction <add>, %98, %cst_29 [1] : vector<2x4xf32> to vector<2xf32>
    %100 = vector.shape_cast %99 : vector<2xf32> to vector<2x1xf32>
    %cst_30 = arith.constant 4.000000e+00 : f32
    %101 = vector.broadcast %cst_30 : f32 to vector<2x1xf32>
    %102 = arith.divf %100, %101 : vector<2x1xf32>
    %103 = vector.broadcast %93 : vector<2x1xf32> to vector<2x4xf32>
    %104 = arith.subf %89, %103 : vector<2x4xf32>
    %cst_31 = arith.constant 9.99999997E-7 : f32
    %105 = vector.broadcast %cst_31 : f32 to vector<2x1xf32>
    %106 = arith.addf %102, %105 : vector<2x1xf32>
    %107 = math.rsqrt %106 : vector<2x1xf32>
    %108 = vector.broadcast %107 : vector<2x1xf32> to vector<2x4xf32>
    %109 = arith.mulf %104, %108 : vector<2x4xf32>
    %110 = vector.extract_strided_slice %0 {offsets = [0, 20], sizes = [2, 4], strides = [1, 1]} : vector<2x32xf32> to vector<2x4xf32>
    %cst_32 = arith.constant dense<0.000000e+00> : vector<2xf32>
    %111 = vector.multi_reduction <add>, %110, %cst_32 [1] : vector<2x4xf32> to vector<2xf32>
    %112 = vector.shape_cast %111 : vector<2xf32> to vector<2x1xf32>
    %cst_33 = arith.constant 4.000000e+00 : f32
    %113 = vector.broadcast %cst_33 : f32 to vector<2x1xf32>
    %114 = arith.divf %112, %113 : vector<2x1xf32>
    %115 = vector.broadcast %114 : vector<2x1xf32> to vector<2x4xf32>
    %116 = arith.subf %110, %115 : vector<2x4xf32>
    %117 = vector.broadcast %114 : vector<2x1xf32> to vector<2x4xf32>
    %118 = arith.subf %110, %117 : vector<2x4xf32>
    %119 = arith.mulf %116, %118 : vector<2x4xf32>
    %cst_34 = arith.constant dense<0.000000e+00> : vector<2xf32>
    %120 = vector.multi_reduction <add>, %119, %cst_34 [1] : vector<2x4xf32> to vector<2xf32>
    %121 = vector.shape_cast %120 : vector<2xf32> to vector<2x1xf32>
    %cst_35 = arith.constant 4.000000e+00 : f32
    %122 = vector.broadcast %cst_35 : f32 to vector<2x1xf32>
    %123 = arith.divf %121, %122 : vector<2x1xf32>
    %124 = vector.broadcast %114 : vector<2x1xf32> to vector<2x4xf32>
    %125 = arith.subf %110, %124 : vector<2x4xf32>
    %cst_36 = arith.constant 9.99999997E-7 : f32
    %126 = vector.broadcast %cst_36 : f32 to vector<2x1xf32>
    %127 = arith.addf %123, %126 : vector<2x1xf32>
    %128 = math.rsqrt %127 : vector<2x1xf32>
    %129 = vector.broadcast %128 : vector<2x1xf32> to vector<2x4xf32>
    %130 = arith.mulf %125, %129 : vector<2x4xf32>
    %131 = vector.extract_strided_slice %0 {offsets = [0, 24], sizes = [2, 4], strides = [1, 1]} : vector<2x32xf32> to vector<2x4xf32>
    %cst_37 = arith.constant dense<0.000000e+00> : vector<2xf32>
    %132 = vector.multi_reduction <add>, %131, %cst_37 [1] : vector<2x4xf32> to vector<2xf32>
    %133 = vector.shape_cast %132 : vector<2xf32> to vector<2x1xf32>
    %cst_38 = arith.constant 4.000000e+00 : f32
    %134 = vector.broadcast %cst_38 : f32 to vector<2x1xf32>
    %135 = arith.divf %133, %134 : vector<2x1xf32>
    %136 = vector.broadcast %135 : vector<2x1xf32> to vector<2x4xf32>
    %137 = arith.subf %131, %136 : vector<2x4xf32>
    %138 = vector.broadcast %135 : vector<2x1xf32> to vector<2x4xf32>
    %139 = arith.subf %131, %138 : vector<2x4xf32>
    %140 = arith.mulf %137, %139 : vector<2x4xf32>
    %cst_39 = arith.constant dense<0.000000e+00> : vector<2xf32>
    %141 = vector.multi_reduction <add>, %140, %cst_39 [1] : vector<2x4xf32> to vector<2xf32>
    %142 = vector.shape_cast %141 : vector<2xf32> to vector<2x1xf32>
    %cst_40 = arith.constant 4.000000e+00 : f32
    %143 = vector.broadcast %cst_40 : f32 to vector<2x1xf32>
    %144 = arith.divf %142, %143 : vector<2x1xf32>
    %145 = vector.broadcast %135 : vector<2x1xf32> to vector<2x4xf32>
    %146 = arith.subf %131, %145 : vector<2x4xf32>
    %cst_41 = arith.constant 9.99999997E-7 : f32
    %147 = vector.broadcast %cst_41 : f32 to vector<2x1xf32>
    %148 = arith.addf %144, %147 : vector<2x1xf32>
    %149 = math.rsqrt %148 : vector<2x1xf32>
    %150 = vector.broadcast %149 : vector<2x1xf32> to vector<2x4xf32>
    %151 = arith.mulf %146, %150 : vector<2x4xf32>
    %152 = vector.extract_strided_slice %0 {offsets = [0, 28], sizes = [2, 4], strides = [1, 1]} : vector<2x32xf32> to vector<2x4xf32>
    %cst_42 = arith.constant dense<0.000000e+00> : vector<2xf32>
    %153 = vector.multi_reduction <add>, %152, %cst_42 [1] : vector<2x4xf32> to vector<2xf32>
    %154 = vector.shape_cast %153 : vector<2xf32> to vector<2x1xf32>
    %cst_43 = arith.constant 4.000000e+00 : f32
    %155 = vector.broadcast %cst_43 : f32 to vector<2x1xf32>
    %156 = arith.divf %154, %155 : vector<2x1xf32>
    %157 = vector.broadcast %156 : vector<2x1xf32> to vector<2x4xf32>
    %158 = arith.subf %152, %157 : vector<2x4xf32>
    %159 = vector.broadcast %156 : vector<2x1xf32> to vector<2x4xf32>
    %160 = arith.subf %152, %159 : vector<2x4xf32>
    %161 = arith.mulf %158, %160 : vector<2x4xf32>
    %cst_44 = arith.constant dense<0.000000e+00> : vector<2xf32>
    %162 = vector.multi_reduction <add>, %161, %cst_44 [1] : vector<2x4xf32> to vector<2xf32>
    %163 = vector.shape_cast %162 : vector<2xf32> to vector<2x1xf32>
    %cst_45 = arith.constant 4.000000e+00 : f32
    %164 = vector.broadcast %cst_45 : f32 to vector<2x1xf32>
    %165 = arith.divf %163, %164 : vector<2x1xf32>
    %166 = vector.broadcast %156 : vector<2x1xf32> to vector<2x4xf32>
    %167 = arith.subf %152, %166 : vector<2x4xf32>
    %cst_46 = arith.constant 9.99999997E-7 : f32
    %168 = vector.broadcast %cst_46 : f32 to vector<2x1xf32>
    %169 = arith.addf %165, %168 : vector<2x1xf32>
    %170 = math.rsqrt %169 : vector<2x1xf32>
    %171 = vector.broadcast %170 : vector<2x1xf32> to vector<2x4xf32>
    %172 = arith.mulf %167, %171 : vector<2x4xf32>
    %173 = tpu.concatenate %25, %46, %67, %88, %109, %130, %151, %172 in 1 : vector<2x4xf32>, vector<2x4xf32>, vector<2x4xf32>, vector<2x4xf32>, vector<2x4xf32>, vector<2x4xf32>, vector<2x4xf32>, vector<2x4xf32> -> vector<2x32xf32>
    %174 = vector.broadcast %3 : vector<1x32xf32> to vector<2x32xf32>
    %175 = arith.mulf %173, %174 : vector<2x32xf32>
    %176 = vector.broadcast %4 : vector<1x32xf32> to vector<2x32xf32>
    %177 = arith.addf %175, %176 : vector<2x32xf32>
    %178 = arith.negf %177 : vector<2x32xf32>
    %179 = math.exp %178 : vector<2x32xf32>
    %cst_47 = arith.constant 1.000000e+00 : f32
    %180 = vector.broadcast %cst_47 : f32 to vector<2x32xf32>
    %181 = arith.addf %180, %179 : vector<2x32xf32>
    %182 = arith.divf %180, %181 : vector<2x32xf32>
    %183 = arith.mulf %177, %182 : vector<2x32xf32>
    %c16 = arith.constant 16 : index
    %c0_48 = arith.constant 0 : index
    %184 = vector.load %arg4[%c16, %c0_48] : memref<1000x128xf32, #tpu.memory_space<vmem>>, vector<32x64xf32>
    %cst_49 = arith.constant dense<0.000000e+00> : vector<2x64xf32>
    %185 = tpu.matmul %183, %184, %cst_49 {dimension_numbers = #tpu.dot_dimension_numbers<[1], [0], [0], [1], [0, 0, 1, 1], [], []>} : vector<2x32xf32>, vector<32x64xf32>, vector<2x64xf32> -> vector<2x64xf32>
    %c48 = arith.constant 48 : index
    %c0_50 = arith.constant 0 : index
    %186 = vector.load %arg4[%c48, %c0_50] : memref<1000x128xf32, #tpu.memory_space<vmem>>, vector<1x64xf32>
    %187 = vector.broadcast %186 : vector<1x64xf32> to vector<2x64xf32>
    %188 = arith.addf %185, %187 : vector<2x64xf32>
    %189 = arith.negf %1 : vector<2x32xf32>
    %190 = math.exp %189 : vector<2x32xf32>
    %cst_51 = arith.constant 1.000000e+00 : f32
    %191 = vector.broadcast %cst_51 : f32 to vector<2x32xf32>
    %192 = arith.addf %191, %190 : vector<2x32xf32>
    %193 = arith.divf %191, %192 : vector<2x32xf32>
    %194 = arith.mulf %1, %193 : vector<2x32xf32>
    %c56 = arith.constant 56 : index
    %c0_52 = arith.constant 0 : index
    %195 = vector.load %arg4[%c56, %c0_52] : memref<1000x128xf32, #tpu.memory_space<vmem>>, vector<32x64xf32>
    %cst_53 = arith.constant dense<0.000000e+00> : vector<2x64xf32>
    %196 = tpu.matmul %194, %195, %cst_53 {dimension_numbers = #tpu.dot_dimension_numbers<[1], [0], [0], [1], [0, 0, 1, 1], [], []>} : vector<2x32xf32>, vector<32x64xf32>, vector<2x64xf32> -> vector<2x64xf32>
    %197 = arith.addf %188, %196 : vector<2x64xf32>
    %c88 = arith.constant 88 : index
    %c0_54 = arith.constant 0 : index
    %198 = vector.load %arg4[%c88, %c0_54] : memref<1000x128xf32, #tpu.memory_space<vmem>>, vector<1x64xf32>
    %199 = vector.broadcast %198 : vector<1x64xf32> to vector<2x64xf32>
    %200 = arith.addf %197, %199 : vector<2x64xf32>
    %c96 = arith.constant 96 : index
    %c0_55 = arith.constant 0 : index
    %201 = vector.load %arg4[%c96, %c0_55] : memref<1000x128xf32, #tpu.memory_space<vmem>>, vector<1x64xf32>
    %c104 = arith.constant 104 : index
    %c0_56 = arith.constant 0 : index
    %202 = vector.load %arg4[%c104, %c0_56] : memref<1000x128xf32, #tpu.memory_space<vmem>>, vector<1x64xf32>
    %203 = vector.extract_strided_slice %200 {offsets = [0, 0], sizes = [2, 8], strides = [1, 1]} : vector<2x64xf32> to vector<2x8xf32>
    %cst_57 = arith.constant dense<0.000000e+00> : vector<2xf32>
    %204 = vector.multi_reduction <add>, %203, %cst_57 [1] : vector<2x8xf32> to vector<2xf32>
    %205 = vector.shape_cast %204 : vector<2xf32> to vector<2x1xf32>
    %cst_58 = arith.constant 8.000000e+00 : f32
    %206 = vector.broadcast %cst_58 : f32 to vector<2x1xf32>
    %207 = arith.divf %205, %206 : vector<2x1xf32>
    %208 = vector.broadcast %207 : vector<2x1xf32> to vector<2x8xf32>
    %209 = arith.subf %203, %208 : vector<2x8xf32>
    %210 = vector.broadcast %207 : vector<2x1xf32> to vector<2x8xf32>
    %211 = arith.subf %203, %210 : vector<2x8xf32>
    %212 = arith.mulf %209, %211 : vector<2x8xf32>
    %cst_59 = arith.constant dense<0.000000e+00> : vector<2xf32>
    %213 = vector.multi_reduction <add>, %212, %cst_59 [1] : vector<2x8xf32> to vector<2xf32>
    %214 = vector.shape_cast %213 : vector<2xf32> to vector<2x1xf32>
    %cst_60 = arith.constant 8.000000e+00 : f32
    %215 = vector.broadcast %cst_60 : f32 to vector<2x1xf32>
    %216 = arith.divf %214, %215 : vector<2x1xf32>
    %217 = vector.broadcast %207 : vector<2x1xf32> to vector<2x8xf32>
    %218 = arith.subf %203, %217 : vector<2x8xf32>
    %cst_61 = arith.constant 9.99999997E-7 : f32
    %219 = vector.broadcast %cst_61 : f32 to vector<2x1xf32>
    %220 = arith.addf %216, %219 : vector<2x1xf32>
    %221 = math.rsqrt %220 : vector<2x1xf32>
    %222 = vector.broadcast %221 : vector<2x1xf32> to vector<2x8xf32>
    %223 = arith.mulf %218, %222 : vector<2x8xf32>
    %224 = vector.extract_strided_slice %200 {offsets = [0, 8], sizes = [2, 8], strides = [1, 1]} : vector<2x64xf32> to vector<2x8xf32>
    %cst_62 = arith.constant dense<0.000000e+00> : vector<2xf32>
    %225 = vector.multi_reduction <add>, %224, %cst_62 [1] : vector<2x8xf32> to vector<2xf32>
    %226 = vector.shape_cast %225 : vector<2xf32> to vector<2x1xf32>
    %cst_63 = arith.constant 8.000000e+00 : f32
    %227 = vector.broadcast %cst_63 : f32 to vector<2x1xf32>
    %228 = arith.divf %226, %227 : vector<2x1xf32>
    %229 = vector.broadcast %228 : vector<2x1xf32> to vector<2x8xf32>
    %230 = arith.subf %224, %229 : vector<2x8xf32>
    %231 = vector.broadcast %228 : vector<2x1xf32> to vector<2x8xf32>
    %232 = arith.subf %224, %231 : vector<2x8xf32>
    %233 = arith.mulf %230, %232 : vector<2x8xf32>
    %cst_64 = arith.constant dense<0.000000e+00> : vector<2xf32>
    %234 = vector.multi_reduction <add>, %233, %cst_64 [1] : vector<2x8xf32> to vector<2xf32>
    %235 = vector.shape_cast %234 : vector<2xf32> to vector<2x1xf32>
    %cst_65 = arith.constant 8.000000e+00 : f32
    %236 = vector.broadcast %cst_65 : f32 to vector<2x1xf32>
    %237 = arith.divf %235, %236 : vector<2x1xf32>
    %238 = vector.broadcast %228 : vector<2x1xf32> to vector<2x8xf32>
    %239 = arith.subf %224, %238 : vector<2x8xf32>
    %cst_66 = arith.constant 9.99999997E-7 : f32
    %240 = vector.broadcast %cst_66 : f32 to vector<2x1xf32>
    %241 = arith.addf %237, %240 : vector<2x1xf32>
    %242 = math.rsqrt %241 : vector<2x1xf32>
    %243 = vector.broadcast %242 : vector<2x1xf32> to vector<2x8xf32>
    %244 = arith.mulf %239, %243 : vector<2x8xf32>
    %245 = vector.extract_strided_slice %200 {offsets = [0, 16], sizes = [2, 8], strides = [1, 1]} : vector<2x64xf32> to vector<2x8xf32>
    %cst_67 = arith.constant dense<0.000000e+00> : vector<2xf32>
    %246 = vector.multi_reduction <add>, %245, %cst_67 [1] : vector<2x8xf32> to vector<2xf32>
    %247 = vector.shape_cast %246 : vector<2xf32> to vector<2x1xf32>
    %cst_68 = arith.constant 8.000000e+00 : f32
    %248 = vector.broadcast %cst_68 : f32 to vector<2x1xf32>
    %249 = arith.divf %247, %248 : vector<2x1xf32>
    %250 = vector.broadcast %249 : vector<2x1xf32> to vector<2x8xf32>
    %251 = arith.subf %245, %250 : vector<2x8xf32>
    %252 = vector.broadcast %249 : vector<2x1xf32> to vector<2x8xf32>
    %253 = arith.subf %245, %252 : vector<2x8xf32>
    %254 = arith.mulf %251, %253 : vector<2x8xf32>
    %cst_69 = arith.constant dense<0.000000e+00> : vector<2xf32>
    %255 = vector.multi_reduction <add>, %254, %cst_69 [1] : vector<2x8xf32> to vector<2xf32>
    %256 = vector.shape_cast %255 : vector<2xf32> to vector<2x1xf32>
    %cst_70 = arith.constant 8.000000e+00 : f32
    %257 = vector.broadcast %cst_70 : f32 to vector<2x1xf32>
    %258 = arith.divf %256, %257 : vector<2x1xf32>
    %259 = vector.broadcast %249 : vector<2x1xf32> to vector<2x8xf32>
    %260 = arith.subf %245, %259 : vector<2x8xf32>
    %cst_71 = arith.constant 9.99999997E-7 : f32
    %261 = vector.broadcast %cst_71 : f32 to vector<2x1xf32>
    %262 = arith.addf %258, %261 : vector<2x1xf32>
    %263 = math.rsqrt %262 : vector<2x1xf32>
    %264 = vector.broadcast %263 : vector<2x1xf32> to vector<2x8xf32>
    %265 = arith.mulf %260, %264 : vector<2x8xf32>
    %266 = vector.extract_strided_slice %200 {offsets = [0, 24], sizes = [2, 8], strides = [1, 1]} : vector<2x64xf32> to vector<2x8xf32>
    %cst_72 = arith.constant dense<0.000000e+00> : vector<2xf32>
    %267 = vector.multi_reduction <add>, %266, %cst_72 [1] : vector<2x8xf32> to vector<2xf32>
    %268 = vector.shape_cast %267 : vector<2xf32> to vector<2x1xf32>
    %cst_73 = arith.constant 8.000000e+00 : f32
    %269 = vector.broadcast %cst_73 : f32 to vector<2x1xf32>
    %270 = arith.divf %268, %269 : vector<2x1xf32>
    %271 = vector.broadcast %270 : vector<2x1xf32> to vector<2x8xf32>
    %272 = arith.subf %266, %271 : vector<2x8xf32>
    %273 = vector.broadcast %270 : vector<2x1xf32> to vector<2x8xf32>
    %274 = arith.subf %266, %273 : vector<2x8xf32>
    %275 = arith.mulf %272, %274 : vector<2x8xf32>
    %cst_74 = arith.constant dense<0.000000e+00> : vector<2xf32>
    %276 = vector.multi_reduction <add>, %275, %cst_74 [1] : vector<2x8xf32> to vector<2xf32>
    %277 = vector.shape_cast %276 : vector<2xf32> to vector<2x1xf32>
    %cst_75 = arith.constant 8.000000e+00 : f32
    %278 = vector.broadcast %cst_75 : f32 to vector<2x1xf32>
    %279 = arith.divf %277, %278 : vector<2x1xf32>
    %280 = vector.broadcast %270 : vector<2x1xf32> to vector<2x8xf32>
    %281 = arith.subf %266, %280 : vector<2x8xf32>
    %cst_76 = arith.constant 9.99999997E-7 : f32
    %282 = vector.broadcast %cst_76 : f32 to vector<2x1xf32>
    %283 = arith.addf %279, %282 : vector<2x1xf32>
    %284 = math.rsqrt %283 : vector<2x1xf32>
    %285 = vector.broadcast %284 : vector<2x1xf32> to vector<2x8xf32>
    %286 = arith.mulf %281, %285 : vector<2x8xf32>
    %287 = vector.extract_strided_slice %200 {offsets = [0, 32], sizes = [2, 8], strides = [1, 1]} : vector<2x64xf32> to vector<2x8xf32>
    %cst_77 = arith.constant dense<0.000000e+00> : vector<2xf32>
    %288 = vector.multi_reduction <add>, %287, %cst_77 [1] : vector<2x8xf32> to vector<2xf32>
    %289 = vector.shape_cast %288 : vector<2xf32> to vector<2x1xf32>
    %cst_78 = arith.constant 8.000000e+00 : f32
    %290 = vector.broadcast %cst_78 : f32 to vector<2x1xf32>
    %291 = arith.divf %289, %290 : vector<2x1xf32>
    %292 = vector.broadcast %291 : vector<2x1xf32> to vector<2x8xf32>
    %293 = arith.subf %287, %292 : vector<2x8xf32>
    %294 = vector.broadcast %291 : vector<2x1xf32> to vector<2x8xf32>
    %295 = arith.subf %287, %294 : vector<2x8xf32>
    %296 = arith.mulf %293, %295 : vector<2x8xf32>
    %cst_79 = arith.constant dense<0.000000e+00> : vector<2xf32>
    %297 = vector.multi_reduction <add>, %296, %cst_79 [1] : vector<2x8xf32> to vector<2xf32>
    %298 = vector.shape_cast %297 : vector<2xf32> to vector<2x1xf32>
    %cst_80 = arith.constant 8.000000e+00 : f32
    %299 = vector.broadcast %cst_80 : f32 to vector<2x1xf32>
    %300 = arith.divf %298, %299 : vector<2x1xf32>
    %301 = vector.broadcast %291 : vector<2x1xf32> to vector<2x8xf32>
    %302 = arith.subf %287, %301 : vector<2x8xf32>
    %cst_81 = arith.constant 9.99999997E-7 : f32
    %303 = vector.broadcast %cst_81 : f32 to vector<2x1xf32>
    %304 = arith.addf %300, %303 : vector<2x1xf32>
    %305 = math.rsqrt %304 : vector<2x1xf32>
    %306 = vector.broadcast %305 : vector<2x1xf32> to vector<2x8xf32>
    %307 = arith.mulf %302, %306 : vector<2x8xf32>
    %308 = vector.extract_strided_slice %200 {offsets = [0, 40], sizes = [2, 8], strides = [1, 1]} : vector<2x64xf32> to vector<2x8xf32>
    %cst_82 = arith.constant dense<0.000000e+00> : vector<2xf32>
    %309 = vector.multi_reduction <add>, %308, %cst_82 [1] : vector<2x8xf32> to vector<2xf32>
    %310 = vector.shape_cast %309 : vector<2xf32> to vector<2x1xf32>
    %cst_83 = arith.constant 8.000000e+00 : f32
    %311 = vector.broadcast %cst_83 : f32 to vector<2x1xf32>
    %312 = arith.divf %310, %311 : vector<2x1xf32>
    %313 = vector.broadcast %312 : vector<2x1xf32> to vector<2x8xf32>
    %314 = arith.subf %308, %313 : vector<2x8xf32>
    %315 = vector.broadcast %312 : vector<2x1xf32> to vector<2x8xf32>
    %316 = arith.subf %308, %315 : vector<2x8xf32>
    %317 = arith.mulf %314, %316 : vector<2x8xf32>
    %cst_84 = arith.constant dense<0.000000e+00> : vector<2xf32>
    %318 = vector.multi_reduction <add>, %317, %cst_84 [1] : vector<2x8xf32> to vector<2xf32>
    %319 = vector.shape_cast %318 : vector<2xf32> to vector<2x1xf32>
    %cst_85 = arith.constant 8.000000e+00 : f32
    %320 = vector.broadcast %cst_85 : f32 to vector<2x1xf32>
    %321 = arith.divf %319, %320 : vector<2x1xf32>
    %322 = vector.broadcast %312 : vector<2x1xf32> to vector<2x8xf32>
    %323 = arith.subf %308, %322 : vector<2x8xf32>
    %cst_86 = arith.constant 9.99999997E-7 : f32
    %324 = vector.broadcast %cst_86 : f32 to vector<2x1xf32>
    %325 = arith.addf %321, %324 : vector<2x1xf32>
    %326 = math.rsqrt %325 : vector<2x1xf32>
    %327 = vector.broadcast %326 : vector<2x1xf32> to vector<2x8xf32>
    %328 = arith.mulf %323, %327 : vector<2x8xf32>
    %329 = vector.extract_strided_slice %200 {offsets = [0, 48], sizes = [2, 8], strides = [1, 1]} : vector<2x64xf32> to vector<2x8xf32>
    %cst_87 = arith.constant dense<0.000000e+00> : vector<2xf32>
    %330 = vector.multi_reduction <add>, %329, %cst_87 [1] : vector<2x8xf32> to vector<2xf32>
    %331 = vector.shape_cast %330 : vector<2xf32> to vector<2x1xf32>
    %cst_88 = arith.constant 8.000000e+00 : f32
    %332 = vector.broadcast %cst_88 : f32 to vector<2x1xf32>
    %333 = arith.divf %331, %332 : vector<2x1xf32>
    %334 = vector.broadcast %333 : vector<2x1xf32> to vector<2x8xf32>
    %335 = arith.subf %329, %334 : vector<2x8xf32>
    %336 = vector.broadcast %333 : vector<2x1xf32> to vector<2x8xf32>
    %337 = arith.subf %329, %336 : vector<2x8xf32>
    %338 = arith.mulf %335, %337 : vector<2x8xf32>
    %cst_89 = arith.constant dense<0.000000e+00> : vector<2xf32>
    %339 = vector.multi_reduction <add>, %338, %cst_89 [1] : vector<2x8xf32> to vector<2xf32>
    %340 = vector.shape_cast %339 : vector<2xf32> to vector<2x1xf32>
    %cst_90 = arith.constant 8.000000e+00 : f32
    %341 = vector.broadcast %cst_90 : f32 to vector<2x1xf32>
    %342 = arith.divf %340, %341 : vector<2x1xf32>
    %343 = vector.broadcast %333 : vector<2x1xf32> to vector<2x8xf32>
    %344 = arith.subf %329, %343 : vector<2x8xf32>
    %cst_91 = arith.constant 9.99999997E-7 : f32
    %345 = vector.broadcast %cst_91 : f32 to vector<2x1xf32>
    %346 = arith.addf %342, %345 : vector<2x1xf32>
    %347 = math.rsqrt %346 : vector<2x1xf32>
    %348 = vector.broadcast %347 : vector<2x1xf32> to vector<2x8xf32>
    %349 = arith.mulf %344, %348 : vector<2x8xf32>
    %350 = vector.extract_strided_slice %200 {offsets = [0, 56], sizes = [2, 8], strides = [1, 1]} : vector<2x64xf32> to vector<2x8xf32>
    %cst_92 = arith.constant dense<0.000000e+00> : vector<2xf32>
    %351 = vector.multi_reduction <add>, %350, %cst_92 [1] : vector<2x8xf32> to vector<2xf32>
    %352 = vector.shape_cast %351 : vector<2xf32> to vector<2x1xf32>
    %cst_93 = arith.constant 8.000000e+00 : f32
    %353 = vector.broadcast %cst_93 : f32 to vector<2x1xf32>
    %354 = arith.divf %352, %353 : vector<2x1xf32>
    %355 = vector.broadcast %354 : vector<2x1xf32> to vector<2x8xf32>
    %356 = arith.subf %350, %355 : vector<2x8xf32>
    %357 = vector.broadcast %354 : vector<2x1xf32> to vector<2x8xf32>
    %358 = arith.subf %350, %357 : vector<2x8xf32>
    %359 = arith.mulf %356, %358 : vector<2x8xf32>
    %cst_94 = arith.constant dense<0.000000e+00> : vector<2xf32>
    %360 = vector.multi_reduction <add>, %359, %cst_94 [1] : vector<2x8xf32> to vector<2xf32>
    %361 = vector.shape_cast %360 : vector<2xf32> to vector<2x1xf32>
    %cst_95 = arith.constant 8.000000e+00 : f32
    %362 = vector.broadcast %cst_95 : f32 to vector<2x1xf32>
    %363 = arith.divf %361, %362 : vector<2x1xf32>
    %364 = vector.broadcast %354 : vector<2x1xf32> to vector<2x8xf32>
    %365 = arith.subf %350, %364 : vector<2x8xf32>
    %cst_96 = arith.constant 9.99999997E-7 : f32
    %366 = vector.broadcast %cst_96 : f32 to vector<2x1xf32>
    %367 = arith.addf %363, %366 : vector<2x1xf32>
    %368 = math.rsqrt %367 : vector<2x1xf32>
    %369 = vector.broadcast %368 : vector<2x1xf32> to vector<2x8xf32>
    %370 = arith.mulf %365, %369 : vector<2x8xf32>
    %371 = tpu.concatenate %223, %244, %265, %286, %307, %328, %349, %370 in 1 : vector<2x8xf32>, vector<2x8xf32>, vector<2x8xf32>, vector<2x8xf32>, vector<2x8xf32>, vector<2x8xf32>, vector<2x8xf32>, vector<2x8xf32> -> vector<2x64xf32>
    %372 = vector.broadcast %201 : vector<1x64xf32> to vector<2x64xf32>
    %373 = arith.mulf %371, %372 : vector<2x64xf32>
    %374 = vector.broadcast %202 : vector<1x64xf32> to vector<2x64xf32>
    %375 = arith.addf %373, %374 : vector<2x64xf32>
    %376 = arith.negf %375 : vector<2x64xf32>
    %377 = math.exp %376 : vector<2x64xf32>
    %cst_97 = arith.constant 1.000000e+00 : f32
    %378 = vector.broadcast %cst_97 : f32 to vector<2x64xf32>
    %379 = arith.addf %378, %377 : vector<2x64xf32>
    %380 = arith.divf %378, %379 : vector<2x64xf32>
    %381 = arith.mulf %375, %380 : vector<2x64xf32>
    %c112 = arith.constant 112 : index
    %c0_98 = arith.constant 0 : index
    %382 = vector.load %arg4[%c112, %c0_98] : memref<1000x128xf32, #tpu.memory_space<vmem>>, vector<64x64xf32>
    %cst_99 = arith.constant dense<0.000000e+00> : vector<2x64xf32>
    %383 = tpu.matmul %381, %382, %cst_99 {dimension_numbers = #tpu.dot_dimension_numbers<[1], [0], [0], [1], [0, 0, 1, 1], [], []>} : vector<2x64xf32>, vector<64x64xf32>, vector<2x64xf32> -> vector<2x64xf32>
    %c176 = arith.constant 176 : index
    %c0_100 = arith.constant 0 : index
    %384 = vector.load %arg4[%c176, %c0_100] : memref<1000x128xf32, #tpu.memory_space<vmem>>, vector<1x64xf32>
    %385 = vector.broadcast %384 : vector<1x64xf32> to vector<2x64xf32>
    %386 = arith.addf %383, %385 : vector<2x64xf32>
    %c184 = arith.constant 184 : index
    %c0_101 = arith.constant 0 : index
    %387 = vector.load %arg4[%c184, %c0_101] : memref<1000x128xf32, #tpu.memory_space<vmem>>, vector<32x64xf32>
    %cst_102 = arith.constant dense<0.000000e+00> : vector<2x64xf32>
    %388 = tpu.matmul %0, %387, %cst_102 {dimension_numbers = #tpu.dot_dimension_numbers<[1], [0], [0], [1], [0, 0, 1, 1], [], []>} : vector<2x32xf32>, vector<32x64xf32>, vector<2x64xf32> -> vector<2x64xf32>
    %c216 = arith.constant 216 : index
    %c0_103 = arith.constant 0 : index
    %389 = vector.load %arg4[%c216, %c0_103] : memref<1000x128xf32, #tpu.memory_space<vmem>>, vector<1x64xf32>
    %390 = vector.broadcast %389 : vector<1x64xf32> to vector<2x64xf32>
    %391 = arith.addf %388, %390 : vector<2x64xf32>
    %392 = arith.addf %391, %386 : vector<2x64xf32>
    %c224 = arith.constant 224 : index
    %c0_104 = arith.constant 0 : index
    %393 = vector.load %arg4[%c224, %c0_104] : memref<1000x128xf32, #tpu.memory_space<vmem>>, vector<1x64xf32>
    %c232 = arith.constant 232 : index
    %c0_105 = arith.constant 0 : index
    %394 = vector.load %arg4[%c232, %c0_105] : memref<1000x128xf32, #tpu.memory_space<vmem>>, vector<1x64xf32>
    %395 = vector.extract_strided_slice %392 {offsets = [0, 0], sizes = [2, 8], strides = [1, 1]} : vector<2x64xf32> to vector<2x8xf32>
    %cst_106 = arith.constant dense<0.000000e+00> : vector<2xf32>
    %396 = vector.multi_reduction <add>, %395, %cst_106 [1] : vector<2x8xf32> to vector<2xf32>
    %397 = vector.shape_cast %396 : vector<2xf32> to vector<2x1xf32>
    %cst_107 = arith.constant 8.000000e+00 : f32
    %398 = vector.broadcast %cst_107 : f32 to vector<2x1xf32>
    %399 = arith.divf %397, %398 : vector<2x1xf32>
    %400 = vector.broadcast %399 : vector<2x1xf32> to vector<2x8xf32>
    %401 = arith.subf %395, %400 : vector<2x8xf32>
    %402 = vector.broadcast %399 : vector<2x1xf32> to vector<2x8xf32>
    %403 = arith.subf %395, %402 : vector<2x8xf32>
    %404 = arith.mulf %401, %403 : vector<2x8xf32>
    %cst_108 = arith.constant dense<0.000000e+00> : vector<2xf32>
    %405 = vector.multi_reduction <add>, %404, %cst_108 [1] : vector<2x8xf32> to vector<2xf32>
    %406 = vector.shape_cast %405 : vector<2xf32> to vector<2x1xf32>
    %cst_109 = arith.constant 8.000000e+00 : f32
    %407 = vector.broadcast %cst_109 : f32 to vector<2x1xf32>
    %408 = arith.divf %406, %407 : vector<2x1xf32>
    %409 = vector.broadcast %399 : vector<2x1xf32> to vector<2x8xf32>
    %410 = arith.subf %395, %409 : vector<2x8xf32>
    %cst_110 = arith.constant 9.99999997E-7 : f32
    %411 = vector.broadcast %cst_110 : f32 to vector<2x1xf32>
    %412 = arith.addf %408, %411 : vector<2x1xf32>
    %413 = math.rsqrt %412 : vector<2x1xf32>
    %414 = vector.broadcast %413 : vector<2x1xf32> to vector<2x8xf32>
    %415 = arith.mulf %410, %414 : vector<2x8xf32>
    %416 = vector.extract_strided_slice %392 {offsets = [0, 8], sizes = [2, 8], strides = [1, 1]} : vector<2x64xf32> to vector<2x8xf32>
    %cst_111 = arith.constant dense<0.000000e+00> : vector<2xf32>
    %417 = vector.multi_reduction <add>, %416, %cst_111 [1] : vector<2x8xf32> to vector<2xf32>
    %418 = vector.shape_cast %417 : vector<2xf32> to vector<2x1xf32>
    %cst_112 = arith.constant 8.000000e+00 : f32
    %419 = vector.broadcast %cst_112 : f32 to vector<2x1xf32>
    %420 = arith.divf %418, %419 : vector<2x1xf32>
    %421 = vector.broadcast %420 : vector<2x1xf32> to vector<2x8xf32>
    %422 = arith.subf %416, %421 : vector<2x8xf32>
    %423 = vector.broadcast %420 : vector<2x1xf32> to vector<2x8xf32>
    %424 = arith.subf %416, %423 : vector<2x8xf32>
    %425 = arith.mulf %422, %424 : vector<2x8xf32>
    %cst_113 = arith.constant dense<0.000000e+00> : vector<2xf32>
    %426 = vector.multi_reduction <add>, %425, %cst_113 [1] : vector<2x8xf32> to vector<2xf32>
    %427 = vector.shape_cast %426 : vector<2xf32> to vector<2x1xf32>
    %cst_114 = arith.constant 8.000000e+00 : f32
    %428 = vector.broadcast %cst_114 : f32 to vector<2x1xf32>
    %429 = arith.divf %427, %428 : vector<2x1xf32>
    %430 = vector.broadcast %420 : vector<2x1xf32> to vector<2x8xf32>
    %431 = arith.subf %416, %430 : vector<2x8xf32>
    %cst_115 = arith.constant 9.99999997E-7 : f32
    %432 = vector.broadcast %cst_115 : f32 to vector<2x1xf32>
    %433 = arith.addf %429, %432 : vector<2x1xf32>
    %434 = math.rsqrt %433 : vector<2x1xf32>
    %435 = vector.broadcast %434 : vector<2x1xf32> to vector<2x8xf32>
    %436 = arith.mulf %431, %435 : vector<2x8xf32>
    %437 = vector.extract_strided_slice %392 {offsets = [0, 16], sizes = [2, 8], strides = [1, 1]} : vector<2x64xf32> to vector<2x8xf32>
    %cst_116 = arith.constant dense<0.000000e+00> : vector<2xf32>
    %438 = vector.multi_reduction <add>, %437, %cst_116 [1] : vector<2x8xf32> to vector<2xf32>
    %439 = vector.shape_cast %438 : vector<2xf32> to vector<2x1xf32>
    %cst_117 = arith.constant 8.000000e+00 : f32
    %440 = vector.broadcast %cst_117 : f32 to vector<2x1xf32>
    %441 = arith.divf %439, %440 : vector<2x1xf32>
    %442 = vector.broadcast %441 : vector<2x1xf32> to vector<2x8xf32>
    %443 = arith.subf %437, %442 : vector<2x8xf32>
    %444 = vector.broadcast %441 : vector<2x1xf32> to vector<2x8xf32>
    %445 = arith.subf %437, %444 : vector<2x8xf32>
    %446 = arith.mulf %443, %445 : vector<2x8xf32>
    %cst_118 = arith.constant dense<0.000000e+00> : vector<2xf32>
    %447 = vector.multi_reduction <add>, %446, %cst_118 [1] : vector<2x8xf32> to vector<2xf32>
    %448 = vector.shape_cast %447 : vector<2xf32> to vector<2x1xf32>
    %cst_119 = arith.constant 8.000000e+00 : f32
    %449 = vector.broadcast %cst_119 : f32 to vector<2x1xf32>
    %450 = arith.divf %448, %449 : vector<2x1xf32>
    %451 = vector.broadcast %441 : vector<2x1xf32> to vector<2x8xf32>
    %452 = arith.subf %437, %451 : vector<2x8xf32>
    %cst_120 = arith.constant 9.99999997E-7 : f32
    %453 = vector.broadcast %cst_120 : f32 to vector<2x1xf32>
    %454 = arith.addf %450, %453 : vector<2x1xf32>
    %455 = math.rsqrt %454 : vector<2x1xf32>
    %456 = vector.broadcast %455 : vector<2x1xf32> to vector<2x8xf32>
    %457 = arith.mulf %452, %456 : vector<2x8xf32>
    %458 = vector.extract_strided_slice %392 {offsets = [0, 24], sizes = [2, 8], strides = [1, 1]} : vector<2x64xf32> to vector<2x8xf32>
    %cst_121 = arith.constant dense<0.000000e+00> : vector<2xf32>
    %459 = vector.multi_reduction <add>, %458, %cst_121 [1] : vector<2x8xf32> to vector<2xf32>
    %460 = vector.shape_cast %459 : vector<2xf32> to vector<2x1xf32>
    %cst_122 = arith.constant 8.000000e+00 : f32
    %461 = vector.broadcast %cst_122 : f32 to vector<2x1xf32>
    %462 = arith.divf %460, %461 : vector<2x1xf32>
    %463 = vector.broadcast %462 : vector<2x1xf32> to vector<2x8xf32>
    %464 = arith.subf %458, %463 : vector<2x8xf32>
    %465 = vector.broadcast %462 : vector<2x1xf32> to vector<2x8xf32>
    %466 = arith.subf %458, %465 : vector<2x8xf32>
    %467 = arith.mulf %464, %466 : vector<2x8xf32>
    %cst_123 = arith.constant dense<0.000000e+00> : vector<2xf32>
    %468 = vector.multi_reduction <add>, %467, %cst_123 [1] : vector<2x8xf32> to vector<2xf32>
    %469 = vector.shape_cast %468 : vector<2xf32> to vector<2x1xf32>
    %cst_124 = arith.constant 8.000000e+00 : f32
    %470 = vector.broadcast %cst_124 : f32 to vector<2x1xf32>
    %471 = arith.divf %469, %470 : vector<2x1xf32>
    %472 = vector.broadcast %462 : vector<2x1xf32> to vector<2x8xf32>
    %473 = arith.subf %458, %472 : vector<2x8xf32>
    %cst_125 = arith.constant 9.99999997E-7 : f32
    %474 = vector.broadcast %cst_125 : f32 to vector<2x1xf32>
    %475 = arith.addf %471, %474 : vector<2x1xf32>
    %476 = math.rsqrt %475 : vector<2x1xf32>
    %477 = vector.broadcast %476 : vector<2x1xf32> to vector<2x8xf32>
    %478 = arith.mulf %473, %477 : vector<2x8xf32>
    %479 = vector.extract_strided_slice %392 {offsets = [0, 32], sizes = [2, 8], strides = [1, 1]} : vector<2x64xf32> to vector<2x8xf32>
    %cst_126 = arith.constant dense<0.000000e+00> : vector<2xf32>
    %480 = vector.multi_reduction <add>, %479, %cst_126 [1] : vector<2x8xf32> to vector<2xf32>
    %481 = vector.shape_cast %480 : vector<2xf32> to vector<2x1xf32>
    %cst_127 = arith.constant 8.000000e+00 : f32
    %482 = vector.broadcast %cst_127 : f32 to vector<2x1xf32>
    %483 = arith.divf %481, %482 : vector<2x1xf32>
    %484 = vector.broadcast %483 : vector<2x1xf32> to vector<2x8xf32>
    %485 = arith.subf %479, %484 : vector<2x8xf32>
    %486 = vector.broadcast %483 : vector<2x1xf32> to vector<2x8xf32>
    %487 = arith.subf %479, %486 : vector<2x8xf32>
    %488 = arith.mulf %485, %487 : vector<2x8xf32>
    %cst_128 = arith.constant dense<0.000000e+00> : vector<2xf32>
    %489 = vector.multi_reduction <add>, %488, %cst_128 [1] : vector<2x8xf32> to vector<2xf32>
    %490 = vector.shape_cast %489 : vector<2xf32> to vector<2x1xf32>
    %cst_129 = arith.constant 8.000000e+00 : f32
    %491 = vector.broadcast %cst_129 : f32 to vector<2x1xf32>
    %492 = arith.divf %490, %491 : vector<2x1xf32>
    %493 = vector.broadcast %483 : vector<2x1xf32> to vector<2x8xf32>
    %494 = arith.subf %479, %493 : vector<2x8xf32>
    %cst_130 = arith.constant 9.99999997E-7 : f32
    %495 = vector.broadcast %cst_130 : f32 to vector<2x1xf32>
    %496 = arith.addf %492, %495 : vector<2x1xf32>
    %497 = math.rsqrt %496 : vector<2x1xf32>
    %498 = vector.broadcast %497 : vector<2x1xf32> to vector<2x8xf32>
    %499 = arith.mulf %494, %498 : vector<2x8xf32>
    %500 = vector.extract_strided_slice %392 {offsets = [0, 40], sizes = [2, 8], strides = [1, 1]} : vector<2x64xf32> to vector<2x8xf32>
    %cst_131 = arith.constant dense<0.000000e+00> : vector<2xf32>
    %501 = vector.multi_reduction <add>, %500, %cst_131 [1] : vector<2x8xf32> to vector<2xf32>
    %502 = vector.shape_cast %501 : vector<2xf32> to vector<2x1xf32>
    %cst_132 = arith.constant 8.000000e+00 : f32
    %503 = vector.broadcast %cst_132 : f32 to vector<2x1xf32>
    %504 = arith.divf %502, %503 : vector<2x1xf32>
    %505 = vector.broadcast %504 : vector<2x1xf32> to vector<2x8xf32>
    %506 = arith.subf %500, %505 : vector<2x8xf32>
    %507 = vector.broadcast %504 : vector<2x1xf32> to vector<2x8xf32>
    %508 = arith.subf %500, %507 : vector<2x8xf32>
    %509 = arith.mulf %506, %508 : vector<2x8xf32>
    %cst_133 = arith.constant dense<0.000000e+00> : vector<2xf32>
    %510 = vector.multi_reduction <add>, %509, %cst_133 [1] : vector<2x8xf32> to vector<2xf32>
    %511 = vector.shape_cast %510 : vector<2xf32> to vector<2x1xf32>
    %cst_134 = arith.constant 8.000000e+00 : f32
    %512 = vector.broadcast %cst_134 : f32 to vector<2x1xf32>
    %513 = arith.divf %511, %512 : vector<2x1xf32>
    %514 = vector.broadcast %504 : vector<2x1xf32> to vector<2x8xf32>
    %515 = arith.subf %500, %514 : vector<2x8xf32>
    %cst_135 = arith.constant 9.99999997E-7 : f32
    %516 = vector.broadcast %cst_135 : f32 to vector<2x1xf32>
    %517 = arith.addf %513, %516 : vector<2x1xf32>
    %518 = math.rsqrt %517 : vector<2x1xf32>
    %519 = vector.broadcast %518 : vector<2x1xf32> to vector<2x8xf32>
    %520 = arith.mulf %515, %519 : vector<2x8xf32>
    %521 = vector.extract_strided_slice %392 {offsets = [0, 48], sizes = [2, 8], strides = [1, 1]} : vector<2x64xf32> to vector<2x8xf32>
    %cst_136 = arith.constant dense<0.000000e+00> : vector<2xf32>
    %522 = vector.multi_reduction <add>, %521, %cst_136 [1] : vector<2x8xf32> to vector<2xf32>
    %523 = vector.shape_cast %522 : vector<2xf32> to vector<2x1xf32>
    %cst_137 = arith.constant 8.000000e+00 : f32
    %524 = vector.broadcast %cst_137 : f32 to vector<2x1xf32>
    %525 = arith.divf %523, %524 : vector<2x1xf32>
    %526 = vector.broadcast %525 : vector<2x1xf32> to vector<2x8xf32>
    %527 = arith.subf %521, %526 : vector<2x8xf32>
    %528 = vector.broadcast %525 : vector<2x1xf32> to vector<2x8xf32>
    %529 = arith.subf %521, %528 : vector<2x8xf32>
    %530 = arith.mulf %527, %529 : vector<2x8xf32>
    %cst_138 = arith.constant dense<0.000000e+00> : vector<2xf32>
    %531 = vector.multi_reduction <add>, %530, %cst_138 [1] : vector<2x8xf32> to vector<2xf32>
    %532 = vector.shape_cast %531 : vector<2xf32> to vector<2x1xf32>
    %cst_139 = arith.constant 8.000000e+00 : f32
    %533 = vector.broadcast %cst_139 : f32 to vector<2x1xf32>
    %534 = arith.divf %532, %533 : vector<2x1xf32>
    %535 = vector.broadcast %525 : vector<2x1xf32> to vector<2x8xf32>
    %536 = arith.subf %521, %535 : vector<2x8xf32>
    %cst_140 = arith.constant 9.99999997E-7 : f32
    %537 = vector.broadcast %cst_140 : f32 to vector<2x1xf32>
    %538 = arith.addf %534, %537 : vector<2x1xf32>
    %539 = math.rsqrt %538 : vector<2x1xf32>
    %540 = vector.broadcast %539 : vector<2x1xf32> to vector<2x8xf32>
    %541 = arith.mulf %536, %540 : vector<2x8xf32>
    %542 = vector.extract_strided_slice %392 {offsets = [0, 56], sizes = [2, 8], strides = [1, 1]} : vector<2x64xf32> to vector<2x8xf32>
    %cst_141 = arith.constant dense<0.000000e+00> : vector<2xf32>
    %543 = vector.multi_reduction <add>, %542, %cst_141 [1] : vector<2x8xf32> to vector<2xf32>
    %544 = vector.shape_cast %543 : vector<2xf32> to vector<2x1xf32>
    %cst_142 = arith.constant 8.000000e+00 : f32
    %545 = vector.broadcast %cst_142 : f32 to vector<2x1xf32>
    %546 = arith.divf %544, %545 : vector<2x1xf32>
    %547 = vector.broadcast %546 : vector<2x1xf32> to vector<2x8xf32>
    %548 = arith.subf %542, %547 : vector<2x8xf32>
    %549 = vector.broadcast %546 : vector<2x1xf32> to vector<2x8xf32>
    %550 = arith.subf %542, %549 : vector<2x8xf32>
    %551 = arith.mulf %548, %550 : vector<2x8xf32>
    %cst_143 = arith.constant dense<0.000000e+00> : vector<2xf32>
    %552 = vector.multi_reduction <add>, %551, %cst_143 [1] : vector<2x8xf32> to vector<2xf32>
    %553 = vector.shape_cast %552 : vector<2xf32> to vector<2x1xf32>
    %cst_144 = arith.constant 8.000000e+00 : f32
    %554 = vector.broadcast %cst_144 : f32 to vector<2x1xf32>
    %555 = arith.divf %553, %554 : vector<2x1xf32>
    %556 = vector.broadcast %546 : vector<2x1xf32> to vector<2x8xf32>
    %557 = arith.subf %542, %556 : vector<2x8xf32>
    %cst_145 = arith.constant 9.99999997E-7 : f32
    %558 = vector.broadcast %cst_145 : f32 to vector<2x1xf32>
    %559 = arith.addf %555, %558 : vector<2x1xf32>
    %560 = math.rsqrt %559 : vector<2x1xf32>
    %561 = vector.broadcast %560 : vector<2x1xf32> to vector<2x8xf32>
    %562 = arith.mulf %557, %561 : vector<2x8xf32>
    %563 = tpu.concatenate %415, %436, %457, %478, %499, %520, %541, %562 in 1 : vector<2x8xf32>, vector<2x8xf32>, vector<2x8xf32>, vector<2x8xf32>, vector<2x8xf32>, vector<2x8xf32>, vector<2x8xf32>, vector<2x8xf32> -> vector<2x64xf32>
    %564 = vector.broadcast %393 : vector<1x64xf32> to vector<2x64xf32>
    %565 = arith.mulf %563, %564 : vector<2x64xf32>
    %566 = vector.broadcast %394 : vector<1x64xf32> to vector<2x64xf32>
    %567 = arith.addf %565, %566 : vector<2x64xf32>
    %c240 = arith.constant 240 : index
    %c0_146 = arith.constant 0 : index
    %568 = vector.load %arg4[%c240, %c0_146] : memref<1000x128xf32, #tpu.memory_space<vmem>>, vector<256x16xf32>
    %c496 = arith.constant 496 : index
    %c0_147 = arith.constant 0 : index
    %569 = vector.load %arg4[%c496, %c0_147] : memref<1000x128xf32, #tpu.memory_space<vmem>>, vector<1x16xf32>
    %570 = vector.extract_strided_slice %568 {offsets = [0, 0], sizes = [64, 16], strides = [1, 1]} : vector<256x16xf32> to vector<64x16xf32>
    %cst_148 = arith.constant dense<0.000000e+00> : vector<2x16xf32>
    %571 = tpu.matmul %567, %570, %cst_148 {dimension_numbers = #tpu.dot_dimension_numbers<[1], [0], [0], [1], [0, 0, 1, 1], [], []>} : vector<2x64xf32>, vector<64x16xf32>, vector<2x16xf32> -> vector<2x16xf32>
    %572 = vector.broadcast %569 : vector<1x16xf32> to vector<2x16xf32>
    %573 = arith.addf %571, %572 : vector<2x16xf32>
    %574 = vector.extract_strided_slice %568 {offsets = [64, 0], sizes = [64, 16], strides = [1, 1]} : vector<256x16xf32> to vector<64x16xf32>
    %cst_149 = arith.constant dense<0.000000e+00> : vector<2x16xf32>
    %575 = tpu.matmul %567, %574, %cst_149 {dimension_numbers = #tpu.dot_dimension_numbers<[1], [0], [0], [1], [0, 0, 1, 1], [], []>} : vector<2x64xf32>, vector<64x16xf32>, vector<2x16xf32> -> vector<2x16xf32>
    %576 = vector.broadcast %569 : vector<1x16xf32> to vector<2x16xf32>
    %577 = arith.addf %575, %576 : vector<2x16xf32>
    %578 = vector.extract_strided_slice %568 {offsets = [128, 0], sizes = [64, 16], strides = [1, 1]} : vector<256x16xf32> to vector<64x16xf32>
    %cst_150 = arith.constant dense<0.000000e+00> : vector<2x16xf32>
    %579 = tpu.matmul %567, %578, %cst_150 {dimension_numbers = #tpu.dot_dimension_numbers<[1], [0], [0], [1], [0, 0, 1, 1], [], []>} : vector<2x64xf32>, vector<64x16xf32>, vector<2x16xf32> -> vector<2x16xf32>
    %580 = vector.broadcast %569 : vector<1x16xf32> to vector<2x16xf32>
    %581 = arith.addf %579, %580 : vector<2x16xf32>
    %582 = vector.extract_strided_slice %568 {offsets = [192, 0], sizes = [64, 16], strides = [1, 1]} : vector<256x16xf32> to vector<64x16xf32>
    %cst_151 = arith.constant dense<0.000000e+00> : vector<2x16xf32>
    %583 = tpu.matmul %567, %582, %cst_151 {dimension_numbers = #tpu.dot_dimension_numbers<[1], [0], [0], [1], [0, 0, 1, 1], [], []>} : vector<2x64xf32>, vector<64x16xf32>, vector<2x16xf32> -> vector<2x16xf32>
    %584 = vector.broadcast %569 : vector<1x16xf32> to vector<2x16xf32>
    %585 = arith.addf %583, %584 : vector<2x16xf32>
    %586 = tpu.concatenate %573, %577, %581, %585 in 0 : vector<2x16xf32>, vector<2x16xf32>, vector<2x16xf32>, vector<2x16xf32> -> vector<8x16xf32>
    %c504 = arith.constant 504 : index
    %c0_152 = arith.constant 0 : index
    %587 = vector.load %arg4[%c504, %c0_152] : memref<1000x128xf32, #tpu.memory_space<vmem>>, vector<1x16xf32>
    %c512 = arith.constant 512 : index
    %c0_153 = arith.constant 0 : index
    %588 = vector.load %arg4[%c512, %c0_153] : memref<1000x128xf32, #tpu.memory_space<vmem>>, vector<1x16xf32>
    %cst_154 = arith.constant dense<0.000000e+00> : vector<8xf32>
    %589 = vector.multi_reduction <add>, %586, %cst_154 [1] : vector<8x16xf32> to vector<8xf32>
    %590 = vector.shape_cast %589 : vector<8xf32> to vector<8x1xf32>
    %cst_155 = arith.constant 1.600000e+01 : f32
    %591 = vector.broadcast %cst_155 : f32 to vector<8x1xf32>
    %592 = arith.divf %590, %591 : vector<8x1xf32>
    %593 = vector.broadcast %592 : vector<8x1xf32> to vector<8x16xf32>
    %594 = arith.subf %586, %593 : vector<8x16xf32>
    %595 = vector.broadcast %592 : vector<8x1xf32> to vector<8x16xf32>
    %596 = arith.subf %586, %595 : vector<8x16xf32>
    %597 = arith.mulf %594, %596 : vector<8x16xf32>
    %cst_156 = arith.constant dense<0.000000e+00> : vector<8xf32>
    %598 = vector.multi_reduction <add>, %597, %cst_156 [1] : vector<8x16xf32> to vector<8xf32>
    %599 = vector.shape_cast %598 : vector<8xf32> to vector<8x1xf32>
    %cst_157 = arith.constant 1.600000e+01 : f32
    %600 = vector.broadcast %cst_157 : f32 to vector<8x1xf32>
    %601 = arith.divf %599, %600 : vector<8x1xf32>
    %602 = vector.broadcast %592 : vector<8x1xf32> to vector<8x16xf32>
    %603 = arith.subf %586, %602 : vector<8x16xf32>
    %cst_158 = arith.constant 9.99999974E-6 : f32
    %604 = vector.broadcast %cst_158 : f32 to vector<8x1xf32>
    %605 = arith.addf %601, %604 : vector<8x1xf32>
    %606 = math.rsqrt %605 : vector<8x1xf32>
    %607 = vector.broadcast %606 : vector<8x1xf32> to vector<8x16xf32>
    %608 = arith.mulf %603, %607 : vector<8x16xf32>
    %609 = vector.broadcast %587 : vector<1x16xf32> to vector<8x16xf32>
    %610 = arith.mulf %608, %609 : vector<8x16xf32>
    %611 = vector.broadcast %588 : vector<1x16xf32> to vector<8x16xf32>
    %612 = arith.addf %610, %611 : vector<8x16xf32>
    %c520 = arith.constant 520 : index
    %c0_159 = arith.constant 0 : index
    %613 = vector.load %arg4[%c520, %c0_159] : memref<1000x128xf32, #tpu.memory_space<vmem>>, vector<16x16xf32>
    %cst_160 = arith.constant dense<0.000000e+00> : vector<8x16xf32>
    %614 = tpu.matmul %612, %613, %cst_160 {dimension_numbers = #tpu.dot_dimension_numbers<[1], [0], [0], [1], [0, 0, 1, 1], [], []>} : vector<8x16xf32>, vector<16x16xf32>, vector<8x16xf32> -> vector<8x16xf32>
    %c536 = arith.constant 536 : index
    %c0_161 = arith.constant 0 : index
    %615 = vector.load %arg4[%c536, %c0_161] : memref<1000x128xf32, #tpu.memory_space<vmem>>, vector<16x16xf32>
    %cst_162 = arith.constant dense<0.000000e+00> : vector<8x16xf32>
    %616 = tpu.matmul %612, %615, %cst_162 {dimension_numbers = #tpu.dot_dimension_numbers<[1], [0], [0], [1], [0, 0, 1, 1], [], []>} : vector<8x16xf32>, vector<16x16xf32>, vector<8x16xf32> -> vector<8x16xf32>
    %c552 = arith.constant 552 : index
    %c0_163 = arith.constant 0 : index
    %617 = vector.load %arg4[%c552, %c0_163] : memref<1000x128xf32, #tpu.memory_space<vmem>>, vector<16x16xf32>
    %cst_164 = arith.constant dense<0.000000e+00> : vector<8x16xf32>
    %618 = tpu.matmul %612, %617, %cst_164 {dimension_numbers = #tpu.dot_dimension_numbers<[1], [0], [0], [1], [0, 0, 1, 1], [], []>} : vector<8x16xf32>, vector<16x16xf32>, vector<8x16xf32> -> vector<8x16xf32>
    %c968 = arith.constant 968 : index
    %c0_165 = arith.constant 0 : index
    %619 = vector.load %arg4[%c968, %c0_165] : memref<1000x128xf32, #tpu.memory_space<vmem>>, vector<16x16xf32>
    %620 = vector.extract_strided_slice %614 {offsets = [0, 0], sizes = [8, 8], strides = [1, 1]} : vector<8x16xf32> to vector<8x8xf32>
    %621 = vector.extract_strided_slice %614 {offsets = [0, 8], sizes = [8, 8], strides = [1, 1]} : vector<8x16xf32> to vector<8x8xf32>
    %622 = tpu.concatenate %620, %621 in 0 : vector<8x8xf32>, vector<8x8xf32> -> vector<16x8xf32>
    %623 = vector.extract_strided_slice %616 {offsets = [0, 0], sizes = [8, 8], strides = [1, 1]} : vector<8x16xf32> to vector<8x8xf32>
    %624 = vector.extract_strided_slice %616 {offsets = [0, 8], sizes = [8, 8], strides = [1, 1]} : vector<8x16xf32> to vector<8x8xf32>
    %625 = tpu.concatenate %623, %624 in 0 : vector<8x8xf32>, vector<8x8xf32> -> vector<16x8xf32>
    %626 = vector.extract_strided_slice %618 {offsets = [0, 0], sizes = [8, 8], strides = [1, 1]} : vector<8x16xf32> to vector<8x8xf32>
    %627 = vector.extract_strided_slice %618 {offsets = [0, 8], sizes = [8, 8], strides = [1, 1]} : vector<8x16xf32> to vector<8x8xf32>
    %628 = tpu.concatenate %626, %627 in 0 : vector<8x8xf32>, vector<8x8xf32> -> vector<16x8xf32>
    %cst_166 = arith.constant dense<0.000000e+00> : vector<16x16xf32>
    %629 = tpu.matmul %622, %625, %cst_166 {dimension_numbers = #tpu.dot_dimension_numbers<[1], [1], [0], [0], [0, 0, 1, 0], [], []>} : vector<16x8xf32>, vector<16x8xf32>, vector<16x16xf32> -> vector<16x16xf32>
    %cst_167 = arith.constant 0.353553385 : f32
    %630 = vector.broadcast %cst_167 : f32 to vector<16x16xf32>
    %631 = arith.mulf %629, %630 : vector<16x16xf32>
    %632 = arith.addf %631, %619 : vector<16x16xf32>
    %cst_168 = arith.constant dense<0xFF800000> : vector<16xf32>
    %633 = vector.multi_reduction <maximumf>, %632, %cst_168 [1] : vector<16x16xf32> to vector<16xf32>
    %634 = vector.shape_cast %633 : vector<16xf32> to vector<16x1xf32>
    %635 = vector.broadcast %634 : vector<16x1xf32> to vector<16x16xf32>
    %636 = arith.subf %632, %635 : vector<16x16xf32>
    %637 = math.exp %636 : vector<16x16xf32>
    %cst_169 = arith.constant dense<0.000000e+00> : vector<16xf32>
    %638 = vector.multi_reduction <add>, %637, %cst_169 [1] : vector<16x16xf32> to vector<16xf32>
    %639 = vector.shape_cast %638 : vector<16xf32> to vector<16x1xf32>
    %640 = tpu.reciprocal %639 {approx = true} : vector<16x1xf32> -> vector<16x1xf32>
    %641 = vector.broadcast %640 : vector<16x1xf32> to vector<16x16xf32>
    %642 = arith.mulf %637, %641 : vector<16x16xf32>
    %cst_170 = arith.constant dense<0.000000e+00> : vector<16x8xf32>
    %643 = tpu.matmul %642, %628, %cst_170 {dimension_numbers = #tpu.dot_dimension_numbers<[1], [0], [0], [1], [0, 0, 1, 1], [], []>} : vector<16x16xf32>, vector<16x8xf32>, vector<16x8xf32> -> vector<16x8xf32>
    %644 = vector.extract_strided_slice %643 {offsets = [0, 0], sizes = [8, 8], strides = [1, 1]} : vector<16x8xf32> to vector<8x8xf32>
    %645 = vector.extract_strided_slice %643 {offsets = [8, 0], sizes = [8, 8], strides = [1, 1]} : vector<16x8xf32> to vector<8x8xf32>
    %646 = tpu.concatenate %644, %645 in 1 : vector<8x8xf32>, vector<8x8xf32> -> vector<8x16xf32>
    %c568 = arith.constant 568 : index
    %c0_171 = arith.constant 0 : index
    %647 = vector.load %arg4[%c568, %c0_171] : memref<1000x128xf32, #tpu.memory_space<vmem>>, vector<16x16xf32>
    %cst_172 = arith.constant dense<0.000000e+00> : vector<8x16xf32>
    %648 = tpu.matmul %646, %647, %cst_172 {dimension_numbers = #tpu.dot_dimension_numbers<[1], [0], [0], [1], [0, 0, 1, 1], [], []>} : vector<8x16xf32>, vector<16x16xf32>, vector<8x16xf32> -> vector<8x16xf32>
    %c584 = arith.constant 584 : index
    %c0_173 = arith.constant 0 : index
    %649 = vector.load %arg4[%c584, %c0_173] : memref<1000x128xf32, #tpu.memory_space<vmem>>, vector<1x16xf32>
    %650 = vector.broadcast %649 : vector<1x16xf32> to vector<8x16xf32>
    %651 = arith.addf %648, %650 : vector<8x16xf32>
    %652 = arith.addf %651, %586 : vector<8x16xf32>
    %c592 = arith.constant 592 : index
    %c0_174 = arith.constant 0 : index
    %653 = vector.load %arg4[%c592, %c0_174] : memref<1000x128xf32, #tpu.memory_space<vmem>>, vector<1x16xf32>
    %c600 = arith.constant 600 : index
    %c0_175 = arith.constant 0 : index
    %654 = vector.load %arg4[%c600, %c0_175] : memref<1000x128xf32, #tpu.memory_space<vmem>>, vector<1x16xf32>
    %cst_176 = arith.constant dense<0.000000e+00> : vector<8xf32>
    %655 = vector.multi_reduction <add>, %652, %cst_176 [1] : vector<8x16xf32> to vector<8xf32>
    %656 = vector.shape_cast %655 : vector<8xf32> to vector<8x1xf32>
    %cst_177 = arith.constant 1.600000e+01 : f32
    %657 = vector.broadcast %cst_177 : f32 to vector<8x1xf32>
    %658 = arith.divf %656, %657 : vector<8x1xf32>
    %659 = vector.broadcast %658 : vector<8x1xf32> to vector<8x16xf32>
    %660 = arith.subf %652, %659 : vector<8x16xf32>
    %661 = vector.broadcast %658 : vector<8x1xf32> to vector<8x16xf32>
    %662 = arith.subf %652, %661 : vector<8x16xf32>
    %663 = arith.mulf %660, %662 : vector<8x16xf32>
    %cst_178 = arith.constant dense<0.000000e+00> : vector<8xf32>
    %664 = vector.multi_reduction <add>, %663, %cst_178 [1] : vector<8x16xf32> to vector<8xf32>
    %665 = vector.shape_cast %664 : vector<8xf32> to vector<8x1xf32>
    %cst_179 = arith.constant 1.600000e+01 : f32
    %666 = vector.broadcast %cst_179 : f32 to vector<8x1xf32>
    %667 = arith.divf %665, %666 : vector<8x1xf32>
    %668 = vector.broadcast %658 : vector<8x1xf32> to vector<8x16xf32>
    %669 = arith.subf %652, %668 : vector<8x16xf32>
    %cst_180 = arith.constant 9.99999974E-6 : f32
    %670 = vector.broadcast %cst_180 : f32 to vector<8x1xf32>
    %671 = arith.addf %667, %670 : vector<8x1xf32>
    %672 = math.rsqrt %671 : vector<8x1xf32>
    %673 = vector.broadcast %672 : vector<8x1xf32> to vector<8x16xf32>
    %674 = arith.mulf %669, %673 : vector<8x16xf32>
    %675 = vector.broadcast %653 : vector<1x16xf32> to vector<8x16xf32>
    %676 = arith.mulf %674, %675 : vector<8x16xf32>
    %677 = vector.broadcast %654 : vector<1x16xf32> to vector<8x16xf32>
    %678 = arith.addf %676, %677 : vector<8x16xf32>
    %c608 = arith.constant 608 : index
    %c0_181 = arith.constant 0 : index
    %679 = vector.load %arg4[%c608, %c0_181] : memref<1000x128xf32, #tpu.memory_space<vmem>>, vector<16x16xf32>
    %cst_182 = arith.constant dense<0.000000e+00> : vector<8x16xf32>
    %680 = tpu.matmul %678, %679, %cst_182 {dimension_numbers = #tpu.dot_dimension_numbers<[1], [0], [0], [1], [0, 0, 1, 1], [], []>} : vector<8x16xf32>, vector<16x16xf32>, vector<8x16xf32> -> vector<8x16xf32>
    %c624 = arith.constant 624 : index
    %c0_183 = arith.constant 0 : index
    %681 = vector.load %arg4[%c624, %c0_183] : memref<1000x128xf32, #tpu.memory_space<vmem>>, vector<32x16xf32>
    %cst_184 = arith.constant dense<0.000000e+00> : vector<16x16xf32>
    %682 = tpu.matmul %2, %681, %cst_184 {dimension_numbers = #tpu.dot_dimension_numbers<[1], [0], [0], [1], [0, 0, 1, 1], [], []>} : vector<16x32xf32>, vector<32x16xf32>, vector<16x16xf32> -> vector<16x16xf32>
    %c656 = arith.constant 656 : index
    %c0_185 = arith.constant 0 : index
    %683 = vector.load %arg4[%c656, %c0_185] : memref<1000x128xf32, #tpu.memory_space<vmem>>, vector<32x16xf32>
    %cst_186 = arith.constant dense<0.000000e+00> : vector<16x16xf32>
    %684 = tpu.matmul %2, %683, %cst_186 {dimension_numbers = #tpu.dot_dimension_numbers<[1], [0], [0], [1], [0, 0, 1, 1], [], []>} : vector<16x32xf32>, vector<32x16xf32>, vector<16x16xf32> -> vector<16x16xf32>
    %c984 = arith.constant 984 : index
    %c0_187 = arith.constant 0 : index
    %685 = vector.load %arg4[%c984, %c0_187] : memref<1000x128xf32, #tpu.memory_space<vmem>>, vector<16x32xf32>
    %686 = vector.extract_strided_slice %680 {offsets = [0, 0], sizes = [8, 8], strides = [1, 1]} : vector<8x16xf32> to vector<8x8xf32>
    %687 = vector.extract_strided_slice %680 {offsets = [0, 8], sizes = [8, 8], strides = [1, 1]} : vector<8x16xf32> to vector<8x8xf32>
    %688 = tpu.concatenate %686, %687 in 0 : vector<8x8xf32>, vector<8x8xf32> -> vector<16x8xf32>
    %689 = vector.extract_strided_slice %682 {offsets = [0, 0], sizes = [16, 8], strides = [1, 1]} : vector<16x16xf32> to vector<16x8xf32>
    %690 = vector.extract_strided_slice %682 {offsets = [0, 8], sizes = [16, 8], strides = [1, 1]} : vector<16x16xf32> to vector<16x8xf32>
    %691 = tpu.concatenate %689, %690 in 0 : vector<16x8xf32>, vector<16x8xf32> -> vector<32x8xf32>
    %692 = vector.extract_strided_slice %684 {offsets = [0, 0], sizes = [16, 8], strides = [1, 1]} : vector<16x16xf32> to vector<16x8xf32>
    %693 = vector.extract_strided_slice %684 {offsets = [0, 8], sizes = [16, 8], strides = [1, 1]} : vector<16x16xf32> to vector<16x8xf32>
    %694 = tpu.concatenate %692, %693 in 0 : vector<16x8xf32>, vector<16x8xf32> -> vector<32x8xf32>
    %cst_188 = arith.constant dense<0.000000e+00> : vector<16x32xf32>
    %695 = tpu.matmul %688, %691, %cst_188 {dimension_numbers = #tpu.dot_dimension_numbers<[1], [1], [0], [0], [0, 0, 1, 0], [], []>} : vector<16x8xf32>, vector<32x8xf32>, vector<16x32xf32> -> vector<16x32xf32>
    %cst_189 = arith.constant 0.353553385 : f32
    %696 = vector.broadcast %cst_189 : f32 to vector<16x32xf32>
    %697 = arith.mulf %695, %696 : vector<16x32xf32>
    %698 = arith.addf %697, %685 : vector<16x32xf32>
    %cst_190 = arith.constant dense<0xFF800000> : vector<16xf32>
    %699 = vector.multi_reduction <maximumf>, %698, %cst_190 [1] : vector<16x32xf32> to vector<16xf32>
    %700 = vector.shape_cast %699 : vector<16xf32> to vector<16x1xf32>
    %701 = vector.broadcast %700 : vector<16x1xf32> to vector<16x32xf32>
    %702 = arith.subf %698, %701 : vector<16x32xf32>
    %703 = math.exp %702 : vector<16x32xf32>
    %cst_191 = arith.constant dense<0.000000e+00> : vector<16xf32>
    %704 = vector.multi_reduction <add>, %703, %cst_191 [1] : vector<16x32xf32> to vector<16xf32>
    %705 = vector.shape_cast %704 : vector<16xf32> to vector<16x1xf32>
    %706 = tpu.reciprocal %705 {approx = true} : vector<16x1xf32> -> vector<16x1xf32>
    %707 = vector.broadcast %706 : vector<16x1xf32> to vector<16x32xf32>
    %708 = arith.mulf %703, %707 : vector<16x32xf32>
    %cst_192 = arith.constant dense<0.000000e+00> : vector<16x8xf32>
    %709 = tpu.matmul %708, %694, %cst_192 {dimension_numbers = #tpu.dot_dimension_numbers<[1], [0], [0], [1], [0, 0, 1, 1], [], []>} : vector<16x32xf32>, vector<32x8xf32>, vector<16x8xf32> -> vector<16x8xf32>
    %710 = vector.extract_strided_slice %709 {offsets = [0, 0], sizes = [8, 8], strides = [1, 1]} : vector<16x8xf32> to vector<8x8xf32>
    %711 = vector.extract_strided_slice %709 {offsets = [8, 0], sizes = [8, 8], strides = [1, 1]} : vector<16x8xf32> to vector<8x8xf32>
    %712 = tpu.concatenate %710, %711 in 1 : vector<8x8xf32>, vector<8x8xf32> -> vector<8x16xf32>
    %c688 = arith.constant 688 : index
    %c0_193 = arith.constant 0 : index
    %713 = vector.load %arg4[%c688, %c0_193] : memref<1000x128xf32, #tpu.memory_space<vmem>>, vector<16x16xf32>
    %cst_194 = arith.constant dense<0.000000e+00> : vector<8x16xf32>
    %714 = tpu.matmul %712, %713, %cst_194 {dimension_numbers = #tpu.dot_dimension_numbers<[1], [0], [0], [1], [0, 0, 1, 1], [], []>} : vector<8x16xf32>, vector<16x16xf32>, vector<8x16xf32> -> vector<8x16xf32>
    %c704 = arith.constant 704 : index
    %c0_195 = arith.constant 0 : index
    %715 = vector.load %arg4[%c704, %c0_195] : memref<1000x128xf32, #tpu.memory_space<vmem>>, vector<1x16xf32>
    %716 = vector.broadcast %715 : vector<1x16xf32> to vector<8x16xf32>
    %717 = arith.addf %714, %716 : vector<8x16xf32>
    %718 = arith.addf %717, %652 : vector<8x16xf32>
    %c712 = arith.constant 712 : index
    %c0_196 = arith.constant 0 : index
    %719 = vector.load %arg4[%c712, %c0_196] : memref<1000x128xf32, #tpu.memory_space<vmem>>, vector<1x16xf32>
    %c720 = arith.constant 720 : index
    %c0_197 = arith.constant 0 : index
    %720 = vector.load %arg4[%c720, %c0_197] : memref<1000x128xf32, #tpu.memory_space<vmem>>, vector<1x16xf32>
    %cst_198 = arith.constant dense<0.000000e+00> : vector<8xf32>
    %721 = vector.multi_reduction <add>, %718, %cst_198 [1] : vector<8x16xf32> to vector<8xf32>
    %722 = vector.shape_cast %721 : vector<8xf32> to vector<8x1xf32>
    %cst_199 = arith.constant 1.600000e+01 : f32
    %723 = vector.broadcast %cst_199 : f32 to vector<8x1xf32>
    %724 = arith.divf %722, %723 : vector<8x1xf32>
    %725 = vector.broadcast %724 : vector<8x1xf32> to vector<8x16xf32>
    %726 = arith.subf %718, %725 : vector<8x16xf32>
    %727 = vector.broadcast %724 : vector<8x1xf32> to vector<8x16xf32>
    %728 = arith.subf %718, %727 : vector<8x16xf32>
    %729 = arith.mulf %726, %728 : vector<8x16xf32>
    %cst_200 = arith.constant dense<0.000000e+00> : vector<8xf32>
    %730 = vector.multi_reduction <add>, %729, %cst_200 [1] : vector<8x16xf32> to vector<8xf32>
    %731 = vector.shape_cast %730 : vector<8xf32> to vector<8x1xf32>
    %cst_201 = arith.constant 1.600000e+01 : f32
    %732 = vector.broadcast %cst_201 : f32 to vector<8x1xf32>
    %733 = arith.divf %731, %732 : vector<8x1xf32>
    %734 = vector.broadcast %724 : vector<8x1xf32> to vector<8x16xf32>
    %735 = arith.subf %718, %734 : vector<8x16xf32>
    %cst_202 = arith.constant 9.99999974E-6 : f32
    %736 = vector.broadcast %cst_202 : f32 to vector<8x1xf32>
    %737 = arith.addf %733, %736 : vector<8x1xf32>
    %738 = math.rsqrt %737 : vector<8x1xf32>
    %739 = vector.broadcast %738 : vector<8x1xf32> to vector<8x16xf32>
    %740 = arith.mulf %735, %739 : vector<8x16xf32>
    %741 = vector.broadcast %719 : vector<1x16xf32> to vector<8x16xf32>
    %742 = arith.mulf %740, %741 : vector<8x16xf32>
    %743 = vector.broadcast %720 : vector<1x16xf32> to vector<8x16xf32>
    %744 = arith.addf %742, %743 : vector<8x16xf32>
    %c728 = arith.constant 728 : index
    %c0_203 = arith.constant 0 : index
    %745 = vector.load %arg4[%c728, %c0_203] : memref<1000x128xf32, #tpu.memory_space<vmem>>, vector<16x128xf32>
    %cst_204 = arith.constant dense<0.000000e+00> : vector<8x128xf32>
    %746 = tpu.matmul %744, %745, %cst_204 {dimension_numbers = #tpu.dot_dimension_numbers<[1], [0], [0], [1], [0, 0, 1, 1], [], []>} : vector<8x16xf32>, vector<16x128xf32>, vector<8x128xf32> -> vector<8x128xf32>
    %c744 = arith.constant 744 : index
    %c0_205 = arith.constant 0 : index
    %747 = vector.load %arg4[%c744, %c0_205] : memref<1000x128xf32, #tpu.memory_space<vmem>>, vector<1x128xf32>
    %748 = vector.broadcast %747 : vector<1x128xf32> to vector<8x128xf32>
    %749 = arith.addf %746, %748 : vector<8x128xf32>
    %750 = vector.extract_strided_slice %749 {offsets = [0, 0], sizes = [8, 64], strides = [1, 1]} : vector<8x128xf32> to vector<8x64xf32>
    %751 = vector.extract_strided_slice %749 {offsets = [0, 64], sizes = [8, 64], strides = [1, 1]} : vector<8x128xf32> to vector<8x64xf32>
    %cst_206 = arith.constant 5.000000e-01 : f32
    %752 = vector.broadcast %cst_206 : f32 to vector<8x64xf32>
    %753 = arith.mulf %752, %751 : vector<8x64xf32>
    %cst_207 = arith.constant 4.471500e-02 : f32
    %754 = vector.broadcast %cst_207 : f32 to vector<8x64xf32>
    %755 = arith.mulf %754, %751 : vector<8x64xf32>
    %756 = arith.mulf %755, %751 : vector<8x64xf32>
    %757 = arith.mulf %756, %751 : vector<8x64xf32>
    %758 = arith.addf %751, %757 : vector<8x64xf32>
    %cst_208 = arith.constant 0.797884583 : f32
    %759 = vector.broadcast %cst_208 : f32 to vector<8x64xf32>
    %760 = arith.mulf %759, %758 : vector<8x64xf32>
    %761 = math.tanh %760 : vector<8x64xf32>
    %cst_209 = arith.constant 1.000000e+00 : f32
    %762 = vector.broadcast %cst_209 : f32 to vector<8x64xf32>
    %763 = arith.addf %762, %761 : vector<8x64xf32>
    %764 = arith.mulf %753, %763 : vector<8x64xf32>
    %765 = arith.mulf %750, %764 : vector<8x64xf32>
    %c752 = arith.constant 752 : index
    %c0_210 = arith.constant 0 : index
    %766 = vector.load %arg4[%c752, %c0_210] : memref<1000x128xf32, #tpu.memory_space<vmem>>, vector<64x16xf32>
    %cst_211 = arith.constant dense<0.000000e+00> : vector<8x16xf32>
    %767 = tpu.matmul %765, %766, %cst_211 {dimension_numbers = #tpu.dot_dimension_numbers<[1], [0], [0], [1], [0, 0, 1, 1], [], []>} : vector<8x64xf32>, vector<64x16xf32>, vector<8x16xf32> -> vector<8x16xf32>
    %c816 = arith.constant 816 : index
    %c0_212 = arith.constant 0 : index
    %768 = vector.load %arg4[%c816, %c0_212] : memref<1000x128xf32, #tpu.memory_space<vmem>>, vector<1x16xf32>
    %769 = vector.broadcast %768 : vector<1x16xf32> to vector<8x16xf32>
    %770 = arith.addf %767, %769 : vector<8x16xf32>
    %771 = arith.addf %770, %718 : vector<8x16xf32>
    %c824 = arith.constant 824 : index
    %c0_213 = arith.constant 0 : index
    %772 = vector.load %arg4[%c824, %c0_213] : memref<1000x128xf32, #tpu.memory_space<vmem>>, vector<64x64xf32>
    %c888 = arith.constant 888 : index
    %c0_214 = arith.constant 0 : index
    %773 = vector.load %arg4[%c888, %c0_214] : memref<1000x128xf32, #tpu.memory_space<vmem>>, vector<1x64xf32>
    %774 = vector.broadcast %773 : vector<1x64xf32> to vector<2x64xf32>
    %775 = arith.addf %392, %774 : vector<2x64xf32>
    %776 = vector.extract_strided_slice %771 {offsets = [0, 0], sizes = [2, 16], strides = [1, 1]} : vector<8x16xf32> to vector<2x16xf32>
    %777 = vector.extract_strided_slice %772 {offsets = [0, 0], sizes = [16, 64], strides = [1, 1]} : vector<64x64xf32> to vector<16x64xf32>
    %cst_215 = arith.constant dense<0.000000e+00> : vector<2x64xf32>
    %778 = tpu.matmul %776, %777, %cst_215 {dimension_numbers = #tpu.dot_dimension_numbers<[1], [0], [0], [1], [0, 0, 1, 1], [], []>} : vector<2x16xf32>, vector<16x64xf32>, vector<2x64xf32> -> vector<2x64xf32>
    %779 = arith.addf %775, %778 : vector<2x64xf32>
    %780 = vector.extract_strided_slice %771 {offsets = [2, 0], sizes = [2, 16], strides = [1, 1]} : vector<8x16xf32> to vector<2x16xf32>
    %781 = vector.extract_strided_slice %772 {offsets = [16, 0], sizes = [16, 64], strides = [1, 1]} : vector<64x64xf32> to vector<16x64xf32>
    %cst_216 = arith.constant dense<0.000000e+00> : vector<2x64xf32>
    %782 = tpu.matmul %780, %781, %cst_216 {dimension_numbers = #tpu.dot_dimension_numbers<[1], [0], [0], [1], [0, 0, 1, 1], [], []>} : vector<2x16xf32>, vector<16x64xf32>, vector<2x64xf32> -> vector<2x64xf32>
    %783 = arith.addf %779, %782 : vector<2x64xf32>
    %784 = vector.extract_strided_slice %771 {offsets = [4, 0], sizes = [2, 16], strides = [1, 1]} : vector<8x16xf32> to vector<2x16xf32>
    %785 = vector.extract_strided_slice %772 {offsets = [32, 0], sizes = [16, 64], strides = [1, 1]} : vector<64x64xf32> to vector<16x64xf32>
    %cst_217 = arith.constant dense<0.000000e+00> : vector<2x64xf32>
    %786 = tpu.matmul %784, %785, %cst_217 {dimension_numbers = #tpu.dot_dimension_numbers<[1], [0], [0], [1], [0, 0, 1, 1], [], []>} : vector<2x16xf32>, vector<16x64xf32>, vector<2x64xf32> -> vector<2x64xf32>
    %787 = arith.addf %783, %786 : vector<2x64xf32>
    %788 = vector.extract_strided_slice %771 {offsets = [6, 0], sizes = [2, 16], strides = [1, 1]} : vector<8x16xf32> to vector<2x16xf32>
    %789 = vector.extract_strided_slice %772 {offsets = [48, 0], sizes = [16, 64], strides = [1, 1]} : vector<64x64xf32> to vector<16x64xf32>
    %cst_218 = arith.constant dense<0.000000e+00> : vector<2x64xf32>
    %790 = tpu.matmul %788, %789, %cst_218 {dimension_numbers = #tpu.dot_dimension_numbers<[1], [0], [0], [1], [0, 0, 1, 1], [], []>} : vector<2x16xf32>, vector<16x64xf32>, vector<2x64xf32> -> vector<2x64xf32>
    %791 = arith.addf %787, %790 : vector<2x64xf32>
    %c896 = arith.constant 896 : index
    %c0_219 = arith.constant 0 : index
    %792 = vector.load %arg4[%c896, %c0_219] : memref<1000x128xf32, #tpu.memory_space<vmem>>, vector<64x64xf32>
    %cst_220 = arith.constant dense<0.000000e+00> : vector<2x64xf32>
    %793 = tpu.matmul %791, %792, %cst_220 {dimension_numbers = #tpu.dot_dimension_numbers<[1], [0], [0], [1], [0, 0, 1, 1], [], []>} : vector<2x64xf32>, vector<64x64xf32>, vector<2x64xf32> -> vector<2x64xf32>
    %c960 = arith.constant 960 : index
    %c0_221 = arith.constant 0 : index
    %794 = vector.load %arg4[%c960, %c0_221] : memref<1000x128xf32, #tpu.memory_space<vmem>>, vector<1x64xf32>
    %795 = vector.broadcast %794 : vector<1x64xf32> to vector<2x64xf32>
    %796 = arith.addf %793, %795 : vector<2x64xf32>
    %797 = tpu.concatenate %791, %796 in 1 : vector<2x64xf32>, vector<2x64xf32> -> vector<2x128xf32>
    %c0_222 = arith.constant 0 : index
    %c0_223 = arith.constant 0 : index
    %798 = vector.load %arg5[%c0_222, %c0_223] : memref<2x128xf32, #tpu.memory_space<vmem>>, vector<2x128xf32>
    tpu.vector_store %arg5[%c0_222, %c0_223], %797 {strides = array<i32>} : memref<2x128xf32, #tpu.memory_space<vmem>>, vector<2x128xf32>,
    return
  }
  func.func @transform_0(%arg0: i32) -> (i32, i32) {
    %c0_i32 = arith.constant 0 : i32
    %c0_i32_0 = arith.constant 0 : i32
    %c0_i32_1 = arith.constant 0 : i32
    return %c0_i32, %c0_i32_0 : i32, i32
  }
  func.func @transform_1(%arg0: i32) -> (i32, i32) {
    %c0_i32 = arith.constant 0 : i32
    %c0_i32_0 = arith.constant 0 : i32
    %c0_i32_1 = arith.constant 0 : i32
    return %c0_i32, %c0_i32_0 : i32, i32
  }
  func.func @transform_2(%arg0: i32) -> (i32, i32) {
    %c0_i32 = arith.constant 0 : i32
    %c0_i32_0 = arith.constant 0 : i32
    %c0_i32_1 = arith.constant 0 : i32
    return %c0_i32, %c0_i32_0 : i32, i32
  }
  func.func @transform_3(%arg0: i32) -> (i32, i32) {
    %c0_i32 = arith.constant 0 : i32
    %c0_i32_0 = arith.constant 0 : i32
    %c0_i32_1 = arith.constant 0 : i32
    return %c0_i32, %c0_i32_0 : i32, i32
  }
  func.func @transform_4(%arg0: i32) -> (i32, i32) {
    %c0_i32 = arith.constant 0 : i32
    %c0_i32_0 = arith.constant 0 : i32
    %c0_i32_1 = arith.constant 0 : i32
    return %c0_i32, %c0_i32_0 : i32, i32
  }
}

</mosaic_0001>

<bundles_post_ra>
// kernel: tpu_custom_call.1
= control target key start
LH: loop header
LB: loop body
LE: loop exit
PB: predicated region body
PF: predicated region fallthrough
CT: control target
= control target key end

     0   :  { %9 = vsyncpa [#allocation3], 0  ;;  %s3000_s0 = inlined_call_operand.hbm [shape: f32[2,32], index: 0, kind: input, shape index: {}]   ;;  %s3001_s1 = inlined_call_operand.hbm [shape: f32[2,32], index: 1, kind: input, shape index: {}]   ;;  %s3002_s2 = inlined_call_operand.hbm [shape: f32[16,32], index: 2, kind: input, shape index: {}]   ;;  %s3003_s3 = inlined_call_operand.hbm [shape: f32[1000,128], index: 3, kind: input, shape index: {}]   ;;  %s3004_s4 = inlined_call_operand.hbm [shape: f32[2,128], index: 4, kind: output, shape index: {}]  }
   0x1   :  { %10 = vsyncpa [#allocation6], 0 }
   0x2   :  { %11 = vsyncpa [#allocation9], 0  ;;  %s29_s17 = sshll.u32 %s3001_s1, 4  ;;  %s30_s17 = int_to_ptr.hbm [resolvable:$true] %s29_s17 }
   0x3   :  { %12 = vsyncpa [#allocation4], 0  ;;  %s2208_s18 = smov [#allocation5]   ;;  %s18_s22 = sshll.u32 %s3000_s0, 4  ;;  %s19_s22 = int_to_ptr.hbm [resolvable:$true] %s18_s22 }
   0x4   :  { %s31_s19 = sshll.u32 %s2208_s18, 4  ;;  %s2209_s23 = smov [#allocation2]   ;;  %s32_s19 = int_to_ptr.vmem [resolvable:$true] %s31_s19 }
   0x5   :  { %34 = dma.hbm_to_vmem [thread:$0]  %s30_s17, 32, %s32_s19, [#allocation6]  }
   0x6   :  { %s20_s24 = sshll.u32 %s2209_s23, 4  ;;  %s39_s27 = sshll.u32 %s3002_s2, 4  ;;  %s21_s24 = int_to_ptr.vmem [resolvable:$true] %s20_s24  ;;  %s40_s27 = int_to_ptr.hbm [resolvable:$true] %s39_s27 }
   0x7   :  { %23 = dma.hbm_to_vmem [thread:$0]  %s19_s22, 32, %s21_s24, [#allocation3]  }
   0x8   :  { %s2210_s1 = smov [#allocation7]   ;;  %s52_s5 = sshll.u32 %s3003_s3, 4  ;;  %s53_s5 = int_to_ptr.hbm [resolvable:$true] %s52_s5 }
   0x9   :  { %s41_s28 = sshll.u32 %s2210_s1, 4  ;;  %s2211_s6 = smov 128   ;;  %s42_s28 = int_to_ptr.vmem [resolvable:$true] %s41_s28 }
   0xa   :  { %s2212_s0 = smov 8   ;;  %s2213_s7 = smov [#allocation8]  }
   0xb   :  { %47 = dma.hbm_to_vmem [thread:$0]  %s40_s27, 256, %s42_s28, [#allocation6], %s2211_s6, %s2211_s6, %s2212_s0  }
   0xc   :  { %s54_s8 = sshll.u32 %s2213_s7, 4  ;;  %s55_s8 = int_to_ptr.vmem [resolvable:$true] %s54_s8 }
   0xd   :  { %60 = dma.hbm_to_vmem [thread:$0]  %s53_s5, 16000, %s55_s8, [#allocation9], %s2211_s6, %s2211_s6, %s2212_s0  }
   0xe   :  { %2200 = dma.done.wait [#allocation3], 32  }
   0xf   :  { %2201 = vsyncadd [#allocation3], 4294967264 }
  0x10   :  { %2202 = dma.done.wait [#allocation6], 288  }
  0x11   :  { %2203 = vsyncadd [#allocation6], 4294967008 }
  0x12   :  { %2204 = dma.done.wait [#allocation9], 16000  }
  0x13   :  { %2205 = vsyncadd [#allocation9], 4294951296  ;;  %v2269_v0 = vld [vmem:[#allocation2] sm:$0x3]  ;;  %s2214_s2 = smov 116   ;;  %s2215_s3 = smov 124  }
  0x14   :  { %172 = vrot.lane.b32.xlu1 %v2269_v0, %s2214_s2  ;;  %114 = vrot.lane.b32.xlu0 %v2269_v0, %s2215_s3  ;;  %s2216_s9 = smov 108   ;;  %s2217_s10 = smov 120   ;;  %vm83_vm0 = vcmask 25600   ;;  %v2221_v16 = vmov 4.0   ;;  %vm317_vm13 = vcmask 31744   ;;  %vm319_vm15 = vcmask 64512  }
  0x15   :  { %230 = vrot.lane.b32.xlu2 %v2269_v0, %s2216_s9  ;;  %s2218_s11 = smov 112   ;;  %s2219_s12 = smov 104   ;;  %v84_v1 = vsel %vm83_vm0, %v2269_v0, 0.0  ;;  %1990 = vrcp.f32 %v2221_v16 }
  0x16   :  { %s2220_s13 = smov 100   ;;  %s2222_s14 = smov 72  }
  0x17   :  { %s2223_s15 = smov 88   ;;  %s2224_s16 = smov 96  }
  0x18   :  { %s2225_s17 = smov 80   ;;  %s2228_s18 = smov 64  }
  0x19   :  { %s2229_s19 = smov [#allocation10]   ;;  %s1886_s23 = sshll.u32 %s3004_s4, 4  ;;  %s1887_s23 = int_to_ptr.hbm [resolvable:$true] %s1886_s23 }
  0x1a   :  { %s1884_s20 = sshll.u32 %s2229_s19, 4  ;;  %s1885_s20 = int_to_ptr.vmem [resolvable:$true] %s1884_s20 }
  0x1b   :  { %v1991_v17 = vpop.eup %1990 }
  0x1c   :  { %143 = vrot.lane.b32.xlu0 %v2269_v0, %s2217_s10  ;;  %201 = vrot.lane.b32.xlu1 %v2269_v0, %s2218_s11  ;;  %v88_v18 = vmul.f32 4.0, %v1991_v17  ;;  %vm92_vm1 = vweird.f32 %v1991_v17 }
  0x1d   :  { %259 = vrot.lane.b32.xlu2 %v2269_v0, %s2219_s12 }
  0x1e   :  { %v89_v19 = vsub.f32 1.0, %v88_v18 }
  0x20   :  { %v90_v20 = vmul.f32 %v1991_v17, %v89_v19 }
  0x22   :  { %v91_v22 = vadd.f32 %v1991_v17, %v90_v20 }
  0x24   :  { %288 = vrot.lane.b32.xlu0 %v2269_v0, %s2220_s13  ;;  %v2294_v23 = vsel %vm92_vm1, %v1991_v17, %v91_v22 }
  0x46   :  { %85 = vadd.xlane.f32.xlu1 %v84_v1 }
  0x6f   :  { %v231_v6 = vpop.permute.xlu2 %230 }
  0x70   :  { %v233_v7 = vsel %vm83_vm0, %v231_v6, 0.0 }
  0x77   :  { %v260_v14 = vpop.permute.xlu2 %259 }
  0x78   :  { %v262_v15 = vsel %vm83_vm0, %v260_v14, 0.0 }
  0x86   :  { %v173_v2 = vpop.permute.xlu1 %172  ;;  %v115_v3 = vpop.permute.xlu0 %114 }
  0x87   :  { %v175_v4 = vsel %vm83_vm0, %v173_v2, 0.0  ;;  %v117_v5 = vsel %vm83_vm0, %v115_v3, 0.0 }
  0x88   :  { %176 = vadd.xlane.f32.xlu0 %v175_v4  ;;  %118 = vadd.xlane.f32.xlu1 %v117_v5 }
  0x8e   :  { %v144_v8 = vpop.permute.xlu0 %143  ;;  %v202_v10 = vpop.permute.xlu1 %201 }
  0x8f   :  { %v146_v9 = vsel %vm83_vm0, %v144_v8, 0.0  ;;  %v204_v11 = vsel %vm83_vm0, %v202_v10, 0.0 }
  0x90   :  { %147 = vadd.xlane.f32.xlu2 %v146_v9  ;;  %234 = vadd.xlane.f32.xlu1 %v233_v7 }
  0x96   :  { %v289_v12 = vpop.permute.xlu0 %288 }
  0x97   :  { %v291_v13 = vsel %vm83_vm0, %v289_v12, 0.0 }
  0x98   :  { %205 = vadd.xlane.f32.xlu2 %v204_v11  ;;  %292 = vadd.xlane.f32.xlu0 %v291_v13 }
  0xa0   :  { %263 = vadd.xlane.f32.xlu2 %v262_v15 }
  0xb9   :  { %v86_v21 = vpop.xlane.xlu1 %85 }
  0xba   :  { %v94_v52 = vmul.f32 %v2294_v23, %v86_v21 }
  0xbc   :  { %v2347_v53 = vsub.f32 %v2269_v0, %v94_v52 }
  0xbe   :  { %v96_v54 = vmul.f32 %v2347_v53, %v2347_v53 }
  0xc0   :  { %v97_v55 = vsel %vm83_vm0, %v96_v54, 0.0 }
  0xfb   :  { %v177_v24 = vpop.xlane.xlu0 %176  ;;  %v119_v25 = vpop.xlane.xlu1 %118 }
  0xfc   :  { %v178_v26 = vmul.f32 %v177_v24, %v2294_v23  ;;  %v120_v27 = vmul.f32 %v119_v25, %v2294_v23 }
  0xfe   :  { %v2299_v28 = vsub.f32 %v2269_v0, %v178_v26  ;;  %v2302_v29 = vsub.f32 %v2269_v0, %v120_v27 }
 0x100   :  { %v180_v30 = vmul.f32 %v2299_v28, %v2299_v28  ;;  %v122_v31 = vmul.f32 %v2302_v29, %v2302_v29 }
 0x102   :  { %182 = vrot.lane.b32.xlu1 %v180_v30, %s2214_s2  ;;  %124 = vrot.lane.b32.xlu2 %v122_v31, %s2215_s3 }
 0x103   :  { %v148_v32 = vpop.xlane.xlu2 %147  ;;  %v235_v33 = vpop.xlane.xlu1 %234 }
 0x104   :  { %v149_v34 = vmul.f32 %v148_v32, %v2294_v23  ;;  %v236_v35 = vmul.f32 %v235_v33, %v2294_v23  ;;  %v408_v33 = vld [vmem:[#allocation8 + $0x50] sm:$0xff] }
 0x105   :  { %424 = vmatpush.msra.mxu2 %v408_v33 }
 0x106   :  { %v2313_v36 = vsub.f32 %v2269_v0, %v149_v34  ;;  %v2316_v37 = vsub.f32 %v2269_v0, %v236_v35  ;;  %v407_v34 = vld [vmem:[#allocation8 + $0x48] sm:$0xff] }
 0x107   :  { %v358_v35 = vld [vmem:[#allocation8 + $0x28] sm:$0xff]  ;;  %425 = vmatpush.msra.mxu2 %v407_v34 }
 0x108   :  { %v151_v38 = vmul.f32 %v2313_v36, %v2313_v36  ;;  %v238_v39 = vmul.f32 %v2316_v37, %v2316_v37  ;;  %377 = vmatpush.msra.mxu0 %v358_v35 }
 0x10a   :  { %153 = vrot.lane.b32.xlu0 %v151_v38, %s2217_s10  ;;  %240 = vrot.lane.b32.xlu2 %v238_v39, %s2216_s9 }
 0x10b   :  { %v206_v40 = vpop.xlane.xlu2 %205  ;;  %v293_v41 = vpop.xlane.xlu0 %292 }
 0x10c   :  { %v207_v42 = vmul.f32 %v206_v40, %v2294_v23  ;;  %v294_v44 = vmul.f32 %v293_v41, %v2294_v23  ;;  %v357_v40 = vld [vmem:[#allocation8 + $0x20] sm:$0xff] }
 0x10d   :  { %378 = vmatpush.msra.mxu0 %v357_v40 }
 0x10e   :  { %v2326_v43 = vsub.f32 %v2269_v0, %v207_v42  ;;  %v2333_v46 = vsub.f32 %v2269_v0, %v294_v44  ;;  %v406_v44 = vld [vmem:[#allocation8 + $0x40] sm:$0xff] }
 0x10f   :  { %426 = vmatpush.msra.mxu2 %v406_v44 }
 0x110   :  { %v209_v45 = vmul.f32 %v2326_v43, %v2326_v43  ;;  %v296_v50 = vmul.f32 %v2333_v46, %v2333_v46 }
 0x112   :  { %211 = vrot.lane.b32.xlu0 %v209_v45, %s2218_s11  ;;  %v2391_v45 = vld [vmem:[#allocation5] sm:$0x3] }
 0x113   :  { %v264_v47 = vpop.xlane.xlu2 %263 }
 0x114   :  { %v265_v48 = vmul.f32 %v264_v47, %v2294_v23 }
 0x116   :  { %v2337_v49 = vsub.f32 %v2269_v0, %v265_v48 }
 0x118   :  { %v267_v51 = vmul.f32 %v2337_v49, %v2337_v49 }
 0x11a   :  { %298 = vrot.lane.b32.xlu0 %v296_v50, %s2220_s13  ;;  %269 = vrot.lane.b32.xlu1 %v267_v51, %s2219_s12  ;;  %v1900_v51 = vmul.f32 -1.442695, %v2391_v45 }
 0x133   :  { %98 = vadd.xlane.f32.xlu2 %v97_v55  ;;  %v405_v55 = vld [vmem:[#allocation8 + $0x38] sm:$0xff] }
 0x134   :  { %427 = vmatpush.msra.mxu2 %v405_v55 }
 0x15c   :  { %v125_v56 = vpop.permute.xlu2 %124 }
 0x15d   :  { %v127_v57 = vsel %vm83_vm0, %v125_v56, 0.0  ;;  %v356_v56 = vld [vmem:[#allocation8 + $0x18] sm:$0xff] }
 0x15e   :  { %128 = vadd.xlane.f32.xlu1 %v127_v57  ;;  %v355_v57 = vld [vmem:[#allocation8 + $0x10] sm:$0xff]  ;;  %379 = vmatpush.msra.mxu0 %v356_v56 }
 0x160   :  { %380 = vmatpush.msra.mxu0 %v355_v57 }
 0x164   :  { %v241_v62 = vpop.permute.xlu2 %240 }
 0x165   :  { %v243_v2 = vsel %vm83_vm0, %v241_v62, 0.0 }
 0x174   :  { %v183_v58 = vpop.permute.xlu1 %182 }
 0x175   :  { %v185_v59 = vsel %vm83_vm0, %v183_v58, 0.0 }
 0x176   :  { %186 = vadd.xlane.f32.xlu2 %v185_v59 }
 0x17c   :  { %v154_v60 = vpop.permute.xlu0 %153 }
 0x17d   :  { %v156_v61 = vsel %vm83_vm0, %v154_v60, 0.0 }
 0x17e   :  { %157 = vadd.xlane.f32.xlu0 %v156_v61 }
 0x184   :  { %v212_v63 = vpop.permute.xlu0 %211 }
 0x185   :  { %v214_v1 = vsel %vm83_vm0, %v212_v63, 0.0 }
 0x186   :  { %215 = vadd.xlane.f32.xlu1 %v214_v1  ;;  %244 = vadd.xlane.f32.xlu0 %v243_v2 }
 0x18c   :  { %v299_v3 = vpop.permute.xlu0 %298  ;;  %v270_v4 = vpop.permute.xlu1 %269 }
 0x18d   :  { %v301_v5 = vsel %vm83_vm0, %v299_v3, 0.0  ;;  %v272_v6 = vsel %vm83_vm0, %v270_v4, 0.0 }
 0x18e   :  { %302 = vadd.xlane.f32.xlu1 %v301_v5  ;;  %273 = vadd.xlane.f32.xlu2 %v272_v6 }
 0x1a6   :  { %v99_v9 = vpop.xlane.xlu2 %98 }
 0x1a7   :  { %v100_v10 = vmul.f32 %v99_v9, %v2294_v23 }
 0x1a9   :  { %v2363_v12 = vadd.f32 1e-06, %v100_v10 }
 0x1ab   :  { %vm108_vm6 = vweird.f32 %v2363_v12 }
 0x1d1   :  { %v129_v7 = vpop.xlane.xlu1 %128 }
 0x1d2   :  { %v130_v8 = vmul.f32 %v129_v7, %v2294_v23 }
 0x1d4   :  { %v2361_v11 = vadd.f32 1e-06, %v130_v8 }
 0x1d6   :  { %1992 = vrsqrt.f32 %v2361_v11  ;;  %vm138_vm3 = vweird.f32 %v2361_v11 }
 0x1d7   :  { %1994 = vrsqrt.f32 %v2363_v12 }
 0x1dc   :  { %v2368_v15 = vpop.eup %1992 }
 0x1dd   :  { %v133_v17 = vmul.f32 %v2368_v15, %v2361_v11  ;;  %v2374_v18 = vpop.eup %1994  ;;  %vm139_vm2 = vweird.f32 %v2368_v15 }
 0x1de   :  { %v103_v21 = vmul.f32 %v2374_v18, %v2363_v12  ;;  %vm109_vm4 = vweird.f32 %v2374_v18  ;;  %vm2413_vm5 = vmor %vm138_vm3, %vm139_vm2 }
 0x1df   :  { %v134_v22 = vmul.f32 %v2368_v15, %v133_v17  ;;  %vm2431_vm8 = vmor %vm108_vm6, %vm109_vm4  ;;  %vm321_vm4 = vcmask 97280  }
 0x1e0   :  { %v104_v26 = vmul.f32 %v2374_v18, %v103_v21 }
 0x1e1   :  { %v135_v27 = vmul.f32 0.5, %v134_v22 }
 0x1e2   :  { %v105_v41 = vmul.f32 0.5, %v104_v26 }
 0x1e3   :  { %v136_v42 = vsub.f32 1.5, %v135_v27 }
 0x1e4   :  { %v106_v58 = vsub.f32 1.5, %v105_v41 }
 0x1e5   :  { %v137_v60 = vmul.f32 %v2368_v15, %v136_v42 }
 0x1e6   :  { %v107_v4 = vmul.f32 %v2374_v18, %v106_v58 }
 0x1e7   :  { %v141_v8 = vsel %vm2413_vm5, %v2368_v15, %v137_v60  ;;  %vm323_vm5 = vcmask 130048  }
 0x1e8   :  { %v142_v21 = vmul.f32 %v141_v8, %v2302_v29 }
 0x1e9   :  { %v187_v13 = vpop.xlane.xlu2 %186 }
 0x1ea   :  { %v188_v14 = vmul.f32 %v187_v13, %v2294_v23 }
 0x1ec   :  { %v2370_v16 = vadd.f32 1e-06, %v188_v14 }
 0x1ee   :  { %1996 = vrsqrt.f32 %v2370_v16  ;;  %vm196_vm10 = vweird.f32 %v2370_v16 }
 0x1f1   :  { %v158_v19 = vpop.xlane.xlu0 %157 }
 0x1f2   :  { %v159_v20 = vmul.f32 %v158_v19, %v2294_v23  ;;  %v111_v19 = vsel %vm2431_vm8, %v2374_v18, %v107_v4 }
 0x1f4   :  { %v2381_v24 = vadd.f32 1e-06, %v159_v20  ;;  %v2383_v25 = vpop.eup %1996 }
 0x1f5   :  { %v191_v30 = vmul.f32 %v2383_v25, %v2370_v16  ;;  %vm197_vm12 = vweird.f32 %v2383_v25 }
 0x1f6   :  { %1998 = vrsqrt.f32 %v2381_v24  ;;  %vm167_vm9 = vweird.f32 %v2381_v24  ;;  %vm2452_vm14 = vmor %vm196_vm10, %vm197_vm12 }
 0x1f7   :  { %v192_v52 = vmul.f32 %v2383_v25, %v191_v30 }
 0x1f9   :  { %v245_v31 = vpop.xlane.xlu0 %244  ;;  %v216_v32 = vpop.xlane.xlu1 %215  ;;  %v193_v61 = vmul.f32 0.5, %v192_v52 }
 0x1fa   :  { %v246_v38 = vmul.f32 %v245_v31, %v2294_v23  ;;  %v217_v39 = vmul.f32 %v216_v32, %v2294_v23  ;;  %v112_v31 = vmul.f32 %v111_v19, %v2347_v53 }
 0x1fb   :  { %v194_v11 = vsub.f32 1.5, %v193_v61 }
 0x1fc   :  { %v2393_v47 = vpop.eup %1998  ;;  %v2395_v48 = vadd.f32 1e-06, %v246_v38  ;;  %v2397_v50 = vadd.f32 1e-06, %v217_v39  ;;  %v318_v38 = vsel %vm317_vm13, %v112_v31, %v142_v21  ;;  %vm325_vm13 = vcmask 162816  }
 0x1fd   :  { %v162_v54 = vmul.f32 %v2393_v47, %v2381_v24  ;;  %vm168_vm7 = vweird.f32 %v2393_v47  ;;  %v195_v27 = vmul.f32 %v2383_v25, %v194_v11 }
 0x1fe   :  { %2000 = vrsqrt.f32 %v2395_v48  ;;  %vm169_vm11 = vmor %vm167_vm9, %vm168_vm7  ;;  %vm225_vm1 = vweird.f32 %v2397_v50  ;;  %vm254_vm3 = vweird.f32 %v2395_v48 }
 0x1ff   :  { %v163_v59 = vmul.f32 %v2393_v47, %v162_v54  ;;  %2002 = vrsqrt.f32 %v2397_v50  ;;  %v199_v39 = vsel %vm2452_vm14, %v2383_v25, %v195_v27 }
 0x200   :  { %2004 = vpow2.f32 %v1900_v51  ;;  %v200_v25 = vmul.f32 %v199_v39, %v2299_v28  ;;  %v1970_v39 = vld [vmem:[#allocation8 + $0x58] ss:$0 sm:$0xff] }
 0x201   :  { %v164_v62 = vmul.f32 0.5, %v163_v59  ;;  %v274_v63 = vpop.xlane.xlu2 %273  ;;  %v303_v1 = vpop.xlane.xlu1 %302 }
 0x202   :  { %v275_v2 = vmul.f32 %v274_v63, %v2294_v23  ;;  %v304_v3 = vmul.f32 %v303_v1, %v2294_v23 }
 0x203   :  { %v165_v6 = vsub.f32 1.5, %v164_v62 }
 0x204   :  { %v2417_v7 = vpop.eup %2000  ;;  %v2423_v9 = vadd.f32 1e-06, %v275_v2  ;;  %v2425_v23 = vadd.f32 1e-06, %v304_v3 }
 0x205   :  { %v2003_v10 = vpop.eup %2002  ;;  %v166_v13 = vmul.f32 %v2393_v47, %v165_v6  ;;  %v249_v14 = vmul.f32 %v2417_v7, %v2395_v48  ;;  %vm255_vm2 = vweird.f32 %v2417_v7 }
 0x206   :  { %v2005_v17 = vpop.eup %2004  ;;  %v220_v15 = vmul.f32 %v2003_v10, %v2397_v50  ;;  %2006 = vrsqrt.f32 %v2423_v9  ;;  %vm226_vm0 = vweird.f32 %v2003_v10  ;;  %vm2468_vm7 = vmor %vm254_vm3, %vm255_vm2 }
 0x207   :  { %v250_v20 = vmul.f32 %v2417_v7, %v249_v14  ;;  %2008 = vrsqrt.f32 %v2425_v23  ;;  %v2445_v26 = vadd.f32 1.0, %v2005_v17  ;;  %v170_v18 = vsel %vm169_vm11, %v2393_v47, %v166_v13  ;;  %vm227_vm6 = vmor %vm225_vm1, %vm226_vm0  ;;  %v1968_v17 = vld [vmem:[#allocation8 + $0x8] ss:$0 sm:$0xff] }
 0x208   :  { %v221_v22 = vmul.f32 %v2003_v10, %v220_v15  ;;  %v171_v33 = vmul.f32 %v170_v18, %v2313_v36  ;;  %vm283_vm11 = vweird.f32 %v2423_v9  ;;  %vm312_vm0 = vweird.f32 %v2425_v23 }
 0x209   :  { %v251_v30 = vmul.f32 0.5, %v250_v20  ;;  %2010 = vrcp.f32 %v2445_v26  ;;  %vm394_vm8 = vweird.f32 %v2445_v26  ;;  %v400_v48 = vand.u32 2147483648, %v2445_v26 }
 0x20a   :  { %v222_v24 = vmul.f32 0.5, %v221_v22  ;;  %v320_v47 = vsel %vm319_vm15, %v318_v38, %v171_v33  ;;  %v398_v60 = vand.u32 2147483647, %v2445_v26  ;;  %v1969_v33 = vld [vmem:[#allocation8 + $0x30] ss:$0 sm:$0xff] }
 0x20b   :  { %v252_v29 = vsub.f32 1.5, %v251_v30  ;;  %v322_v63 = vsel %vm321_vm4, %v320_v47, %v200_v25  ;;  %v401_v5 = vor.u32 1.1754944e-38, %v400_v48  ;;  %vm327_vm4 = vcmask 195584  }
 0x20c   :  { %v2007_v32 = vpop.eup %2006  ;;  %v223_v34 = vsub.f32 1.5, %v222_v24  ;;  %vm399_vm3 = vcmp.eq.f32.partialorder %v398_v60, 8.507059e+37 }
 0x20d   :  { %v2009_v35 = vpop.eup %2008  ;;  %v278_v53 = vmul.f32 %v2007_v32, %v2423_v9  ;;  %v253_v40 = vmul.f32 %v2417_v7, %v252_v29  ;;  %vm284_vm9 = vweird.f32 %v2007_v32  ;;  %v1967_v9 = vld [vmem:[#allocation8] ss:$0 sm:$0xff] }
 0x20e   :  { %v224_v41 = vmul.f32 %v2003_v10, %v223_v34  ;;  %v307_v42 = vmul.f32 %v2009_v35, %v2425_v23  ;;  %vm313_vm12 = vweird.f32 %v2009_v35  ;;  %vm285_vm14 = vmor %vm283_vm11, %vm284_vm9 }
 0x20f   :  { %v279_v36 = vmul.f32 %v2007_v32, %v278_v53  ;;  %v2011_v44 = vpop.eup %2010  ;;  %v257_v56 = vsel %vm2468_vm7, %v2417_v7, %v253_v40  ;;  %vm314_vm2 = vmor %vm312_vm0, %vm313_vm12  ;;  %vm361_vm7 = vcmask 261120   ;;  %vm438_vm12 = vcmask 58368  }
 0x210   :  { %v228_v50 = vsel %vm227_vm6, %v2003_v10, %v224_v41  ;;  %v308_v51 = vmul.f32 %v2009_v35, %v307_v42  ;;  %v390_v55 = vmul.f32 %v2011_v44, %v2445_v26  ;;  %vm395_vm10 = vweird.f32 %v2011_v44 }
 0x211   :  { %v280_v54 = vmul.f32 0.5, %v279_v36  ;;  %v229_v28 = vmul.f32 %v228_v50, %v2326_v43  ;;  %v258_v62 = vmul.f32 %v257_v56, %v2316_v37  ;;  %vm2487_vm1 = vmor %vm394_vm8, %vm395_vm10  ;;  %vm329_vm6 = vcmask 228352  }
 0x212   :  { %v309_v57 = vmul.f32 0.5, %v308_v51  ;;  %v391_v59 = vsub.f32 1.0, %v390_v55 }
 0x213   :  { %v281_v58 = vsub.f32 1.5, %v280_v54  ;;  %v324_v43 = vsel %vm323_vm5, %v322_v63, %v229_v28 }
 0x214   :  { %v310_v61 = vsub.f32 1.5, %v309_v57  ;;  %v392_v2 = vmul.f32 %v2011_v44, %v391_v59  ;;  %v326_v11 = vsel %vm325_vm13, %v324_v43, %v258_v62 }
 0x215   :  { %v282_v1 = vmul.f32 %v2007_v32, %v281_v58  ;;  %v2226_v58 = vmov 8.0  }
 0x216   :  { %v311_v3 = vmul.f32 %v2009_v35, %v310_v61  ;;  %v393_v37 = vadd.f32 %v2011_v44, %v392_v2 }
 0x217   :  { %v286_v6 = vsel %vm285_vm14, %v2007_v32, %v282_v1 }
 0x218   :  { %v287_v7 = vmul.f32 %v286_v6, %v2337_v49  ;;  %v315_v8 = vsel %vm314_vm2, %v2009_v35, %v311_v3  ;;  %v397_v23 = vsel %vm2487_vm1, %v2011_v44, %v393_v37 }
 0x219   :  { %v316_v10 = vmul.f32 %v315_v8, %v2333_v46  ;;  %v402_v13 = vsel %vm399_vm3, %v401_v5, %v397_v23 }
 0x21a   :  { %v328_v14 = vsel %vm327_vm4, %v326_v11, %v287_v7  ;;  %v404_v12 = vmul.f32 %v402_v13, %v2391_v45 }
 0x21b   :  { %v330_v15 = vsel %vm329_vm6, %v328_v14, %v316_v10 }
 0x21c   :  { %v332_v19 = vmul.f32 %v1967_v9, %v330_v15  ;;  %1901 = vmatmul.msk.f32.vlgmr.msra.gmra.mxu2 %vm361_vm7, %v404_v12 }
 0x21e   :  { %v334_v49 = vadd.f32 %v1968_v17, %v332_v19 }
 0x220   :  { %v1898_v20 = vmul.f32 -1.442695, %v334_v49 }
 0x222   :  { %2012 = vpow2.f32 %v1898_v20 }
 0x228   :  { %v2013_v46 = vpop.eup %2012 }
 0x229   :  { %v338_v21 = vadd.f32 1.0, %v2013_v46 }
 0x22b   :  { %2014 = vrcp.f32 %v338_v21  ;;  %v350_v18 = vand.u32 2147483648, %v338_v21  ;;  %v348_v24 = vand.u32 2147483647, %v338_v21  ;;  %vm344_vm9 = vweird.f32 %v338_v21 }
 0x22c   :  { %2016 = vrcp.f32 %v2226_v58 }
 0x22d   :  { %v351_v45 = vor.u32 1.1754944e-38, %v350_v18  ;;  %vm349_vm11 = vcmp.eq.f32.partialorder %v348_v24, 8.507059e+37 }
 0x231   :  { %v2015_v22 = vpop.eup %2014 }
 0x232   :  { %v340_v26 = vmul.f32 %v2015_v22, %v338_v21  ;;  %vm345_vm8 = vweird.f32 %v2015_v22  ;;  %v2017_v59 = vpop.eup %2016 }
 0x233   :  { %vm346_vm10 = vmor %vm344_vm9, %vm345_vm8  ;;  %v443_v60 = vmul.f32 8.0, %v2017_v59  ;;  %vm447_vm13 = vweird.f32 %v2017_v59 }
 0x234   :  { %v341_v27 = vsub.f32 1.0, %v340_v26 }
 0x235   :  { %v444_v61 = vsub.f32 1.0, %v443_v60 }
 0x236   :  { %v342_v30 = vmul.f32 %v2015_v22, %v341_v27 }
 0x237   :  { %v445_v62 = vmul.f32 %v2017_v59, %v444_v61 }
 0x238   :  { %v343_v31 = vadd.f32 %v2015_v22, %v342_v30 }
 0x239   :  { %v446_v1 = vadd.f32 %v2017_v59, %v445_v62 }
 0x23a   :  { %v347_v29 = vsel %vm346_vm10, %v2015_v22, %v343_v31 }
 0x23b   :  { %v352_v32 = vsel %vm349_vm11, %v351_v45, %v347_v29  ;;  %v2525_v2 = vsel %vm447_vm13, %v2017_v59, %v446_v1 }
 0x23c   :  { %v354_v16 = vmul.f32 %v352_v32, %v334_v49 }
 0x23e   :  { %1899 = vmatmul.msk.f32.vlgmr.msra.gmra.mxu0 %vm361_vm7, %v354_v16 }
 0x29f   :  { %v429_v35 = vpop.f32.mrf.mxu2 }
 0x2bb   :  { %v382_v34 = vpop.f32.mrf.mxu0 }
 0x2bc   :  { %v383_v38 = vadd.f32 %v1969_v33, %v382_v34 }
 0x2be   :  { %v432_v53 = vadd.f32 %v429_v35, %v383_v38 }
 0x2c0   :  { %v2500_v40 = vadd.f32 %v1970_v39, %v432_v53 }
 0x2c2   :  { %527 = vrot.lane.b32.xlu1 %v2500_v40, %s2219_s12  ;;  %498 = vrot.lane.b32.xlu2 %v2500_v40, %s2218_s11  ;;  %v439_v41 = vsel %vm438_vm12, %v2500_v40, 0.0 }
 0x2c3   :  { %469 = vrot.lane.b32.xlu0 %v2500_v40, %s2217_s10 }
 0x2ca   :  { %643 = vrot.lane.b32.xlu1 %v2500_v40, %s2222_s14  ;;  %585 = vrot.lane.b32.xlu2 %v2500_v40, %s2223_s15 }
 0x2cb   :  { %556 = vrot.lane.b32.xlu0 %v2500_v40, %s2224_s16 }
 0x2d3   :  { %614 = vrot.lane.b32.xlu0 %v2500_v40, %s2225_s17 }
 0x2fd   :  { %440 = vadd.xlane.f32.xlu0 %v439_v41 }
 0x31c   :  { %v499_v42 = vpop.permute.xlu2 %498 }
 0x31d   :  { %v501_v36 = vsel %vm438_vm12, %v499_v42, 0.0 }
 0x31e   :  { %502 = vadd.xlane.f32.xlu0 %v501_v36 }
 0x324   :  { %v586_v44 = vpop.permute.xlu2 %585 }
 0x325   :  { %v588_v25 = vsel %vm438_vm12, %v586_v44, 0.0 }
 0x326   :  { %589 = vadd.xlane.f32.xlu0 %v588_v25 }
 0x334   :  { %v528_v47 = vpop.permute.xlu1 %527 }
 0x335   :  { %v470_v50 = vpop.permute.xlu0 %469  ;;  %v530_v51 = vsel %vm438_vm12, %v528_v47, 0.0 }
 0x336   :  { %531 = vadd.xlane.f32.xlu1 %v530_v51  ;;  %v472_v52 = vsel %vm438_vm12, %v470_v50, 0.0 }
 0x337   :  { %473 = vadd.xlane.f32.xlu2 %v472_v52 }
 0x33c   :  { %v644_v48 = vpop.permute.xlu1 %643 }
 0x33d   :  { %v557_v54 = vpop.permute.xlu0 %556  ;;  %v646_v28 = vsel %vm438_vm12, %v644_v48, 0.0 }
 0x33e   :  { %v559_v55 = vsel %vm438_vm12, %v557_v54, 0.0 }
 0x33f   :  { %560 = vadd.xlane.f32.xlu2 %v559_v55 }
 0x345   :  { %v615_v56 = vpop.permute.xlu0 %614 }
 0x346   :  { %v617_v57 = vsel %vm438_vm12, %v615_v56, 0.0 }
 0x347   :  { %647 = vadd.xlane.f32.xlu2 %v646_v28  ;;  %618 = vadd.xlane.f32.xlu1 %v617_v57 }
 0x370   :  { %v441_v63 = vpop.xlane.xlu0 %440 }
 0x371   :  { %v449_v31 = vmul.f32 %v2525_v2, %v441_v63 }
 0x373   :  { %v2578_v45 = vsub.f32 %v2500_v40, %v449_v31 }
 0x375   :  { %v451_v29 = vmul.f32 %v2578_v45, %v2578_v45 }
 0x377   :  { %v452_v32 = vsel %vm438_vm12, %v451_v29, 0.0  ;;  %v710_v29 = vld [vmem:[#allocation8 + $0x90] sm:$0xff] }
 0x391   :  { %v503_v43 = vpop.xlane.xlu0 %502 }
 0x392   :  { %v504_v3 = vmul.f32 %v503_v43, %v2525_v2 }
 0x394   :  { %v2529_v4 = vsub.f32 %v2500_v40, %v504_v3 }
 0x396   :  { %v506_v5 = vmul.f32 %v2529_v4, %v2529_v4 }
 0x398   :  { %508 = vrot.lane.b32.xlu2 %v506_v5, %s2218_s11 }
 0x399   :  { %v590_v8 = vpop.xlane.xlu0 %589 }
 0x39a   :  { %v591_v11 = vmul.f32 %v590_v8, %v2525_v2  ;;  %v713_v8 = vld [vmem:[#allocation8 + $0xa8] sm:$0xff] }
 0x39b   :  { %728 = vmatpush.msrb.mxu2 %v713_v8 }
 0x39c   :  { %v2550_v17 = vsub.f32 %v2500_v40, %v591_v11 }
 0x39e   :  { %v593_v49 = vmul.f32 %v2550_v17, %v2550_v17 }
 0x3a9   :  { %v532_v6 = vpop.xlane.xlu1 %531 }
 0x3aa   :  { %v533_v37 = vmul.f32 %v532_v6, %v2525_v2  ;;  %v474_v7 = vpop.xlane.xlu2 %473 }
 0x3ab   :  { %v475_v9 = vmul.f32 %v474_v7, %v2525_v2 }
 0x3ac   :  { %v2537_v10 = vsub.f32 %v2500_v40, %v533_v37 }
 0x3ad   :  { %v2540_v23 = vsub.f32 %v2500_v40, %v475_v9  ;;  %v712_v9 = vld [vmem:[#allocation8 + $0xa0] sm:$0xff] }
 0x3ae   :  { %v535_v13 = vmul.f32 %v2537_v10, %v2537_v10  ;;  %729 = vmatpush.msrb.mxu2 %v712_v9 }
 0x3af   :  { %v477_v14 = vmul.f32 %v2540_v23, %v2540_v23 }
 0x3b0   :  { %537 = vrot.lane.b32.xlu0 %v535_v13, %s2219_s12  ;;  %v743_v13 = vld [vmem:[#allocation8 + $0xd0] sm:$0xff] }
 0x3b1   :  { %479 = vrot.lane.b32.xlu1 %v477_v14, %s2217_s10  ;;  %760 = vmatpush.msra.mxu3 %v743_v13 }
 0x3b2   :  { %v561_v12 = vpop.xlane.xlu2 %560 }
 0x3b3   :  { %v562_v15 = vmul.f32 %v561_v12, %v2525_v2 }
 0x3b5   :  { %v2554_v19 = vsub.f32 %v2500_v40, %v562_v15 }
 0x3b7   :  { %v564_v20 = vmul.f32 %v2554_v19, %v2554_v19 }
 0x3b8   :  { %595 = vrot.lane.b32.xlu0 %v593_v49, %s2223_s15 }
 0x3b9   :  { %566 = vrot.lane.b32.xlu1 %v564_v20, %s2224_s16  ;;  %v711_v20 = vld [vmem:[#allocation8 + $0x98] sm:$0xff] }
 0x3ba   :  { %v648_v46 = vpop.xlane.xlu2 %647  ;;  %v619_v21 = vpop.xlane.xlu1 %618  ;;  %730 = vmatpush.msrb.mxu2 %v711_v20 }
 0x3bb   :  { %v649_v22 = vmul.f32 %v648_v46, %v2525_v2  ;;  %v620_v26 = vmul.f32 %v619_v21, %v2525_v2  ;;  %v742_v46 = vld [vmem:[#allocation8 + $0xc8] sm:$0xff] }
 0x3bc   :  { %761 = vmatpush.msra.mxu3 %v742_v46  ;;  %731 = vmatpush.msrb.mxu2 %v710_v29 }
 0x3bd   :  { %v2565_v27 = vsub.f32 %v2500_v40, %v649_v22  ;;  %v2568_v18 = vsub.f32 %v2500_v40, %v620_v26 }
 0x3bf   :  { %v651_v30 = vmul.f32 %v2565_v27, %v2565_v27  ;;  %v622_v24 = vmul.f32 %v2568_v18, %v2568_v18 }
 0x3c1   :  { %653 = vrot.lane.b32.xlu1 %v651_v30, %s2222_s14  ;;  %624 = vrot.lane.b32.xlu2 %v622_v24, %s2225_s17  ;;  %v741_v24 = vld [vmem:[#allocation8 + $0xc0] sm:$0xff] }
 0x3c2   :  { %762 = vmatpush.msra.mxu3 %v741_v24 }
 0x3e2   :  { %453 = vadd.xlane.f32.xlu0 %v452_v32 }
 0x3f2   :  { %v509_v16 = vpop.permute.xlu2 %508 }
 0x3f3   :  { %v511_v33 = vsel %vm438_vm12, %v509_v16, 0.0  ;;  %v740_v16 = vld [vmem:[#allocation8 + $0xb8] sm:$0xff] }
 0x3f4   :  { %512 = vadd.xlane.f32.xlu1 %v511_v33  ;;  %763 = vmatpush.msra.mxu3 %v740_v16 }
 0x3f5   :  { %1904 = vmatmul.msk.f32.vlgmr.msra.gmra.mxu3 %vm361_vm7, %v2269_v0 }
 0x41b   :  { %v625_v53 = vpop.permute.xlu2 %624 }
 0x41c   :  { %v627_v42 = vsel %vm438_vm12, %v625_v53, 0.0 }
 0x422   :  { %v538_v34 = vpop.permute.xlu0 %537 }
 0x423   :  { %v480_v35 = vpop.permute.xlu1 %479  ;;  %v540_v38 = vsel %vm438_vm12, %v538_v34, 0.0 }
 0x424   :  { %v482_v39 = vsel %vm438_vm12, %v480_v35, 0.0  ;;  %541 = vadd.xlane.f32.xlu0 %v540_v38  ;;  %v709_v35 = vld [vmem:[#allocation8 + $0x88] sm:$0xff] }
 0x425   :  { %483 = vadd.xlane.f32.xlu2 %v482_v39  ;;  %732 = vmatpush.msrb.mxu2 %v709_v35 }
 0x42a   :  { %v596_v40 = vpop.permute.xlu0 %595 }
 0x42b   :  { %v567_v41 = vpop.permute.xlu1 %566  ;;  %v598_v36 = vsel %vm438_vm12, %v596_v40, 0.0  ;;  %v708_v40 = vld [vmem:[#allocation8 + $0x80] sm:$0xff] }
 0x42c   :  { %v569_v44 = vsel %vm438_vm12, %v567_v41, 0.0  ;;  %628 = vadd.xlane.f32.xlu0 %v627_v42  ;;  %599 = vadd.xlane.f32.xlu1 %v598_v36 }
 0x42d   :  { %570 = vadd.xlane.f32.xlu2 %v569_v44  ;;  %733 = vmatpush.msrb.mxu2 %v708_v40 }
 0x433   :  { %v654_v25 = vpop.permute.xlu1 %653 }
 0x434   :  { %v656_v47 = vsel %vm438_vm12, %v654_v25, 0.0 }
 0x435   :  { %657 = vadd.xlane.f32.xlu2 %v656_v47  ;;  %v707_v47 = vld [vmem:[#allocation8 + $0x78] sm:$0xff] }
 0x436   :  { %734 = vmatpush.msrb.mxu2 %v707_v47 }
 0x455   :  { %v454_v50 = vpop.xlane.xlu0 %453 }
 0x456   :  { %v455_v51 = vmul.f32 %v454_v50, %v2525_v2 }
 0x458   :  { %v2592_v55 = vadd.f32 1e-06, %v455_v51 }
 0x45a   :  { %2018 = vrsqrt.f32 %v2592_v55  ;;  %vm463_vm1 = vweird.f32 %v2592_v55 }
 0x460   :  { %v2598_v28 = vpop.eup %2018 }
 0x461   :  { %v458_v62 = vmul.f32 %v2598_v28, %v2592_v55  ;;  %vm464_vm0 = vweird.f32 %v2598_v28 }
 0x462   :  { %vm2664_vm8 = vmor %vm463_vm1, %vm464_vm0 }
 0x463   :  { %v459_v43 = vmul.f32 %v2598_v28, %v458_v62 }
 0x465   :  { %v460_v22 = vmul.f32 0.5, %v459_v43 }
 0x467   :  { %v513_v52 = vpop.xlane.xlu1 %512  ;;  %v461_v38 = vsub.f32 1.5, %v460_v22 }
 0x468   :  { %v514_v54 = vmul.f32 %v513_v52, %v2525_v2 }
 0x469   :  { %v462_v51 = vmul.f32 %v2598_v28, %v461_v38 }
 0x46a   :  { %v2594_v48 = vadd.f32 1e-06, %v514_v54 }
 0x46c   :  { %2020 = vrsqrt.f32 %v2594_v48  ;;  %vm522_vm9 = vweird.f32 %v2594_v48 }
 0x472   :  { %v2604_v61 = vpop.eup %2020 }
 0x473   :  { %v517_v1 = vmul.f32 %v2604_v61, %v2594_v48  ;;  %vm523_vm3 = vweird.f32 %v2604_v61 }
 0x474   :  { %vm2679_vm10 = vmor %vm522_vm9, %vm523_vm3 }
 0x475   :  { %v518_v12 = vmul.f32 %v2604_v61, %v517_v1 }
 0x477   :  { %v519_v33 = vmul.f32 0.5, %v518_v12 }
 0x478   :  { %v765_v55 = vpop.f32.mrf.mxu3 }
 0x479   :  { %v520_v44 = vsub.f32 1.5, %v519_v33 }
 0x497   :  { %v542_v56 = vpop.xlane.xlu0 %541 }
 0x498   :  { %v484_v57 = vpop.xlane.xlu2 %483  ;;  %v543_v58 = vmul.f32 %v542_v56, %v2525_v2 }
 0x499   :  { %v485_v59 = vmul.f32 %v484_v57, %v2525_v2 }
 0x49a   :  { %v2602_v60 = vadd.f32 1e-06, %v543_v58  ;;  %v706_v58 = vld [vmem:[#allocation8 + $0x70] sm:$0xff] }
 0x49b   :  { %v2608_v63 = vadd.f32 1e-06, %v485_v59  ;;  %735 = vmatpush.msrb.mxu2 %v706_v58 }
 0x49c   :  { %2022 = vrsqrt.f32 %v2602_v60 }
 0x49d   :  { %2024 = vrsqrt.f32 %v2608_v63  ;;  %vm493_vm2 = vweird.f32 %v2608_v63 }
 0x49f   :  { %v600_v3 = vpop.xlane.xlu1 %599  ;;  %v629_v5 = vpop.xlane.xlu0 %628 }
 0x4a0   :  { %v571_v6 = vpop.xlane.xlu2 %570  ;;  %v601_v37 = vmul.f32 %v600_v3, %v2525_v2  ;;  %v630_v7 = vmul.f32 %v629_v5, %v2525_v2  ;;  %v466_v5 = vsel %vm2664_vm8, %v2598_v28, %v462_v51 }
 0x4a1   :  { %v572_v11 = vmul.f32 %v571_v6, %v2525_v2  ;;  %v467_v12 = vmul.f32 %v466_v5, %v2578_v45 }
 0x4a2   :  { %v2618_v14 = vpop.eup %2022  ;;  %v2621_v15 = vadd.f32 1e-06, %v601_v37  ;;  %v2623_v49 = vadd.f32 1e-06, %v630_v7 }
 0x4a3   :  { %v2625_v21 = vpop.eup %2024  ;;  %v546_v26 = vmul.f32 %v2618_v14, %v2602_v60  ;;  %v2629_v30 = vadd.f32 1e-06, %v572_v11  ;;  %vm552_vm11 = vweird.f32 %v2618_v14 }
 0x4a4   :  { %v488_v31 = vmul.f32 %v2625_v21, %v2608_v63  ;;  %2026 = vrsqrt.f32 %v2621_v15  ;;  %vm494_vm14 = vweird.f32 %v2625_v21  ;;  %v521_v63 = vmul.f32 %v2604_v61, %v520_v44 }
 0x4a5   :  { %v547_v32 = vmul.f32 %v2618_v14, %v546_v26  ;;  %2028 = vrsqrt.f32 %v2629_v30  ;;  %vm495_vm6 = vmor %vm493_vm2, %vm494_vm14  ;;  %vm551_vm14 = vweird.f32 %v2602_v60  ;;  %vm580_vm2 = vweird.f32 %v2629_v30 }
 0x4a6   :  { %v489_v34 = vmul.f32 %v2625_v21, %v488_v31  ;;  %2030 = vrsqrt.f32 %v2623_v49  ;;  %v525_v48 = vsel %vm2679_vm10, %v2604_v61, %v521_v63  ;;  %vm553_vm1 = vmor %vm551_vm14, %vm552_vm11  ;;  %vm638_vm10 = vweird.f32 %v2623_v49  ;;  %v1973_v63 = vld [vmem:[#allocation8 + $0xb0] ss:$0 sm:$0xff] }
 0x4a7   :  { %v548_v41 = vmul.f32 0.5, %v547_v32  ;;  %v526_v26 = vmul.f32 %v525_v48, %v2529_v4  ;;  %vm676_vm11 = vcmask 326656  }
 0x4a8   :  { %v490_v39 = vmul.f32 0.5, %v489_v34  ;;  %v658_v53 = vpop.xlane.xlu2 %657 }
 0x4a9   :  { %v659_v42 = vmul.f32 %v658_v53, %v2525_v2  ;;  %v549_v59 = vsub.f32 1.5, %v548_v41  ;;  %v1972_v41 = vld [vmem:[#allocation8 + $0x68] ss:$0 sm:$0xff] }
 0x4aa   :  { %v2641_v36 = vpop.eup %2026  ;;  %v491_v25 = vsub.f32 1.5, %v490_v39 }
 0x4ab   :  { %v2029_v50 = vpop.eup %2028  ;;  %v604_v52 = vmul.f32 %v2641_v36, %v2621_v15  ;;  %v2648_v54 = vadd.f32 1e-06, %v659_v42  ;;  %v550_v11 = vmul.f32 %v2618_v14, %v549_v59  ;;  %vm610_vm0 = vweird.f32 %v2641_v36 }
 0x4ac   :  { %v2650_v56 = vpop.eup %2030  ;;  %v492_v0 = vmul.f32 %v2625_v21, %v491_v25  ;;  %v575_v57 = vmul.f32 %v2029_v50, %v2629_v30  ;;  %vm581_vm13 = vweird.f32 %v2029_v50 }
 0x4ad   :  { %v605_v62 = vmul.f32 %v2641_v36, %v604_v52  ;;  %v633_v1 = vmul.f32 %v2650_v56, %v2623_v49  ;;  %2032 = vrsqrt.f32 %v2648_v54  ;;  %v554_v61 = vsel %vm553_vm1, %v2618_v14, %v550_v11  ;;  %vm582_vm3 = vmor %vm580_vm2, %vm581_vm13  ;;  %v1971_v49 = vld [vmem:[#allocation8 + $0x60] ss:$0 sm:$0xff] }
 0x4ae   :  { %v496_v43 = vsel %vm495_vm6, %v2625_v21, %v492_v0  ;;  %v576_v3 = vmul.f32 %v2029_v50, %v575_v57  ;;  %vm609_vm6 = vweird.f32 %v2621_v15  ;;  %v555_v30 = vmul.f32 %v554_v61, %v2537_v10 }
 0x4af   :  { %v606_v6 = vmul.f32 0.5, %v605_v62  ;;  %v634_v37 = vmul.f32 %v2650_v56, %v633_v1  ;;  %v497_v7 = vmul.f32 %v496_v43, %v2540_v23  ;;  %vm611_vm8 = vmor %vm609_vm6, %vm610_vm0  ;;  %vm639_vm9 = vweird.f32 %v2650_v56  ;;  %v1974_v1 = vld [vmem:[#allocation8 + $0xd8] ss:$0 sm:$0xff] }
 0x4b0   :  { %v577_v8 = vmul.f32 0.5, %v576_v3  ;;  %vm640_vm13 = vmor %vm638_vm10, %vm639_vm9  ;;  %vm667_vm0 = vweird.f32 %v2648_v54  ;;  %vm678_vm1 = vcmask 392192   ;;  %v766_v43 = vadd.f32 %v1974_v1, %v765_v55 }
 0x4b1   :  { %v607_v28 = vsub.f32 1.5, %v606_v6  ;;  %v635_v13 = vmul.f32 0.5, %v634_v37  ;;  %v672_v21 = vsel %vm319_vm15, %v467_v12, %v497_v7 }
 0x4b2   :  { %v578_v23 = vsub.f32 1.5, %v577_v8  ;;  %v673_v31 = vsel %vm323_vm5, %v672_v21, %v526_v26 }
 0x4b3   :  { %v608_v20 = vmul.f32 %v2641_v36, %v607_v28  ;;  %v2033_v46 = vpop.eup %2032  ;;  %v636_v45 = vsub.f32 1.5, %v635_v13  ;;  %v674_v15 = vsel %vm327_vm4, %v673_v31, %v555_v30 }
 0x4b4   :  { %v579_v22 = vmul.f32 %v2029_v50, %v578_v23  ;;  %v662_v60 = vmul.f32 %v2033_v46, %v2648_v54  ;;  %vm668_vm14 = vweird.f32 %v2033_v46 }
 0x4b5   :  { %v612_v32 = vsel %vm611_vm8, %v2641_v36, %v608_v20  ;;  %v637_v4 = vmul.f32 %v2650_v56, %v636_v45  ;;  %vm669_vm2 = vmor %vm667_vm0, %vm668_vm14 }
 0x4b6   :  { %v583_v24 = vsel %vm582_vm3, %v2029_v50, %v579_v22  ;;  %v663_v16 = vmul.f32 %v2033_v46, %v662_v60  ;;  %v613_v33 = vmul.f32 %v612_v32, %v2550_v17  ;;  %vm680_vm3 = vcmask 457728  }
 0x4b7   :  { %v584_v29 = vmul.f32 %v583_v24, %v2554_v19  ;;  %v641_v35 = vsel %vm640_vm13, %v2650_v56, %v637_v4  ;;  %vm716_vm13 = vcmask 523264  }
 0x4b8   :  { %v664_v14 = vmul.f32 0.5, %v663_v16  ;;  %v642_v39 = vmul.f32 %v641_v35, %v2568_v18 }
 0x4b9   :  { %v675_v34 = vsel %vm361_vm7, %v674_v15, %v584_v29 }
 0x4ba   :  { %v665_v19 = vsub.f32 1.5, %v664_v14  ;;  %v677_v38 = vsel %vm676_vm11, %v675_v34, %v613_v33 }
 0x4bb   :  { %v679_v40 = vsel %vm678_vm1, %v677_v38, %v642_v39 }
 0x4bc   :  { %v666_v10 = vmul.f32 %v2033_v46, %v665_v19 }
 0x4be   :  { %v670_v17 = vsel %vm669_vm2, %v2033_v46, %v666_v10 }
 0x4bf   :  { %v671_v53 = vmul.f32 %v670_v17, %v2565_v27 }
 0x4c1   :  { %v681_v42 = vsel %vm680_vm3, %v679_v40, %v671_v53 }
 0x4c2   :  { %v683_v36 = vmul.f32 %v1971_v49, %v681_v42 }
 0x4c4   :  { %v685_v44 = vadd.f32 %v1972_v41, %v683_v36 }
 0x4c6   :  { %v1902_v25 = vmul.f32 -1.442695, %v685_v44 }
 0x4c8   :  { %2034 = vpow2.f32 %v1902_v25 }
 0x4ce   :  { %v2035_v47 = vpop.eup %2034 }
 0x4cf   :  { %v689_v50 = vadd.f32 1.0, %v2035_v47 }
 0x4d1   :  { %2036 = vrcp.f32 %v689_v50  ;;  %v701_v54 = vand.u32 2147483648, %v689_v50  ;;  %v699_v0 = vand.u32 2147483647, %v689_v50  ;;  %vm695_vm8 = vweird.f32 %v689_v50 }
 0x4d3   :  { %v702_v57 = vor.u32 1.1754944e-38, %v701_v54  ;;  %vm700_vm10 = vcmp.eq.f32.partialorder %v699_v0, 8.507059e+37 }
 0x4d7   :  { %v2037_v51 = vpop.eup %2036 }
 0x4d8   :  { %v691_v52 = vmul.f32 %v2037_v51, %v689_v50  ;;  %vm696_vm6 = vweird.f32 %v2037_v51 }
 0x4d9   :  { %vm697_vm9 = vmor %vm695_vm8, %vm696_vm6 }
 0x4da   :  { %v692_v18 = vsub.f32 1.0, %v691_v52 }
 0x4dc   :  { %v693_v56 = vmul.f32 %v2037_v51, %v692_v18 }
 0x4de   :  { %v694_v27 = vadd.f32 %v2037_v51, %v693_v56 }
 0x4e0   :  { %v698_v58 = vsel %vm697_vm9, %v2037_v51, %v694_v27 }
 0x4e1   :  { %v703_v59 = vsel %vm700_vm10, %v702_v57, %v698_v58 }
 0x4e2   :  { %v705_v62 = vmul.f32 %v703_v59, %v685_v44 }
 0x4e4   :  { %1903 = vmatmul.msk.f32.vlgmr.msrb.gmra.mxu2 %vm716_vm13, %v705_v62 }
 0x567   :  { %v737_v3 = vpop.f32.mrf.mxu2 }
 0x568   :  { %v738_v5 = vadd.f32 %v1973_v63, %v737_v3 }
 0x56a   :  { %v2716_v6 = vadd.f32 %v766_v43, %v738_v5 }
 0x56c   :  { %852 = vrot.lane.b32.xlu2 %v2716_v6, %s2219_s12  ;;  %823 = vrot.lane.b32.xlu0 %v2716_v6, %s2218_s11  ;;  %v771_v37 = vsel %vm438_vm12, %v2716_v6, 0.0 }
 0x56d   :  { %794 = vrot.lane.b32.xlu1 %v2716_v6, %s2217_s10 }
 0x574   :  { %939 = vrot.lane.b32.xlu2 %v2716_v6, %s2225_s17  ;;  %881 = vrot.lane.b32.xlu0 %v2716_v6, %s2224_s16 }
 0x575   :  { %910 = vrot.lane.b32.xlu1 %v2716_v6, %s2223_s15 }
 0x57c   :  { %968 = vrot.lane.b32.xlu0 %v2716_v6, %s2222_s14 }
 0x59f   :  { %772 = vadd.xlane.f32.xlu1 %v771_v37 }
 0x5c6   :  { %v853_v7 = vpop.permute.xlu2 %852 }
 0x5c7   :  { %v855_v8 = vsel %vm438_vm12, %v853_v7, 0.0 }
 0x5c8   :  { %856 = vadd.xlane.f32.xlu0 %v855_v8 }
 0x5ce   :  { %v940_v9 = vpop.permute.xlu2 %939 }
 0x5cf   :  { %v942_v11 = vsel %vm438_vm12, %v940_v9, 0.0 }
 0x5d0   :  { %943 = vadd.xlane.f32.xlu0 %v942_v11 }
 0x5de   :  { %v824_v28 = vpop.permute.xlu0 %823 }
 0x5df   :  { %v795_v13 = vpop.permute.xlu1 %794  ;;  %v826_v12 = vsel %vm438_vm12, %v824_v28, 0.0 }
 0x5e0   :  { %827 = vadd.xlane.f32.xlu2 %v826_v12  ;;  %v797_v48 = vsel %vm438_vm12, %v795_v13, 0.0 }
 0x5e1   :  { %798 = vadd.xlane.f32.xlu1 %v797_v48 }
 0x5e6   :  { %v882_v23 = vpop.permute.xlu0 %881 }
 0x5e7   :  { %v911_v20 = vpop.permute.xlu1 %910  ;;  %v884_v46 = vsel %vm438_vm12, %v882_v23, 0.0 }
 0x5e8   :  { %885 = vadd.xlane.f32.xlu2 %v884_v46  ;;  %v913_v21 = vsel %vm438_vm12, %v911_v20, 0.0 }
 0x5e9   :  { %914 = vadd.xlane.f32.xlu1 %v913_v21  ;;  %v1015_v21 = vld [vmem:[#allocation8 + $0x128] sm:$0xff] }
 0x5ea   :  { %1053 = vmatpush.msrb.mxu0 %v1015_v21 }
 0x5ee   :  { %v969_v22 = vpop.permute.xlu0 %968 }
 0x5ef   :  { %v971_v45 = vsel %vm438_vm12, %v969_v22, 0.0  ;;  %v1023_v22 = vld [vmem:[#allocation8 + $0x168] sm:$0xff] }
 0x5f0   :  { %972 = vadd.xlane.f32.xlu2 %v971_v45  ;;  %v1031_v45 = vld [vmem:[#allocation8 + $0x1a8] sm:$0xff]  ;;  %1073 = vmatpush.msra.mxu1 %v1023_v22 }
 0x5f1   :  { %1093 = vmatpush.msrb.mxu3 %v1031_v45 }
 0x612   :  { %v773_v31 = vpop.xlane.xlu1 %772 }
 0x613   :  { %v774_v50 = vmul.f32 %v773_v31, %v2525_v2 }
 0x615   :  { %v2792_v51 = vsub.f32 %v2716_v6, %v774_v50 }
 0x617   :  { %v776_v52 = vmul.f32 %v2792_v51, %v2792_v51 }
 0x619   :  { %v777_v18 = vsel %vm438_vm12, %v776_v52, 0.0  ;;  %v1011_v52 = vld [vmem:[#allocation8 + $0x108] sm:$0xff] }
 0x63b   :  { %v857_v26 = vpop.xlane.xlu0 %856 }
 0x63c   :  { %v858_v61 = vmul.f32 %v857_v26, %v2525_v2 }
 0x63e   :  { %v2743_v60 = vsub.f32 %v2716_v6, %v858_v61 }
 0x640   :  { %v860_v24 = vmul.f32 %v2743_v60, %v2743_v60 }
 0x642   :  { %862 = vrot.lane.b32.xlu1 %v860_v24, %s2219_s12  ;;  %v1039_v24 = vld [vmem:[#allocation8 + $0x1e8] sm:$0xff] }
 0x643   :  { %v944_v38 = vpop.xlane.xlu0 %943  ;;  %1113 = vmatpush.msra.mxu2 %v1039_v24 }
 0x644   :  { %v945_v53 = vmul.f32 %v944_v38, %v2525_v2  ;;  %v1037_v38 = vld [vmem:[#allocation8 + $0x1d8] sm:$0xff] }
 0x646   :  { %v2779_v36 = vsub.f32 %v2716_v6, %v945_v53  ;;  %v1020_v53 = vld [vmem:[#allocation8 + $0x150] sm:$0xff] }
 0x648   :  { %v947_v47 = vmul.f32 %v2779_v36, %v2779_v36 }
 0x653   :  { %v828_v29 = vpop.xlane.xlu2 %827 }
 0x654   :  { %v829_v32 = vmul.f32 %v828_v29, %v2525_v2  ;;  %v799_v16 = vpop.xlane.xlu1 %798  ;;  %v1014_v29 = vld [vmem:[#allocation8 + $0x120] sm:$0xff] }
 0x655   :  { %v800_v30 = vmul.f32 %v799_v16, %v2525_v2  ;;  %v1030_v16 = vld [vmem:[#allocation8 + $0x1a0] sm:$0xff]  ;;  %1054 = vmatpush.msrb.mxu0 %v1014_v29 }
 0x656   :  { %v2751_v4 = vsub.f32 %v2716_v6, %v829_v32  ;;  %v1022_v32 = vld [vmem:[#allocation8 + $0x160] sm:$0xff]  ;;  %1094 = vmatpush.msrb.mxu3 %v1030_v16 }
 0x657   :  { %v2754_v14 = vsub.f32 %v2716_v6, %v800_v30  ;;  %1074 = vmatpush.msra.mxu1 %v1022_v32 }
 0x658   :  { %v831_v15 = vmul.f32 %v2751_v4, %v2751_v4 }
 0x659   :  { %v802_v33 = vmul.f32 %v2754_v14, %v2754_v14 }
 0x65a   :  { %833 = vrot.lane.b32.xlu2 %v831_v15, %s2218_s11  ;;  %v1038_v15 = vld [vmem:[#allocation8 + $0x1e0] sm:$0xff] }
 0x65b   :  { %804 = vrot.lane.b32.xlu0 %v802_v33, %s2217_s10  ;;  %v886_v34 = vpop.xlane.xlu2 %885  ;;  %1114 = vmatpush.msra.mxu2 %v1038_v15 }
 0x65c   :  { %v887_v19 = vmul.f32 %v886_v34, %v2525_v2  ;;  %v915_v35 = vpop.xlane.xlu1 %914  ;;  %v1013_v34 = vld [vmem:[#allocation8 + $0x118] sm:$0xff] }
 0x65d   :  { %v916_v10 = vmul.f32 %v915_v35, %v2525_v2  ;;  %v1029_v35 = vld [vmem:[#allocation8 + $0x198] sm:$0xff]  ;;  %1055 = vmatpush.msrb.mxu0 %v1013_v34  ;;  %1115 = vmatpush.msra.mxu2 %v1037_v38 }
 0x65e   :  { %v2765_v39 = vsub.f32 %v2716_v6, %v887_v19  ;;  %v1021_v19 = vld [vmem:[#allocation8 + $0x158] sm:$0xff]  ;;  %1095 = vmatpush.msrb.mxu3 %v1029_v35 }
 0x65f   :  { %v2768_v17 = vsub.f32 %v2716_v6, %v916_v10  ;;  %1075 = vmatpush.msra.mxu1 %v1021_v19 }
 0x660   :  { %v889_v49 = vmul.f32 %v2765_v39, %v2765_v39 }
 0x661   :  { %v918_v40 = vmul.f32 %v2768_v17, %v2768_v17  ;;  %1076 = vmatpush.msra.mxu1 %v1020_v53 }
 0x663   :  { %891 = vrot.lane.b32.xlu0 %v889_v49, %s2224_s16  ;;  %920 = vrot.lane.b32.xlu2 %v918_v40, %s2223_s15  ;;  %v973_v41 = vpop.xlane.xlu2 %972  ;;  %v1012_v49 = vld [vmem:[#allocation8 + $0x110] sm:$0xff] }
 0x664   :  { %v974_v42 = vmul.f32 %v973_v41, %v2525_v2  ;;  %v1028_v40 = vld [vmem:[#allocation8 + $0x190] sm:$0xff]  ;;  %1056 = vmatpush.msrb.mxu0 %v1012_v49 }
 0x665   :  { %1096 = vmatpush.msrb.mxu3 %v1028_v40 }
 0x666   :  { %v2782_v44 = vsub.f32 %v2716_v6, %v974_v42  ;;  %v1036_v42 = vld [vmem:[#allocation8 + $0x1d0] sm:$0xff]  ;;  %1057 = vmatpush.msrb.mxu0 %v1011_v52 }
 0x667   :  { %1116 = vmatpush.msra.mxu2 %v1036_v42 }
 0x668   :  { %v976_v25 = vmul.f32 %v2782_v44, %v2782_v44 }
 0x66a   :  { %978 = vrot.lane.b32.xlu1 %v976_v25, %s2222_s14 }
 0x66b   :  { %949 = vrot.lane.b32.xlu0 %v947_v47, %s2225_s17 }
 0x68c   :  { %778 = vadd.xlane.f32.xlu2 %v777_v18  ;;  %v1019_v18 = vld [vmem:[#allocation8 + $0x148] sm:$0xff] }
 0x68d   :  { %1077 = vmatpush.msra.mxu1 %v1019_v18 }
 0x6b4   :  { %v834_v54 = vpop.permute.xlu2 %833  ;;  %v863_v56 = vpop.permute.xlu1 %862 }
 0x6b5   :  { %v836_v0 = vsel %vm438_vm12, %v834_v54, 0.0  ;;  %v865_v27 = vsel %vm438_vm12, %v863_v56, 0.0  ;;  %v1027_v54 = vld [vmem:[#allocation8 + $0x188] sm:$0xff] }
 0x6b6   :  { %837 = vadd.xlane.f32.xlu1 %v836_v0  ;;  %866 = vadd.xlane.f32.xlu2 %v865_v27  ;;  %v1035_v0 = vld [vmem:[#allocation8 + $0x1c8] sm:$0xff]  ;;  %v1010_v27 = vld [vmem:[#allocation8 + $0x100] sm:$0xff] }
 0x6b7   :  { %1097 = vmatpush.msrb.mxu3 %v1027_v54  ;;  %1117 = vmatpush.msra.mxu2 %v1035_v0 }
 0x6b8   :  { %1058 = vmatpush.msrb.mxu0 %v1010_v27 }
 0x6bd   :  { %v921_v57 = vpop.permute.xlu2 %920 }
 0x6be   :  { %v923_v58 = vsel %vm438_vm12, %v921_v57, 0.0  ;;  %v1018_v57 = vld [vmem:[#allocation8 + $0x140] sm:$0xff] }
 0x6bf   :  { %924 = vadd.xlane.f32.xlu1 %v923_v58  ;;  %1078 = vmatpush.msra.mxu1 %v1018_v57 }
 0x6cd   :  { %v805_v59 = vpop.permute.xlu0 %804 }
 0x6ce   :  { %v807_v62 = vsel %vm438_vm12, %v805_v59, 0.0  ;;  %v1026_v59 = vld [vmem:[#allocation8 + $0x180] sm:$0xff] }
 0x6cf   :  { %808 = vadd.xlane.f32.xlu0 %v807_v62  ;;  %v1034_v62 = vld [vmem:[#allocation8 + $0x1c0] sm:$0xff]  ;;  %1098 = vmatpush.msrb.mxu3 %v1026_v59 }
 0x6d0   :  { %1118 = vmatpush.msra.mxu2 %v1034_v62 }
 0x6d5   :  { %v892_v1 = vpop.permute.xlu0 %891 }
 0x6d6   :  { %v894_v55 = vsel %vm438_vm12, %v892_v1, 0.0  ;;  %v1009_v1 = vld [vmem:[#allocation8 + $0xf8] sm:$0xff] }
 0x6d7   :  { %895 = vadd.xlane.f32.xlu0 %v894_v55  ;;  %1059 = vmatpush.msrb.mxu0 %v1009_v1 }
 0x6dc   :  { %v979_v63 = vpop.permute.xlu1 %978 }
 0x6dd   :  { %v950_v43 = vpop.permute.xlu0 %949  ;;  %v981_v3 = vsel %vm438_vm12, %v979_v63, 0.0 }
 0x6de   :  { %v952_v5 = vsel %vm438_vm12, %v950_v43, 0.0  ;;  %v1017_v43 = vld [vmem:[#allocation8 + $0x138] sm:$0xff] }
 0x6df   :  { %953 = vadd.xlane.f32.xlu2 %v952_v5  ;;  %982 = vadd.xlane.f32.xlu0 %v981_v3  ;;  %v1025_v3 = vld [vmem:[#allocation8 + $0x178] sm:$0xff] }
 0x6e0   :  { %v1033_v5 = vld [vmem:[#allocation8 + $0x1b8] sm:$0xff]  ;;  %1079 = vmatpush.msra.mxu1 %v1017_v43  ;;  %1099 = vmatpush.msrb.mxu3 %v1025_v3 }
 0x6e1   :  { %1119 = vmatpush.msra.mxu2 %v1033_v5 }
 0x6ff   :  { %v779_v37 = vpop.xlane.xlu2 %778 }
 0x700   :  { %v780_v8 = vmul.f32 %v779_v37, %v2525_v2 }
 0x702   :  { %v2805_v11 = vadd.f32 1e-06, %v780_v8 }
 0x704   :  { %2038 = vrsqrt.f32 %v2805_v11  ;;  %vm788_vm2 = vweird.f32 %v2805_v11 }
 0x70a   :  { %v2816_v26 = vpop.eup %2038 }
 0x70b   :  { %v783_v33 = vmul.f32 %v2816_v26, %v2805_v11  ;;  %vm789_vm12 = vweird.f32 %v2816_v26 }
 0x70c   :  { %vm790_vm8 = vmor %vm788_vm2, %vm789_vm12 }
 0x70d   :  { %v784_v25 = vmul.f32 %v2816_v26, %v783_v33 }
 0x729   :  { %v838_v7 = vpop.xlane.xlu1 %837  ;;  %v867_v9 = vpop.xlane.xlu2 %866 }
 0x72a   :  { %v839_v28 = vmul.f32 %v838_v7, %v2525_v2  ;;  %v868_v13 = vmul.f32 %v867_v9, %v2525_v2  ;;  %v785_v7 = vmul.f32 0.5, %v784_v25 }
 0x72c   :  { %v2810_v12 = vadd.f32 1e-06, %v839_v28  ;;  %v2812_v23 = vadd.f32 1e-06, %v868_v13  ;;  %v1008_v28 = vld [vmem:[#allocation8 + $0xf0] sm:$0xff]  ;;  %v786_v45 = vsub.f32 1.5, %v785_v7 }
 0x72d   :  { %v1016_v13 = vld [vmem:[#allocation8 + $0x130] sm:$0xff]  ;;  %1060 = vmatpush.msrb.mxu0 %v1008_v28 }
 0x72e   :  { %2040 = vrsqrt.f32 %v2810_v12  ;;  %1080 = vmatpush.msra.mxu1 %v1016_v13  ;;  %v787_v53 = vmul.f32 %v2816_v26, %v786_v45  ;;  %vm847_vm10 = vweird.f32 %v2810_v12 }
 0x72f   :  { %2042 = vrsqrt.f32 %v2812_v23 }
 0x730   :  { %v791_v18 = vsel %vm790_vm8, %v2816_v26, %v787_v53 }
 0x731   :  { %v792_v27 = vmul.f32 %v791_v18, %v2792_v51 }
 0x732   :  { %v925_v48 = vpop.xlane.xlu1 %924 }
 0x733   :  { %v926_v20 = vmul.f32 %v925_v48, %v2525_v2  ;;  %v1024_v48 = vld [vmem:[#allocation8 + $0x170] sm:$0xff] }
 0x734   :  { %v2826_v10 = vpop.eup %2040  ;;  %1100 = vmatpush.msrb.mxu3 %v1024_v48 }
 0x735   :  { %v2820_v31 = vadd.f32 1e-06, %v926_v20  ;;  %v2830_v41 = vpop.eup %2042  ;;  %v842_v47 = vmul.f32 %v2826_v10, %v2810_v12  ;;  %v1032_v20 = vld [vmem:[#allocation8 + $0x1b0] sm:$0xff]  ;;  %vm848_vm9 = vweird.f32 %v2826_v10 }
 0x736   :  { %v871_v58 = vmul.f32 %v2830_v41, %v2812_v23  ;;  %1120 = vmatpush.msra.mxu2 %v1032_v20  ;;  %vm877_vm12 = vweird.f32 %v2830_v41 }
 0x737   :  { %v843_v8 = vmul.f32 %v2826_v10, %v842_v47 }
 0x742   :  { %v809_v46 = vpop.xlane.xlu0 %808 }
 0x743   :  { %v810_v61 = vmul.f32 %v809_v46, %v2525_v2  ;;  %v872_v46 = vmul.f32 %v2830_v41, %v871_v58 }
 0x745   :  { %v2822_v30 = vadd.f32 1e-06, %v810_v61  ;;  %v844_v61 = vmul.f32 0.5, %v843_v8  ;;  %v873_v33 = vmul.f32 0.5, %v872_v46 }
 0x747   :  { %2044 = vrsqrt.f32 %v2822_v30  ;;  %v845_v40 = vsub.f32 1.5, %v844_v61  ;;  %vm818_vm0 = vweird.f32 %v2822_v30  ;;  %v874_v47 = vsub.f32 1.5, %v873_v33 }
 0x748   :  { %2046 = vrsqrt.f32 %v2820_v31 }
 0x749   :  { %v846_v54 = vmul.f32 %v2826_v10, %v845_v40  ;;  %v875_v57 = vmul.f32 %v2830_v41, %v874_v47 }
 0x74a   :  { %v896_v50 = vpop.xlane.xlu0 %895 }
 0x74b   :  { %v897_v56 = vmul.f32 %v896_v50, %v2525_v2 }
 0x74d   :  { %v2838_v55 = vpop.eup %2044  ;;  %v2840_v63 = vadd.f32 1e-06, %v897_v56 }
 0x74e   :  { %v2842_v37 = vpop.eup %2046  ;;  %v813_v9 = vmul.f32 %v2838_v55, %v2822_v30  ;;  %vm819_vm14 = vweird.f32 %v2838_v55 }
 0x74f   :  { %2048 = vrsqrt.f32 %v2840_v63  ;;  %v929_v22 = vmul.f32 %v2842_v37, %v2820_v31  ;;  %vm820_vm6 = vmor %vm818_vm0, %vm819_vm14  ;;  %vm905_vm2 = vweird.f32 %v2840_v63 }
 0x750   :  { %v814_v21 = vmul.f32 %v2838_v55, %v813_v9  ;;  %vm2879_vm0 = vmor %vm847_vm10, %vm848_vm9  ;;  %vm935_vm10 = vweird.f32 %v2842_v37 }
 0x751   :  { %v930_v35 = vmul.f32 %v2842_v37, %v929_v22  ;;  %v850_v12 = vsel %vm2879_vm0, %v2826_v10, %v846_v54  ;;  %vm934_vm0 = vweird.f32 %v2820_v31  ;;  %v1975_v22 = vld [vmem:[#allocation8 + $0xe0] ss:$0 sm:$0xff] }
 0x752   :  { %v815_v24 = vmul.f32 0.5, %v814_v21  ;;  %v954_v29 = vpop.xlane.xlu2 %953  ;;  %v983_v32 = vpop.xlane.xlu0 %982  ;;  %v851_v10 = vmul.f32 %v850_v12, %v2751_v4  ;;  %v1201_v12 = vld [vmem:[#allocation8 + $0x220] sm:$0xff] }
 0x753   :  { %v955_v16 = vmul.f32 %v954_v29, %v2525_v2  ;;  %v984_v15 = vmul.f32 %v983_v32, %v2525_v2  ;;  %v931_v50 = vmul.f32 0.5, %v930_v35  ;;  %v1976_v29 = vld [vmem:[#allocation8 + $0xe8] ss:$0 sm:$0xff]  ;;  %1216 = vmatpush.msrb.mxu1 %v1201_v12  ;;  %v1429_v12 = vld [vmem:[#allocation8 + $0x278] sm:$0xff] }
 0x754   :  { %v816_v34 = vsub.f32 1.5, %v815_v24 }
 0x755   :  { %v2049_v19 = vpop.eup %2048  ;;  %v2857_v38 = vadd.f32 1e-06, %v955_v16  ;;  %v2859_v49 = vadd.f32 1e-06, %v984_v15  ;;  %v932_v58 = vsub.f32 1.5, %v931_v50 }
 0x756   :  { %v817_v42 = vmul.f32 %v2838_v55, %v816_v34  ;;  %v900_v2 = vmul.f32 %v2049_v19, %v2840_v63  ;;  %vm906_vm14 = vweird.f32 %v2049_v19 }
 0x757   :  { %2050 = vrsqrt.f32 %v2857_v38  ;;  %vm907_vm8 = vmor %vm905_vm2, %vm906_vm14  ;;  %v933_v63 = vmul.f32 %v2842_v37, %v932_v58 }
 0x758   :  { %v901_v25 = vmul.f32 %v2049_v19, %v900_v2  ;;  %2052 = vrsqrt.f32 %v2859_v49  ;;  %v821_v52 = vsel %vm820_vm6, %v2838_v55, %v817_v42  ;;  %vm876_vm6 = vweird.f32 %v2812_v23  ;;  %vm936_vm14 = vmor %vm934_vm0, %vm935_vm10 }
 0x759   :  { %v822_v11 = vmul.f32 %v821_v52, %v2754_v14  ;;  %vm878_vm9 = vmor %vm876_vm6, %vm877_vm12  ;;  %vm963_vm6 = vweird.f32 %v2857_v38  ;;  %v2227_v52 = vmov 16.0  }
 0x75a   :  { %v902_v30 = vmul.f32 0.5, %v901_v25  ;;  %v879_v3 = vsel %vm878_vm9, %v2830_v41, %v875_v57  ;;  %v937_v41 = vsel %vm936_vm14, %v2842_v37, %v933_v63  ;;  %vm992_vm9 = vweird.f32 %v2859_v49 }
 0x75b   :  { %v997_v1 = vsel %vm319_vm15, %v792_v27, %v822_v11  ;;  %v880_v28 = vmul.f32 %v879_v3, %v2743_v60  ;;  %v938_v60 = vmul.f32 %v937_v41, %v2768_v17  ;;  %v1977_v17 = vld [vmem:[#allocation8 + $0x1f0] ss:$0 sm:$0xff]  ;;  %2054 = vrcp.f32 %v2227_v52 }
 0x75c   :  { %v903_v56 = vsub.f32 1.5, %v902_v30  ;;  %v998_v23 = vsel %vm323_vm5, %v997_v1, %v851_v10  ;;  %v1175_v1 = vld [vmem:[#allocation8 + $0x208] sm:$0xff] }
 0x75d   :  { %v2051_v0 = vpop.eup %2050  ;;  %v999_v4 = vsel %vm327_vm4, %v998_v23, %v880_v28  ;;  %vm1134_vm4 = vcmask 1041408   ;;  %v1978_v28 = vld [vmem:[#allocation8 + $0x1f8] ss:$0 sm:$0xff] }
 0x75e   :  { %v2053_v59 = vpop.eup %2052  ;;  %v904_v14 = vmul.f32 %v2049_v19, %v903_v56  ;;  %v958_v62 = vmul.f32 %v2051_v0, %v2857_v38  ;;  %vm964_vm12 = vweird.f32 %v2051_v0 }
 0x75f   :  { %v987_v51 = vmul.f32 %v2053_v59, %v2859_v49  ;;  %vm993_vm2 = vweird.f32 %v2053_v59 }
 0x760   :  { %v908_v55 = vsel %vm907_vm8, %v2049_v19, %v904_v14  ;;  %v959_v43 = vmul.f32 %v2051_v0, %v958_v62  ;;  %vm965_vm8 = vmor %vm963_vm6, %vm964_vm12  ;;  %v1176_v14 = vld [vmem:[#allocation8 + $0x210] sm:$0xff]  ;;  %v1200_v62 = vld [vmem:[#allocation8 + $0x218] sm:$0xff] }
 0x761   :  { %v988_v5 = vmul.f32 %v2053_v59, %v987_v51  ;;  %v909_v8 = vmul.f32 %v908_v55, %v2765_v39  ;;  %vm994_vm10 = vmor %vm992_vm9, %vm993_vm2  ;;  %v2055_v18 = vpop.eup %2054  ;;  %1194 = vmatpush.msra.mxu0 %v1176_v14  ;;  %v1223_v51 = vld [vmem:[#allocation8 + $0x230] sm:$0xff]  ;;  %v1222_v55 = vld [vmem:[#allocation8 + $0x228] sm:$0xff]  ;;  %1217 = vmatpush.msrb.mxu1 %v1200_v62 }
 0x762   :  { %v960_v7 = vmul.f32 0.5, %v959_v43  ;;  %v1146_v54 = vmul.f32 16.0, %v2055_v18  ;;  %1238 = vmatpush.msra.mxu3 %v1223_v51  ;;  %v1428_v14 = vld [vmem:[#allocation8 + $0x270] sm:$0xff]  ;;  %v80_v51 = vld [vmem:[#allocation7 + $0x8] sm:$0xff] }
 0x763   :  { %v989_v9 = vmul.f32 0.5, %v988_v5  ;;  %v1000_v31 = vsel %vm361_vm7, %v999_v4, %v909_v8  ;;  %1195 = vmatpush.msra.mxu0 %v1175_v1  ;;  %v79_v62 = vld [vmem:[#allocation7] sm:$0xff]  ;;  %v1980_v1 = vld [vmem:[#allocation8 + $0x248] ss:$0 sm:$0xff] }
 0x764   :  { %v961_v13 = vsub.f32 1.5, %v960_v7  ;;  %v1001_v61 = vsel %vm676_vm11, %v1000_v31, %v938_v60  ;;  %vm1136_vm11 = vcmask 1043456   ;;  %v1147_v30 = vsub.f32 1.0, %v1146_v54  ;;  %1239 = vmatpush.msra.mxu3 %v1222_v55 }
 0x765   :  { %v990_v48 = vsub.f32 1.5, %v989_v9 }
 0x766   :  { %v962_v20 = vmul.f32 %v2051_v0, %v961_v13  ;;  %v1148_v11 = vmul.f32 %v2055_v18, %v1147_v30  ;;  %v1348_v30 = vld [vmem:[#allocation8 + $0x240] sm:$0xff] }
 0x767   :  { %v991_v46 = vmul.f32 %v2053_v59, %v990_v48  ;;  %v1979_v48 = vld [vmem:[#allocation8 + $0x200] ss:$0 sm:$0xff]  ;;  %1368 = vmatpush.msrb.mxu2 %v1348_v30 }
 0x768   :  { %v966_v39 = vsel %vm965_vm8, %v2051_v0, %v962_v20  ;;  %v1149_v56 = vadd.f32 %v2055_v18, %v1148_v11  ;;  %v1347_v11 = vld [vmem:[#allocation8 + $0x238] sm:$0xff] }
 0x769   :  { %v967_v21 = vmul.f32 %v966_v39, %v2779_v36  ;;  %v995_v37 = vsel %vm994_vm10, %v2053_v59, %v991_v46  ;;  %1369 = vmatpush.msrb.mxu2 %v1347_v11 }
 0x76a   :  { %v996_v45 = vmul.f32 %v995_v37, %v2782_v44  ;;  %v1244_v37 = vld [vmem:[#allocation8 + $0x3c8] sm:$0xff] }
 0x76b   :  { %v1002_v24 = vsel %vm678_vm1, %v1001_v61, %v967_v21  ;;  %vm1138_vm1 = vcmask 1045504  }
 0x76c   :  { %v1003_v32 = vsel %vm680_vm3, %v1002_v24, %v996_v45  ;;  %vm1150_vm3 = vweird.f32 %v2055_v18 }
 0x76d   :  { %v1005_v16 = vmul.f32 %v1975_v22, %v1003_v32  ;;  %v2918_v0 = vsel %vm1150_vm3, %v2055_v18, %v1149_v56 }
 0x76f   :  { %v1007_v15 = vadd.f32 %v1976_v29, %v1005_v16  ;;  %v1245_v29 = vld [vmem:[#allocation8 + $0x3d0] sm:$0xff] }
 0x771   :  { %1905 = vmatmul.msk.f32.vlgmr.msrb.gmra.mxu0 %vm716_vm13, %v1007_v15  ;;  %1906 = vmatmul.msk.f32.vlgmr.msra.gmra.mxu1 %vm716_vm13, %v1007_v15 }
 0x772   :  { %1907 = vmatmul.msk.f32.vlgmr.msrb.gmra.mxu3 %vm716_vm13, %v1007_v15  ;;  %1908 = vmatmul.msk.f32.vlgmr.msra.gmra.mxu2 %vm716_vm13, %v1007_v15 }
 0x7ee   :  { %v1082_v36 = vpop.f32.mrf.mxu1  ;;  %v1062_v33 = vpop.f32.mrf.mxu0 }
 0x7ef   :  { %v1083_v44 = vadd.f32 %v1977_v17, %v1082_v36  ;;  %v1063_v53 = vadd.f32 %v1977_v17, %v1062_v33 }
 0x7f1   :  { %v1126_v34 = vrot.slane %v1083_v44, 6 }
 0x7f3   :  { %v1135_v2 = vsel %vm1134_vm4, %v1063_v53, %v1126_v34 }
 0x7f5   :  { %v1102_v19 = vpop.f32.mrf.mxu3  ;;  %v1122_v35 = vpop.f32.mrf.mxu2 }
 0x7f6   :  { %v1103_v38 = vadd.f32 %v1977_v17, %v1102_v19  ;;  %v1123_v49 = vadd.f32 %v1977_v17, %v1122_v35 }
 0x7f8   :  { %v1129_v40 = vrot.slane %v1103_v38, 4  ;;  %v1132_v42 = vrot.slane %v1123_v49, 2 }
 0x7fa   :  { %v1137_v25 = vsel %vm1136_vm11, %v1135_v2, %v1129_v40 }
 0x7fb   :  { %v2914_v47 = vsel %vm1138_vm1, %v1137_v25, %v1132_v42 }
 0x7fc   :  { %v1142_v50 = vsel %vm323_vm5, %v2914_v47, 0.0 }
 0x7fd   :  { %1143 = vadd.xlane.f32.xlu1 %v1142_v50 }
 0x870   :  { %v1144_v27 = vpop.xlane.xlu1 %1143 }
 0x871   :  { %v1152_v57 = vmul.f32 %v2918_v0, %v1144_v27 }
 0x873   :  { %v1153_v26 = vsub.f32 %v2914_v47, %v1152_v57 }
 0x875   :  { %v1154_v58 = vmul.f32 %v1153_v26, %v1153_v26 }
 0x877   :  { %v1155_v59 = vsel %vm323_vm5, %v1154_v58, 0.0  ;;  %v1431_v58 = vld [vmem:[#allocation8 + $0x288] sm:$0xff] }
 0x878   :  { %1156 = vadd.xlane.f32.xlu2 %v1155_v59  ;;  %v1430_v59 = vld [vmem:[#allocation8 + $0x280] sm:$0xff]  ;;  %1450 = vmatpush.msra.mxu2 %v1431_v58 }
 0x87a   :  { %1451 = vmatpush.msra.mxu2 %v1430_v59 }
 0x87c   :  { %1452 = vmatpush.msra.mxu2 %v1429_v12 }
 0x87e   :  { %1453 = vmatpush.msra.mxu2 %v1428_v14 }
 0x8eb   :  { %v1157_v43 = vpop.xlane.xlu2 %1156 }
 0x8ec   :  { %v1158_v3 = vmul.f32 %v1157_v43, %v2918_v0 }
 0x8ee   :  { %v1159_v10 = vadd.f32 1e-05, %v1158_v3 }
 0x8f0   :  { %2056 = vrsqrt.f32 %v1159_v10  ;;  %vm1166_vm14 = vweird.f32 %v1159_v10 }
 0x8f6   :  { %v2057_v63 = vpop.eup %2056 }
 0x8f7   :  { %v1161_v5 = vmul.f32 %v2057_v63, %v1159_v10  ;;  %vm1167_vm0 = vweird.f32 %v2057_v63 }
 0x8f8   :  { %vm1168_vm12 = vmor %vm1166_vm14, %vm1167_vm0 }
 0x8f9   :  { %v1162_v7 = vmul.f32 %v2057_v63, %v1161_v5 }
 0x8fb   :  { %v1163_v23 = vmul.f32 0.5, %v1162_v7 }
 0x8fd   :  { %v1164_v8 = vsub.f32 1.5, %v1163_v23 }
 0x8ff   :  { %v1165_v9 = vmul.f32 %v2057_v63, %v1164_v8 }
 0x901   :  { %v1169_v13 = vsel %vm1168_vm12, %v2057_v63, %v1165_v9 }
 0x902   :  { %v1170_v41 = vmul.f32 %v1169_v13, %v1153_v26  ;;  %v1403_v13 = vld [vmem:[#allocation8 + $0x260] sm:$0xff] }
 0x904   :  { %v1172_v4 = vmul.f32 %v1978_v28, %v1170_v41 }
 0x906   :  { %v1174_v20 = vadd.f32 %v1979_v48, %v1172_v4 }
 0x908   :  { %1909 = vmatmul.msk.f32.vlgmr.msra.gmra.mxu0 %vm323_vm5, %v1174_v20  ;;  %1910 = vmatmul.msk.f32.vlgmr.msrb.gmra.mxu1 %vm323_vm5, %v1174_v20 }
 0x909   :  { %1911 = vmatmul.msk.f32.vlgmr.msra.gmra.mxu3 %vm323_vm5, %v1174_v20 }
 0x985   :  { %v1197_v31 = vpop.f32.mrf.mxu0  ;;  %v1219_v46 = vpop.f32.mrf.mxu1 }
 0x986   :  { %1250 = vrot.lane.b32.xlu0 %v1219_v46, %s2217_s10  ;;  %1247 = vrot.lane.b32.xlu1 %v1197_v31, %s2217_s10 }
 0x98c   :  { %v1241_v17 = vpop.f32.mrf.mxu3 }
 0x9f8   :  { %v1251_v60 = vpop.permute.xlu0 %1250  ;;  %v1248_v39 = vpop.permute.xlu1 %1247 }
 0x9f9   :  { %1912 = vmatpush.xpose.msk.msrb.mxu0 %vm319_vm15, %v1251_v60 }
 0x9fd   :  { %1913 = vmatpush.xpose.msk.msrb.mxu0 %vm319_vm15, %v1219_v46 }
 0xa00   :  { %1914 = vmatmul.msk.f32.vlgmr.msrb.gmra.mxu0 %vm319_vm15, %v1197_v31 }
 0xa08   :  { %1915 = vmatmul.msk.f32.gmra.mxu0 %vm319_vm15, %v1248_v39 }
 0xa7d   :  { %v1281_v21 = vpop.f32.mrf.mxu0 }
 0xa7e   :  { %v1287_v22 = vmul.f32 0.35355338, %v1281_v21 }
 0xa80   :  { %v1289_v45 = vadd.f32 %v1287_v22, %v1244_v37  ;;  %v1981_v37 = vld [vmem:[#allocation8 + $0x250] ss:$0 sm:$0xff] }
 0xa82   :  { %v1291_v61 = vsel %vm323_vm5, %v1289_v45, -inf }
 0xa83   :  { %1292 = vmax.xlane.f32.xlu2 %v1291_v61  ;;  %v1982_v61 = vld [vmem:[#allocation8 + $0x258] ss:$0 sm:$0xff] }
 0xa85   :  { %v1284_v24 = vpop.f32.mrf.mxu0 }
 0xa86   :  { %v1288_v32 = vmul.f32 0.35355338, %v1284_v24 }
 0xa88   :  { %v1290_v16 = vadd.f32 %v1288_v32, %v1245_v29 }
 0xa8a   :  { %v1294_v15 = vsel %vm323_vm5, %v1290_v16, -inf }
 0xa8b   :  { %1295 = vmax.xlane.f32.xlu2 %v1294_v15 }
 0xaa3   :  { %1253 = vrot.lane.b32.xlu2 %v1241_v17, %s2217_s10 }
 0xaf6   :  { %v1293_v36 = vpop.xlane.xlu2 %1292 }
 0xaf7   :  { %v1297_v44 = vsub.f32 %v1289_v45, %v1293_v36  ;;  %v1463_v36 = vld [vmem:[#allocation8 + $0x2a0] sm:$0xff] }
 0xaf9   :  { %v1299_v33 = vmul.f32 1.442695, %v1297_v44  ;;  %v1462_v44 = vld [vmem:[#allocation8 + $0x298] sm:$0xff] }
 0xafb   :  { %2058 = vpow2.f32 %v1299_v33  ;;  %v1461_v33 = vld [vmem:[#allocation8 + $0x290] sm:$0xff] }
 0xafe   :  { %v1296_v34 = vpop.xlane.xlu2 %1295 }
 0xaff   :  { %v1298_v19 = vsub.f32 %v1290_v16, %v1296_v34 }
 0xb01   :  { %v2059_v35 = vpop.eup %2058  ;;  %v1301_v38 = vmul.f32 1.442695, %v1298_v19 }
 0xb02   :  { %v1303_v49 = vsel %vm323_vm5, %v2059_v35, 0.0 }
 0xb03   :  { %2060 = vpow2.f32 %v1301_v38  ;;  %1304 = vadd.xlane.f32.xlu0 %v1303_v49 }
 0xb06   :  { %v1254_v53 = vpop.permute.xlu2 %1253 }
 0xb07   :  { %1333 = vmatpush.msra.mxu1 %v1254_v53 }
 0xb09   :  { %v2061_v40 = vpop.eup %2060  ;;  %1334 = vmatpush.msra.mxu1 %v1241_v17  ;;  %v1464_v17 = vld [vmem:[#allocation8 + $0x2a8] sm:$0xff] }
 0xb0a   :  { %v1306_v42 = vsel %vm323_vm5, %v2061_v40, 0.0 }
 0xb0b   :  { %1307 = vadd.xlane.f32.xlu1 %v1306_v42  ;;  %v1489_v42 = vld [vmem:[#allocation8 + $0x3e0] sm:$0xff] }
 0xb76   :  { %v1305_v2 = vpop.xlane.xlu0 %1304 }
 0xb77   :  { %2062 = vrcp.f32 %v1305_v2 }
 0xb7d   :  { %v2063_v25 = vpop.eup %2062 }
 0xb7e   :  { %v1311_v50 = vmul.f32 %v2063_v25, %v2059_v35  ;;  %v1308_v52 = vpop.xlane.xlu1 %1307  ;;  %v1488_v35 = vld [vmem:[#allocation8 + $0x3d8] sm:$0xff] }
 0xb7f   :  { %2064 = vrcp.f32 %v1308_v52 }
 0xb80   :  { %1916 = vmatmul.msk.f32.vlgmr.msra.gmra.mxu1 %vm323_vm5, %v1311_v50 }
 0xb85   :  { %v2065_v18 = vpop.eup %2064 }
 0xb86   :  { %v1312_v54 = vmul.f32 %v2065_v18, %v2061_v40 }
 0xb88   :  { %1917 = vmatmul.msk.f32.gmra.mxu1 %vm323_vm5, %v1312_v54 }
 0xbfd   :  { %v1336_v56 = vpop.f32.mrf.mxu1 }
 0xc05   :  { %v1339_v27 = vpop.f32.mrf.mxu1 }
 0xc06   :  { %1343 = vrot.lane.b32.xlu2 %v1339_v27, %s2212_s0 }
 0xc60   :  { %v1344_v57 = vpop.permute.xlu2 %1343 }
 0xc61   :  { %v1346_v26 = vsel %vm319_vm15, %v1336_v56, %v1344_v57 }
 0xc62   :  { %1918 = vmatmul.msk.f32.vlgmr.msrb.gmra.mxu2 %vm323_vm5, %v1346_v26 }
 0xc6a   :  { %1920 = vmatmul.msk.f32.vlgmr.msra.gmra.mxu2 %vm361_vm7, %v79_v62 }
 0xc72   :  { %1921 = vmatmul.msk.f32.gmra.mxu2 %vm361_vm7, %v80_v51 }
 0xce5   :  { %v1371_v55 = vpop.f32.mrf.mxu2 }
 0xce6   :  { %v1372_v43 = vadd.f32 %v1980_v1, %v1371_v55 }
 0xce8   :  { %v2946_v3 = vadd.f32 %v1372_v43, %v2914_v47  ;;  %v1404_v47 = vld [vmem:[#allocation8 + $0x268] sm:$0xff] }
 0xce9   :  { %1422 = vmatpush.msrb.mxu3 %v1404_v47 }
 0xcea   :  { %v1377_v10 = vsel %vm323_vm5, %v2946_v3, 0.0 }
 0xceb   :  { %1378 = vadd.xlane.f32.xlu2 %v1377_v10  ;;  %1423 = vmatpush.msrb.mxu3 %v1403_v13 }
 0xced   :  { %v1455_v9 = vpop.f32.mrf.mxu2  ;;  %1477 = vmatpush.msra.mxu3 %v1464_v17 }
 0xcef   :  { %1478 = vmatpush.msra.mxu3 %v1463_v36 }
 0xcf1   :  { %1479 = vmatpush.msra.mxu3 %v1462_v44  ;;  %v1984_v44 = vld [vmem:[#allocation8 + $0x2c8] ss:$0 sm:$0xff] }
 0xcf3   :  { %1480 = vmatpush.msra.mxu3 %v1461_v33 }
 0xcf5   :  { %v1458_v28 = vpop.f32.mrf.mxu2 }
 0xcf6   :  { %1497 = vrot.lane.b32.xlu1 %v1458_v28, %s2217_s10 }
 0xd5e   :  { %v1379_v63 = vpop.xlane.xlu2 %1378 }
 0xd5f   :  { %v1380_v5 = vmul.f32 %v1379_v63, %v2918_v0 }
 0xd61   :  { %v1381_v7 = vsub.f32 %v2946_v3, %v1380_v5 }
 0xd63   :  { %v1382_v23 = vmul.f32 %v1381_v7, %v1381_v7 }
 0xd65   :  { %v1383_v8 = vsel %vm323_vm5, %v1382_v23, 0.0  ;;  %v1603_v23 = vld [vmem:[#allocation8 + $0x2b8] sm:$0xff] }
 0xd66   :  { %1384 = vadd.xlane.f32.xlu0 %v1383_v8  ;;  %v1602_v8 = vld [vmem:[#allocation8 + $0x2b0] sm:$0xff]  ;;  %1623 = vmatpush.msrb.mxu2 %v1603_v23 }
 0xd67   :  { %v1987_v23 = vld [vmem:[#allocation8 + $0x330] ss:$0 sm:$0xff] }
 0xd68   :  { %v1498_v32 = vpop.permute.xlu1 %1497  ;;  %1624 = vmatpush.msrb.mxu2 %v1602_v8 }
 0xd69   :  { %1924 = vmatpush.xpose.msk.msra.mxu0 %vm319_vm15, %v1498_v32 }
 0xd7a   :  { %1495 = vrot.lane.b32.xlu0 %v1455_v9, %s2217_s10 }
 0xdd9   :  { %v1385_v41 = vpop.xlane.xlu0 %1384 }
 0xdda   :  { %v1386_v48 = vmul.f32 %v1385_v41, %v2918_v0  ;;  %v1983_v41 = vld [vmem:[#allocation8 + $0x2c0] ss:$0 sm:$0xff] }
 0xddc   :  { %v1387_v4 = vadd.f32 1e-05, %v1386_v48 }
 0xdde   :  { %2066 = vrsqrt.f32 %v1387_v4  ;;  %vm1394_vm6 = vweird.f32 %v1387_v4 }
 0xde4   :  { %v2067_v20 = vpop.eup %2066 }
 0xde5   :  { %v1389_v31 = vmul.f32 %v2067_v20, %v1387_v4  ;;  %vm1395_vm2 = vweird.f32 %v2067_v20 }
 0xde6   :  { %vm1396_vm8 = vmor %vm1394_vm6, %vm1395_vm2 }
 0xde7   :  { %v1390_v46 = vmul.f32 %v2067_v20, %v1389_v31 }
 0xde9   :  { %v1391_v60 = vmul.f32 0.5, %v1390_v46 }
 0xdeb   :  { %v1392_v39 = vsub.f32 1.5, %v1391_v60 }
 0xdec   :  { %v1496_v16 = vpop.permute.xlu0 %1495 }
 0xded   :  { %v1393_v21 = vmul.f32 %v2067_v20, %v1392_v39  ;;  %1925 = vmatpush.xpose.msk.msra.mxu0 %vm319_vm15, %v1496_v16 }
 0xdef   :  { %v1397_v22 = vsel %vm1396_vm8, %v2067_v20, %v1393_v21 }
 0xdf0   :  { %v1398_v45 = vmul.f32 %v1397_v22, %v1381_v7  ;;  %v1659_v22 = vld [vmem:[#allocation8 + $0x2e0] sm:$0xff] }
 0xdf1   :  { %1926 = vmatpush.xpose.msk.msra.mxu0 %vm319_vm15, %v1458_v28 }
 0xdf2   :  { %v1400_v24 = vmul.f32 %v1981_v37, %v1398_v45  ;;  %v1658_v45 = vld [vmem:[#allocation8 + $0x2d8] sm:$0xff] }
 0xdf4   :  { %v1402_v29 = vadd.f32 %v1982_v61, %v1400_v24 }
 0xdf5   :  { %1927 = vmatpush.xpose.msk.msra.mxu0 %vm319_vm15, %v1455_v9 }
 0xdf6   :  { %1919 = vmatmul.msk.f32.vlgmr.msrb.gmra.mxu3 %vm323_vm5, %v1402_v29 }
 0xdf7   :  { %1679 = vmatpush.msrb.mxu3 %v1659_v22 }
 0xdf9   :  { %1680 = vmatpush.msrb.mxu3 %v1658_v45 }
 0xdfe   :  { %1922 = vmatmul.msk.f32.vlgmr.msra.gmra.mxu3 %vm361_vm7, %v79_v62 }
 0xe06   :  { %1923 = vmatmul.msk.f32.gmra.mxu3 %vm361_vm7, %v80_v51 }
 0xe79   :  { %v1425_v15 = vpop.f32.mrf.mxu3 }
 0xe7a   :  { %1491 = vrot.lane.b32.xlu0 %v1425_v15, %s2217_s10  ;;  %1928 = vmatmul.msk.f32.vlgmr.msra.gmra.mxu0 %vm319_vm15, %v1425_v15 }
 0xe81   :  { %v1482_v30 = vpop.f32.mrf.mxu3 }
 0xe89   :  { %v1485_v27 = vpop.f32.mrf.mxu3 }
 0xe8a   :  { %v1962_v57 = vpack.i.bf16 %v1482_v30, %v1485_v27 }
 0xeec   :  { %v1492_v34 = vpop.permute.xlu0 %1491 }
 0xeed   :  { %1929 = vmatmul.msk.f32.gmra.mxu0 %vm319_vm15, %v1492_v34 }
 0xef7   :  { %v1536_v19 = vpop.f32.mrf.mxu0 }
 0xef8   :  { %v1542_v38 = vmul.f32 0.35355338, %v1536_v19  ;;  %v1985_v19 = vld [vmem:[#allocation8 + $0x2d0] ss:$0 sm:$0xff] }
 0xefa   :  { %v1544_v49 = vadd.f32 %v1542_v38, %v1488_v35 }
 0xefc   :  { %v1546_v53 = vsel %vm361_vm7, %v1544_v49, -inf }
 0xefd   :  { %1547 = vmax.xlane.f32.xlu1 %v1546_v53  ;;  %v1704_v53 = vld [vmem:[#allocation8 + $0x318] sm:$0xff] }
 0xf6a   :  { %v1539_v40 = vpop.f32.mrf.mxu0 }
 0xf6b   :  { %v1543_v2 = vmul.f32 0.35355338, %v1539_v40  ;;  %v1703_v40 = vld [vmem:[#allocation8 + $0x310] sm:$0xff] }
 0xf6d   :  { %v1545_v25 = vadd.f32 %v1543_v2, %v1489_v42  ;;  %v1986_v42 = vld [vmem:[#allocation8 + $0x2e8] ss:$0 sm:$0xff] }
 0xf6e   :  { %v1702_v2 = vld [vmem:[#allocation8 + $0x308] sm:$0xff] }
 0xf6f   :  { %v1549_v50 = vsel %vm361_vm7, %v1545_v25, -inf }
 0xf70   :  { %v1548_v52 = vpop.xlane.xlu1 %1547  ;;  %1550 = vmax.xlane.f32.xlu2 %v1549_v50  ;;  %v1701_v50 = vld [vmem:[#allocation8 + $0x300] sm:$0xff] }
 0xf71   :  { %v1552_v18 = vsub.f32 %v1544_v49, %v1548_v52  ;;  %v1705_v49 = vld [vmem:[#allocation8 + $0x320] sm:$0xff] }
 0xf73   :  { %v1554_v54 = vmul.f32 1.442695, %v1552_v18  ;;  %v1700_v18 = vld [vmem:[#allocation8 + $0x2f8] sm:$0xff] }
 0xf75   :  { %2068 = vpow2.f32 %v1554_v54 }
 0xf7b   :  { %v2069_v11 = vpop.eup %2068 }
 0xf7c   :  { %v1558_v56 = vsel %vm361_vm7, %v2069_v11, 0.0 }
 0xf7d   :  { %1559 = vadd.xlane.f32.xlu0 %v1558_v56 }
 0xf88   :  { %1963 = vrot.lane.b32.xlu2 %v1962_v57, %s2217_s10 }
 0xfe3   :  { %v1551_v26 = vpop.xlane.xlu2 %1550 }
 0xfe4   :  { %v1553_v58 = vsub.f32 %v1545_v25, %v1551_v26 }
 0xfe6   :  { %v1556_v59 = vmul.f32 1.442695, %v1553_v58 }
 0xfe8   :  { %2070 = vpow2.f32 %v1556_v59 }
 0xfeb   :  { %v1964_v12 = vpop.permute.xlu2 %1963 }
 0xfec   :  { %v1966_v14 = vunpack.i.h.bf16 %v1964_v12  ;;  %v1965_v62 = vunpack.i.l.bf16 %v1964_v12  ;;  %v1699_v12 = vld [vmem:[#allocation8 + $0x2f0] sm:$0xff] }
 0xfee   :  { %v2071_v51 = vpop.eup %2070  ;;  %1586 = vmatpush.msrb.mxu1 %v1965_v62 }
 0xfef   :  { %v1561_v1 = vsel %vm361_vm7, %v2071_v51, 0.0 }
 0xff0   :  { %1562 = vadd.xlane.f32.xlu2 %v1561_v1  ;;  %1587 = vmatpush.msrb.mxu1 %v1966_v14  ;;  %v1560_v55 = vpop.xlane.xlu0 %1559  ;;  %v1734_v14 = vld [vmem:[#allocation8 + $0x340] sm:$0xff]  ;;  %v1736_v1 = vld [vmem:[#allocation8 + $0x350] sm:$0xff] }
 0xff1   :  { %2072 = vrcp.f32 %v1560_v55  ;;  %v1738_v55 = vld [vmem:[#allocation8 + $0x360] sm:$0xff]  ;;  %1785 = vmatpush.msra.mxu2 %v1736_v1 }
 0xff2   :  { %1588 = vmatpush.msrb.mxu1 %v1485_v27  ;;  %1809 = vmatpush.msra.mxu3 %v1738_v55 }
 0xff4   :  { %1589 = vmatpush.msrb.mxu1 %v1482_v30 }
 0xff6   :  { %1761 = vmatpush.msra.mxu1 %v1734_v14 }
 0xff7   :  { %v2073_v43 = vpop.eup %2072 }
 0xff8   :  { %v1566_v10 = vmul.f32 %v2073_v43, %v2069_v11  ;;  %v1733_v43 = vld [vmem:[#allocation8 + $0x338] sm:$0xff] }
 0xff9   :  { %1762 = vmatpush.msra.mxu1 %v1733_v43 }
 0xffa   :  { %1930 = vmatmul.msk.f32.vlgmr.msrb.gmra.mxu1 %vm361_vm7, %v1566_v10  ;;  %v1735_v10 = vld [vmem:[#allocation8 + $0x348] sm:$0xff] }
 0xffb   :  { %1786 = vmatpush.msra.mxu2 %v1735_v10 }
0x1063   :  { %v1563_v63 = vpop.xlane.xlu2 %1562 }
0x1064   :  { %2074 = vrcp.f32 %v1563_v63  ;;  %v1740_v63 = vld [vmem:[#allocation8 + $0x370] sm:$0xff] }
0x106a   :  { %v2075_v5 = vpop.eup %2074 }
0x106b   :  { %v1567_v7 = vmul.f32 %v2075_v5, %v2071_v51  ;;  %v1737_v5 = vld [vmem:[#allocation8 + $0x358] sm:$0xff] }
0x106c   :  { %1810 = vmatpush.msra.mxu3 %v1737_v5 }
0x106d   :  { %1931 = vmatmul.msk.f32.gmra.mxu1 %vm361_vm7, %v1567_v7  ;;  %v1739_v7 = vld [vmem:[#allocation8 + $0x368] sm:$0xff] }
0x1077   :  { %v1591_v9 = vpop.f32.mrf.mxu1 }
0x10ea   :  { %v1594_v28 = vpop.f32.mrf.mxu1 }
0x10eb   :  { %1598 = vrot.lane.b32.xlu1 %v1594_v28, %s2212_s0 }
0x115d   :  { %v1599_v47 = vpop.permute.xlu1 %1598 }
0x115e   :  { %v1601_v13 = vsel %vm319_vm15, %v1591_v9, %v1599_v47 }
0x115f   :  { %1932 = vmatmul.msk.f32.vlgmr.msrb.gmra.mxu2 %vm323_vm5, %v1601_v13 }
0x11e2   :  { %v1626_v48 = vpop.f32.mrf.mxu2 }
0x11e3   :  { %v1627_v4 = vadd.f32 %v1983_v41, %v1626_v48  ;;  %v1847_v48 = vld [vmem:[#allocation8 + $0x3b8] sm:$0xff] }
0x11e4   :  { %1861 = vmatpush.msrb.mxu1 %v1847_v48 }
0x11e5   :  { %v2977_v20 = vadd.f32 %v1627_v4, %v2946_v3  ;;  %v1846_v4 = vld [vmem:[#allocation8 + $0x3b0] sm:$0xff] }
0x11e6   :  { %1862 = vmatpush.msrb.mxu1 %v1846_v4 }
0x11e7   :  { %v1632_v31 = vsel %vm323_vm5, %v2977_v20, 0.0 }
0x11e8   :  { %1633 = vadd.xlane.f32.xlu0 %v1632_v31  ;;  %v1845_v31 = vld [vmem:[#allocation8 + $0x3a8] sm:$0xff] }
0x11e9   :  { %1863 = vmatpush.msrb.mxu1 %v1845_v31 }
0x125b   :  { %v1634_v46 = vpop.xlane.xlu0 %1633 }
0x125c   :  { %v1635_v60 = vmul.f32 %v1634_v46, %v2918_v0  ;;  %v1844_v46 = vld [vmem:[#allocation8 + $0x3a0] sm:$0xff] }
0x125d   :  { %1864 = vmatpush.msrb.mxu1 %v1844_v46 }
0x125e   :  { %v1636_v39 = vsub.f32 %v2977_v20, %v1635_v60  ;;  %v1842_v60 = vld [vmem:[#allocation8 + $0x390] sm:$0xff] }
0x1260   :  { %v1637_v21 = vmul.f32 %v1636_v39, %v1636_v39 }
0x1262   :  { %v1638_v37 = vsel %vm323_vm5, %v1637_v21, 0.0  ;;  %v1840_v21 = vld [vmem:[#allocation8 + $0x380] sm:$0xff] }
0x1263   :  { %1639 = vadd.xlane.f32.xlu0 %v1638_v37  ;;  %v1988_v37 = vld [vmem:[#allocation8 + $0x378] ss:$0 sm:$0xff] }
0x1264   :  { %v1743_v45 = vadd.f32 %v1988_v37, %v2716_v6 }
0x12d6   :  { %v1640_v61 = vpop.xlane.xlu0 %1639 }
0x12d7   :  { %v1641_v3 = vmul.f32 %v1640_v61, %v2918_v0  ;;  %v1706_v0 = vld [vmem:[#allocation8 + $0x328] sm:$0xff] }
0x12d8   :  { %1720 = vmatpush.msrb.mxu0 %v1706_v0 }
0x12d9   :  { %v1642_v24 = vadd.f32 1e-05, %v1641_v3 }
0x12da   :  { %1721 = vmatpush.msrb.mxu0 %v1705_v49 }
0x12db   :  { %2076 = vrsqrt.f32 %v1642_v24  ;;  %vm1649_vm7 = vweird.f32 %v1642_v24 }
0x12dc   :  { %1722 = vmatpush.msrb.mxu0 %v1704_v53 }
0x12de   :  { %1723 = vmatpush.msrb.mxu0 %v1703_v40 }
0x12e0   :  { %1724 = vmatpush.msrb.mxu0 %v1702_v2 }
0x12e1   :  { %v2077_v29 = vpop.eup %2076 }
0x12e2   :  { %v1644_v32 = vmul.f32 %v2077_v29, %v1642_v24  ;;  %vm1650_vm15 = vweird.f32 %v2077_v29  ;;  %1725 = vmatpush.msrb.mxu0 %v1701_v50 }
0x12e3   :  { %vm1651_vm9 = vmor %vm1649_vm7, %vm1650_vm15 }
0x12e4   :  { %v1645_v16 = vmul.f32 %v2077_v29, %v1644_v32  ;;  %1726 = vmatpush.msrb.mxu0 %v1700_v18 }
0x12e6   :  { %v1646_v15 = vmul.f32 0.5, %v1645_v16  ;;  %1727 = vmatpush.msrb.mxu0 %v1699_v12 }
0x12e8   :  { %v1647_v17 = vsub.f32 1.5, %v1646_v15  ;;  %1833 = vmatpush.msra.mxu0 %v1740_v63 }
0x12ea   :  { %v1648_v36 = vmul.f32 %v2077_v29, %v1647_v17  ;;  %1834 = vmatpush.msra.mxu0 %v1739_v7  ;;  %v1989_v17 = vld [vmem:[#allocation8 + $0x3c0] ss:$0 sm:$0xff] }
0x12ec   :  { %v1652_v33 = vsel %vm1651_vm9, %v2077_v29, %v1648_v36 }
0x12ed   :  { %v1653_v34 = vmul.f32 %v1652_v33, %v1636_v39  ;;  %v1841_v39 = vld [vmem:[#allocation8 + $0x388] sm:$0xff] }
0x12ef   :  { %v1655_v35 = vmul.f32 %v1984_v44, %v1653_v34 }
0x12f1   :  { %v1657_v38 = vadd.f32 %v1985_v19, %v1655_v35 }
0x12f3   :  { %1933 = vmatmul.msk.f32.vlgmr.msrb.gmra.mxu3 %vm323_vm5, %v1657_v38 }
0x1376   :  { %v1682_v25 = vpop.f32.mrf.mxu3 }
0x1377   :  { %v1683_v52 = vadd.f32 %v1986_v42, %v1682_v25 }
0x1379   :  { %v1686_v54 = vmul.f32 0.044715, %v1683_v52  ;;  %v1685_v26 = vmul.f32 0.5, %v1683_v52 }
0x137b   :  { %v1687_v30 = vmul.f32 %v1686_v54, %v1683_v52 }
0x137d   :  { %v1688_v11 = vmul.f32 %v1687_v30, %v1683_v52 }
0x137f   :  { %v1689_v56 = vadd.f32 %v1688_v11, %v1683_v52 }
0x1381   :  { %v1690_v27 = vmul.f32 0.7978846, %v1689_v56 }
0x1383   :  { %2078 = vtanh.f32 %v1690_v27 }
0x1389   :  { %v2079_v57 = vpop.eup %2078 }
0x138a   :  { %v1692_v58 = vadd.f32 1.0, %v2079_v57 }
0x138c   :  { %v1693_v59 = vmul.f32 %v1692_v58, %v1685_v26 }
0x138e   :  { %1695 = vrot.lane.b32.xlu0 %v1693_v59, %s2228_s18 }
0x1400   :  { %v1696_v62 = vpop.permute.xlu0 %1695 }
0x1401   :  { %v1698_v51 = vmul.f32 %v1696_v62, %v1683_v52 }
0x1403   :  { %1934 = vmatmul.msk.f32.vlgmr.msrb.gmra.mxu0 %vm716_vm13, %v1698_v51 }
0x1480   :  { %v1729_v8 = vpop.f32.mrf.mxu0 }
0x1481   :  { %v1730_v9 = vadd.f32 %v1987_v23, %v1729_v8 }
0x1483   :  { %v1732_v28 = vadd.f32 %v1730_v9, %v2977_v20  ;;  %v1843_v20 = vld [vmem:[#allocation8 + $0x398] sm:$0xff] }
0x1484   :  { %1865 = vmatpush.msrb.mxu1 %v1843_v20 }
0x1485   :  { %v1768_v47 = vrot.slane %v1732_v28, 2  ;;  %v1792_v13 = vrot.slane %v1732_v28, 4  ;;  %v1816_v41 = vrot.slane %v1732_v28, 6  ;;  %1935 = vmatmul.msk.f32.vlgmr.msra.gmra.mxu1 %vm323_vm5, %v1732_v28 }
0x1486   :  { %1866 = vmatpush.msrb.mxu1 %v1842_v60 }
0x1487   :  { %1936 = vmatmul.msk.f32.vlgmr.msra.gmra.mxu2 %vm323_vm5, %v1768_v47  ;;  %1937 = vmatmul.msk.f32.vlgmr.msra.gmra.mxu3 %vm323_vm5, %v1792_v13 }
0x1488   :  { %1938 = vmatmul.msk.f32.vlgmr.msra.gmra.mxu0 %vm323_vm5, %v1816_v41  ;;  %1867 = vmatpush.msrb.mxu1 %v1841_v39 }
0x148a   :  { %1868 = vmatpush.msrb.mxu1 %v1840_v21 }
0x1502   :  { %v1764_v22 = vpop.f32.mrf.mxu1 }
0x1503   :  { %v1767_v61 = vadd.f32 %v1764_v22, %v1743_v45 }
0x1505   :  { %v1836_v16 = vpop.f32.mrf.mxu0 }
0x150a   :  { %v1788_v3 = vpop.f32.mrf.mxu2  ;;  %v1812_v29 = vpop.f32.mrf.mxu3 }
0x150b   :  { %v1791_v24 = vadd.f32 %v1788_v3, %v1767_v61 }
0x150d   :  { %v1815_v32 = vadd.f32 %v1812_v29, %v1791_v24 }
0x150f   :  { %v1839_v15 = vadd.f32 %v1836_v16, %v1815_v32 }
0x1511   :  { %1939 = vmatmul.msk.f32.vlgmr.msrb.gmra.mxu1 %vm716_vm13, %v1839_v15 }
0x158e   :  { %v1870_v36 = vpop.f32.mrf.mxu1 }
0x158f   :  { %v1871_v44 = vadd.f32 %v1989_v17, %v1870_v36 }
0x1591   :  { %1874 = vrot.lane.b32.xlu1 %v1871_v44, %s2228_s18 }
0x1603   :  { %v1875_v6 = vpop.permute.xlu1 %1874 }
0x1604   :  { %v1877_v33 = vsel %vm716_vm13, %v1839_v15, %v1875_v6 }
0x1605   :  { %1878 = vst [vmem:[#allocation10] sm:$0x3] %v1877_v33 }
0x1606   :  { %1889 = dma.vmem_to_hbm [thread:$0]  %s1885_s20, 32, %s1887_s23, [#allocation4]  }
0x1607   :  { %2206 = dma.done.wait [#allocation4], 32  }
0x1608   :  { %2207 = vsyncadd [#allocation4], 4294967264 }
0x1609   :  { %1894 = vsyncpa [#allocation3], 1 }
0x160a   :  { %1895 = vsyncpa [#allocation6], 1 }
0x160b   :  { %1896 = vsyncpa [#allocation9], 1 }
0x160c   :  { %1897 = vsyncpa [#allocation4], 1 }

</bundles_post_ra>
